<compile_context>
chip_gen: v6e
topology: v6e:2x2x1
jax: 0.10.0
libtpu: 0.0.40
codegen_flags: <defaults>
</compile_context>

<pallas_src>
import functools

import jax
import jax.numpy as jnp
from jax.experimental import pallas as pl
from jax.experimental.pallas import tpu as pltpu


def gamma_schedule(ts, gamma_min=-6.0, gamma_max=6.0):
    """Linear interpolation gamma_max -> gamma_min (same as PyTorch `gamma`)."""
    return gamma_max + (gamma_min - gamma_max) * ts


# ---------------------------------------------------------------------------
# Fused Pallas kernel: conv1 + ReLU + conv2 + ReLU + conv3 for one batch elem.
#
# Flat-padded layout:
#   * rawlike (rows, N_pad), N_pad = round_up(H*Wp, 128), Wp = W+2: column
#     p = (r-1)*Wp + c is the activation at padded-grid position (r, c),
#     r in [1, H]; c in {0, Wp-1} are zero W-halo columns; tail cols are zero.
#   * a_ref (rows, GUARD + N_pad + GUARD): rawlike placed at lane offset GUARD
#     (a multiple of 128, so interior stores are lane-aligned) with zero guard
#     bands on both sides.  The 3x3 tap (dy, dx) of output column p is the
#     static lane window a_ref[:, GUARD - (Wp+1) + dy*Wp + dx + p].
# ---------------------------------------------------------------------------
def _fused_kernel(gamma_sref, x_ref, mg_ref, w1_ref, b1_ref,
                  w2_ref, b2_ref, w3_ref, b3_ref, o_ref,
                  a_ref, col1_ref, *, C, H, W, HID, N_pad, GUARD):
    Wp = W + 2
    N_raw = H * Wp
    base = GUARD - (Wp + 1)          # lane offset of tap (dy=0, dx=0)

    b = pl.program_id(0)
    g = gamma_sref[b]                # scalar gamma from SMEM

    # Zero the guard bands of the persistent scratch.  Unconditional: with the
    # batch axis "parallel" each TensorCore owns its own scratch, and the
    # interior is fully overwritten by every layer anyway.
    zg = jnp.zeros((HID, GUARD), jnp.float32)
    a_ref[:, :GUARD] = zg
    a_ref[:, GUARD + N_pad:] = zg

    # Interior-pixel mask generated in-kernel (1.0 on real pixels, 0.0 on the
    # W-halo and lane-padding tail columns).  Hoisted once, reused for h1/h2.
    lane = jax.lax.broadcasted_iota(jnp.int32, (HID, N_pad), 1)
    cidx = lane % Wp
    mask = jnp.where((lane < N_raw) & (cidx >= 1) & (cidx <= W), 1.0, 0.0)

    # ---- layer 1: image taps on the MXU + hoisted gamma term --------------
    # Image channels into the guarded scratch (halo/tail cols already zero).
    a_ref[:C, GUARD:GUARD + N_pad] = x_ref[0]
    # 3x3 tap stack of the image (9*C rows) -> ONE matmul (HID, 9*C)@(9*C, N).
    for t in range(9):
        dy, dx = divmod(t, 3)
        off = base + dy * Wp + dx
        col1_ref[t * C:(t + 1) * C, :] = a_ref[:C, off:off + N_pad]
    y1 = jnp.dot(w1_ref[...], col1_ref[...], preferred_element_type=jnp.float32)
    # gamma channel: g * M_gamma, with M_gamma = conv(ones, w1_gamma) hoisted
    # to the wrapper (g-independent), reproducing the broadcast gamma channel
    # with "same" zero padding exactly.
    y1 = y1 + g * mg_ref[...] + b1_ref[...]
    h1 = jnp.maximum(y1, 0.0) * mask
    a_ref[:, GUARD:GUARD + N_pad] = h1

    # ---- layers 2 & 3: 9 accumulated MXU matmuls straight from the guarded
    # scratch windows (no im2col buffer, no concatenates). -------------------
    def conv_from_scratch(w_taps_ref, cout):
        acc = jnp.zeros((cout, N_pad), jnp.float32)
        for t in range(9):
            dy, dx = divmod(t, 3)
            off = base + dy * Wp + dx
            slab = a_ref[:, off:off + N_pad]                 # (HID, N_pad)
            acc = acc + jnp.dot(w_taps_ref[t], slab,
                                preferred_element_type=jnp.float32)
        return acc

    h2 = jnp.maximum(conv_from_scratch(w2_ref, HID) + b2_ref[...], 0.0) * mask
    a_ref[:, GUARD:GUARD + N_pad] = h2

    out = conv_from_scratch(w3_ref, C) + b3_ref[...]         # (C, N_pad), no ReLU
    o_ref[0] = out.astype(o_ref.dtype)


# ---------------------------------------------------------------------------
# Wrapper: matches NoisePredictor.forward semantics for NCHW inputs.
# ---------------------------------------------------------------------------
def noise_predictor_forward(params, x_nchw, gamma_vec):
    """x_nchw: [B, C, H, W] f32, gamma_vec: [B] f32 -> [B, C, H, W] f32."""
    B, C, H, W = x_nchw.shape
    HID = params["b1"].shape[0]
    Wp = W + 2
    N_raw = H * Wp
    N_pad = ((N_raw + 127) // 128) * 128             # lane axis multiple of 128
    GUARD = (((Wp + 1) + 127) // 128) * 128          # 128-aligned guard bands
    L = GUARD + N_pad + GUARD

    # W-halo pad + flatten rows + zero lane-padding tail: (B, C, N_pad).
    x_flat = jnp.pad(x_nchw, ((0, 0), (0, 0), (0, 0), (1, 1))).reshape(B, C, N_raw)
    x_flat = jnp.pad(x_flat, ((0, 0), (0, 0), (0, N_pad - N_raw)))

    # conv1 weights: image taps -> lane-dense (HID, 9*C) slab; gamma taps are
    # hoisted into M_gamma = conv(ones, w1_gamma) (tiny, batch-independent).
    w1 = params["w1"]                                 # (HID, C+1, 3, 3)
    w1_img = jnp.transpose(w1[:, :C], (0, 2, 3, 1)).reshape(HID, 9 * C)
    w1_gam = w1[:, C:C + 1]                           # (HID, 1, 3, 3)
    ones_img = jnp.ones((1, 1, H, W), jnp.float32)
    mg = jax.lax.conv_general_dilated(
        ones_img, w1_gam, window_strides=(1, 1), padding=((1, 1), (1, 1)),
        dimension_numbers=("NCHW", "OIHW", "NCHW"))[0]        # (HID, H, W)
    mg = jnp.pad(mg, ((0, 0), (0, 0), (1, 1))).reshape(HID, N_raw)
    mg = jnp.pad(mg, ((0, 0), (0, N_pad - N_raw)))

    # conv2/conv3 weights as per-tap stacks (9, Cout, Cin) -> direct w_ref[t].
    w2 = jnp.transpose(params["w2"], (2, 3, 0, 1)).reshape(9, HID, HID)
    w3 = jnp.transpose(params["w3"], (2, 3, 0, 1)).reshape(9, C, HID)
    b1 = params["b1"].reshape(HID, 1)
    b2 = params["b2"].reshape(HID, 1)
    b3 = params["b3"].reshape(C, 1)

    kernel = functools.partial(_fused_kernel, C=C, H=H, W=W, HID=HID,
                               N_pad=N_pad, GUARD=GUARD)

    flops = 2 * 9 * B * H * W * (C * HID + HID * HID + HID * C)
    bytes_accessed = 4 * (B * C * N_pad * 2 + HID * N_pad
                          + 9 * (C * HID + HID * HID + HID * C)
                          + 2 * HID + C + B)

    out_flat = pl.pallas_call(
        kernel,
        out_shape=jax.ShapeDtypeStruct((B, C, N_pad), jnp.float32),
        grid_spec=pltpu.PrefetchScalarGridSpec(
            num_scalar_prefetch=1,
            grid=(B,),
            in_specs=[
                pl.BlockSpec((1, C, N_pad), lambda b, g: (b, 0, 0)),    # x_flat
                pl.BlockSpec((HID, N_pad), lambda b, g: (0, 0)),        # M_gamma
                pl.BlockSpec((HID, 9 * C), lambda b, g: (0, 0)),        # w1 (img)
                pl.BlockSpec((HID, 1), lambda b, g: (0, 0)),            # b1
                pl.BlockSpec((9, HID, HID), lambda b, g: (0, 0, 0)),    # w2 taps
                pl.BlockSpec((HID, 1), lambda b, g: (0, 0)),            # b2
                pl.BlockSpec((9, C, HID), lambda b, g: (0, 0, 0)),      # w3 taps
                pl.BlockSpec((C, 1), lambda b, g: (0, 0)),              # b3
            ],
            out_specs=pl.BlockSpec((1, C, N_pad), lambda b, g: (b, 0, 0)),
            scratch_shapes=[
                pltpu.VMEM((HID, L), jnp.float32),         # guarded activations
                pltpu.VMEM((9 * C, N_pad), jnp.float32),   # layer-1 tap stack
            ],
        ),
        compiler_params=pltpu.CompilerParams(
            dimension_semantics=("parallel",)),
        cost_estimate=pl.CostEstimate(
            flops=flops, transcendentals=0, bytes_accessed=bytes_accessed),
    )(gamma_vec.astype(jnp.float32), x_flat, mg, w1_img, b1, w2, b2, w3, b3)

    # Drop lane padding + the two W-halo columns: (B, C, N_pad) -> (B, C, H, W).
    return out_flat[:, :, :N_raw].reshape(B, C, H, Wp)[:, :, :, 1:W + 1]


# ---------------------------------------------------------------------------
# Parameter init (PyTorch-style OIHW layout) and pure-JAX reference.
# ---------------------------------------------------------------------------
def init_params(key, image_channels=1, hidden=32):
    ks = jax.random.split(key, 6)

    def w(k, cin, cout):
        return (0.1 * jax.random.normal(k, (cout, cin, 3, 3))).astype(jnp.float32)

    def b(k, cout):
        return (0.05 * jax.random.normal(k, (cout,))).astype(jnp.float32)

    return {
        "w1": w(ks[0], image_channels + 1, hidden), "b1": b(ks[1], hidden),
        "w2": w(ks[2], hidden, hidden),             "b2": b(ks[3], hidden),
        "w3": w(ks[4], hidden, image_channels),     "b3": b(ks[5], image_channels),
    }


def _ref_forward(params, x_nchw, gamma_vec):
    B, C, H, W = x_nchw.shape
    gexp = jnp.broadcast_to(gamma_vec.reshape(B, 1, 1, 1), (B, 1, H, W))
    xin = jnp.concatenate([x_nchw, gexp], axis=1)

    def conv(h, w, bias):
        y = jax.lax.conv_general_dilated(
            h, w, window_strides=(1, 1), padding=((1, 1), (1, 1)),
            dimension_numbers=("NCHW", "OIHW", "NCHW"))
        return y + bias.reshape(1, -1, 1, 1)

    h = jax.nn.relu(conv(xin, params["w1"], params["b1"]))
    h = jax.nn.relu(conv(h, params["w2"], params["b2"]))
    return conv(h, params["w3"], params["b3"])


if __name__ == "__main__":
    key = jax.random.PRNGKey(0)
    k_param, k_x, k_t = jax.random.split(key, 3)

    B, C, H, W = 2, 1, 16, 16            # image_channels=1 (module default)
    params = init_params(k_param, image_channels=C)

    x = jax.random.normal(k_x, (B, C, H, W), dtype=jnp.float32)
    t = jax.random.uniform(k_t, (B,), dtype=jnp.float32)
    gamma_vec = gamma_schedule(t)        # [B] continuous-time gamma values

    fwd = jax.jit(noise_predictor_forward)
    out = jax.block_until_ready(fwd(params, x, gamma_vec))

    ref = jax.block_until_ready(_ref_forward(params, x, gamma_vec))
    assert out.shape == (B, C, H, W)
    max_err = float(jnp.max(jnp.abs(out - ref)))
    assert jnp.allclose(out, ref, atol=2e-4, rtol=2e-4), f"max abs err {max_err}"

    print("KERNEL_OK")
</pallas_src>

<mosaic_0001>
module attributes {stable_mosaic.version = 11 : i64} {
  func.func @_fused_kernel(%arg0: i32, %arg1: memref<2xf32, #tpu.memory_space<smem>>, %arg2: memref<1x1x384xf32, #tpu.memory_space<vmem>>, %arg3: memref<32x384xf32, #tpu.memory_space<vmem>>, %arg4: memref<32x9xf32, #tpu.memory_space<vmem>>, %arg5: memref<32x1xf32, #tpu.memory_space<vmem>>, %arg6: memref<9x32x32xf32, #tpu.memory_space<vmem>>, %arg7: memref<32x1xf32, #tpu.memory_space<vmem>>, %arg8: memref<9x1x32xf32, #tpu.memory_space<vmem>>, %arg9: memref<1x1xf32, #tpu.memory_space<vmem>>, %arg10: memref<1x1x384xf32, #tpu.memory_space<vmem>>, %arg11: memref<32x640xf32, #tpu.memory_space<vmem>>, %arg12: memref<9x384xf32, #tpu.memory_space<vmem>>) attributes {dimension_semantics = [#tpu.dimension_semantics<parallel>], iteration_bounds = array<i64: 2>, scalar_prefetch = 1 : i64, scratch_operands = 2 : i64, tpu.core_type = #tpu.core_type<tc>, window_params = [{transform_indices = @transform_0, window_bounds = array<i64: 1, 1, 384>}, {pipeline_mode = #tpu.pipeline_mode<synchronous>, transform_indices = @transform_1, window_bounds = array<i64: 32, 384>}, {pipeline_mode = #tpu.pipeline_mode<synchronous>, transform_indices = @transform_2, window_bounds = array<i64: 32, 9>}, {pipeline_mode = #tpu.pipeline_mode<synchronous>, transform_indices = @transform_3, window_bounds = array<i64: 32, 1>}, {pipeline_mode = #tpu.pipeline_mode<synchronous>, transform_indices = @transform_4, window_bounds = array<i64: 9, 32, 32>}, {pipeline_mode = #tpu.pipeline_mode<synchronous>, transform_indices = @transform_5, window_bounds = array<i64: 32, 1>}, {pipeline_mode = #tpu.pipeline_mode<synchronous>, transform_indices = @transform_6, window_bounds = array<i64: 9, 1, 32>}, {pipeline_mode = #tpu.pipeline_mode<synchronous>, transform_indices = @transform_7, window_bounds = array<i64: 1, 1>}, {transform_indices = @transform_8, window_bounds = array<i64: 1, 1, 384>}]} {
    %0 = arith.index_cast %arg0 : i32 to index
    %1 = memref.load %arg1[%0] : memref<2xf32, #tpu.memory_space<smem>>
    %cst = arith.constant 0.000000e+00 : f32
    %2 = vector.broadcast %cst : f32 to vector<32x128xf32>
    %c0 = arith.constant 0 : index
    %c0_0 = arith.constant 0 : index
    %3 = vector.load %arg11[%c0, %c0_0] : memref<32x640xf32, #tpu.memory_space<vmem>>, vector<32x128xf32>
    tpu.vector_store %arg11[%c0, %c0_0], %2 {strides = array<i32>} : memref<32x640xf32, #tpu.memory_space<vmem>>, vector<32x128xf32>,
    %c0_1 = arith.constant 0 : index
    %c512 = arith.constant 512 : index
    %4 = vector.load %arg11[%c0_1, %c512] : memref<32x640xf32, #tpu.memory_space<vmem>>, vector<32x128xf32>
    tpu.vector_store %arg11[%c0_1, %c512], %2 {strides = array<i32>} : memref<32x640xf32, #tpu.memory_space<vmem>>, vector<32x128xf32>,
    %5 = tpu.iota {dimensions = array<i32: 1>} : vector<32x384xi32>
    %c18_i32 = arith.constant 18 : i32
    %c0_i32 = arith.constant 0 : i32
    %6 = arith.cmpi eq, %c18_i32, %c0_i32 : i32
    %c1_i32 = arith.constant 1 : i32
    %7 = arith.select %6, %c1_i32, %c18_i32 : i32
    %8 = vector.broadcast %7 : i32 to vector<32x384xi32>
    %9 = arith.remsi %5, %8 : vector<32x384xi32>
    %c0_i32_2 = arith.constant 0 : i32
    %10 = vector.broadcast %c0_i32_2 : i32 to vector<32x384xi32>
    %11 = arith.cmpi ne, %9, %10 : vector<32x384xi32>
    %c0_i32_3 = arith.constant 0 : i32
    %12 = vector.broadcast %c0_i32_3 : i32 to vector<32x384xi32>
    %13 = arith.cmpi slt, %9, %12 : vector<32x384xi32>
    %c0_i32_4 = arith.constant 0 : i32
    %14 = arith.cmpi slt, %7, %c0_i32_4 : i32
    %15 = vector.broadcast %14 : i1 to vector<32x384xi1>
    %16 = vector.broadcast %15 : vector<32x384xi1> to vector<32x384xi1>
    %17 = arith.xori %13, %16 : vector<32x384xi1>
    %18 = arith.andi %17, %11 : vector<32x384xi1>
    %19 = vector.broadcast %7 : i32 to vector<32x384xi32>
    %20 = arith.addi %9, %19 : vector<32x384xi32>
    %21 = arith.select %18, %20, %9 : vector<32x384xi1>, vector<32x384xi32>
    %c288_i32 = arith.constant 288 : i32
    %22 = vector.broadcast %c288_i32 : i32 to vector<32x384xi32>
    %23 = arith.cmpi slt, %5, %22 : vector<32x384xi32>
    %c1_i32_5 = arith.constant 1 : i32
    %24 = vector.broadcast %c1_i32_5 : i32 to vector<32x384xi32>
    %25 = arith.cmpi sge, %21, %24 : vector<32x384xi32>
    %26 = arith.andi %23, %25 : vector<32x384xi1>
    %c16_i32 = arith.constant 16 : i32
    %27 = vector.broadcast %c16_i32 : i32 to vector<32x384xi32>
    %28 = arith.cmpi sle, %21, %27 : vector<32x384xi32>
    %29 = arith.andi %26, %28 : vector<32x384xi1>
    %cst_6 = arith.constant 1.000000e+00 : f32
    %cst_7 = arith.constant 0.000000e+00 : f32
    %30 = vector.broadcast %cst_6 : f32 to vector<32x384xf32>
    %31 = vector.broadcast %cst_7 : f32 to vector<32x384xf32>
    %32 = arith.select %29, %30, %31 : vector<32x384xi1>, vector<32x384xf32>
    %c0_8 = arith.constant 0 : index
    %c0_9 = arith.constant 0 : index
    %c0_10 = arith.constant 0 : index
    %33 = vector.load %arg2[%c0_8, %c0_9, %c0_10] : memref<1x1x384xf32, #tpu.memory_space<vmem>>, vector<1x1x384xf32>
    %34 = vector.shape_cast %33 : vector<1x1x384xf32> to vector<1x384xf32>
    %c0_11 = arith.constant 0 : index
    %c128 = arith.constant 128 : index
    %35 = vector.load %arg11[%c0_11, %c128] : memref<32x640xf32, #tpu.memory_space<vmem>>, vector<1x384xf32>
    tpu.vector_store %arg11[%c0_11, %c128], %34 {strides = array<i32>} : memref<32x640xf32, #tpu.memory_space<vmem>>, vector<1x384xf32>,
    %c0_12 = arith.constant 0 : index
    %c109 = arith.constant 109 : index
    %36 = vector.load %arg11[%c0_12, %c109] : memref<32x640xf32, #tpu.memory_space<vmem>>, vector<1x384xf32>
    %c0_13 = arith.constant 0 : index
    %c0_14 = arith.constant 0 : index
    %37 = vector.load %arg12[%c0_13, %c0_14] : memref<9x384xf32, #tpu.memory_space<vmem>>, vector<1x384xf32>
    tpu.vector_store %arg12[%c0_13, %c0_14], %36 {strides = array<i32>} : memref<9x384xf32, #tpu.memory_space<vmem>>, vector<1x384xf32>,
    %c0_15 = arith.constant 0 : index
    %c110 = arith.constant 110 : index
    %38 = vector.load %arg11[%c0_15, %c110] : memref<32x640xf32, #tpu.memory_space<vmem>>, vector<1x384xf32>
    %c1 = arith.constant 1 : index
    %c0_16 = arith.constant 0 : index
    %39 = vector.load %arg12[%c1, %c0_16] : memref<9x384xf32, #tpu.memory_space<vmem>>, vector<1x384xf32>
    tpu.vector_store %arg12[%c1, %c0_16], %38 {strides = array<i32>} : memref<9x384xf32, #tpu.memory_space<vmem>>, vector<1x384xf32>,
    %c0_17 = arith.constant 0 : index
    %c111 = arith.constant 111 : index
    %40 = vector.load %arg11[%c0_17, %c111] : memref<32x640xf32, #tpu.memory_space<vmem>>, vector<1x384xf32>
    %c2 = arith.constant 2 : index
    %c0_18 = arith.constant 0 : index
    %41 = vector.load %arg12[%c2, %c0_18] : memref<9x384xf32, #tpu.memory_space<vmem>>, vector<1x384xf32>
    tpu.vector_store %arg12[%c2, %c0_18], %40 {strides = array<i32>} : memref<9x384xf32, #tpu.memory_space<vmem>>, vector<1x384xf32>,
    %c0_19 = arith.constant 0 : index
    %c127 = arith.constant 127 : index
    %42 = vector.load %arg11[%c0_19, %c127] : memref<32x640xf32, #tpu.memory_space<vmem>>, vector<1x384xf32>
    %c3 = arith.constant 3 : index
    %c0_20 = arith.constant 0 : index
    %43 = vector.load %arg12[%c3, %c0_20] : memref<9x384xf32, #tpu.memory_space<vmem>>, vector<1x384xf32>
    tpu.vector_store %arg12[%c3, %c0_20], %42 {strides = array<i32>} : memref<9x384xf32, #tpu.memory_space<vmem>>, vector<1x384xf32>,
    %c0_21 = arith.constant 0 : index
    %c128_22 = arith.constant 128 : index
    %44 = vector.load %arg11[%c0_21, %c128_22] : memref<32x640xf32, #tpu.memory_space<vmem>>, vector<1x384xf32>
    %c4 = arith.constant 4 : index
    %c0_23 = arith.constant 0 : index
    %45 = vector.load %arg12[%c4, %c0_23] : memref<9x384xf32, #tpu.memory_space<vmem>>, vector<1x384xf32>
    tpu.vector_store %arg12[%c4, %c0_23], %44 {strides = array<i32>} : memref<9x384xf32, #tpu.memory_space<vmem>>, vector<1x384xf32>,
    %c0_24 = arith.constant 0 : index
    %c129 = arith.constant 129 : index
    %46 = vector.load %arg11[%c0_24, %c129] : memref<32x640xf32, #tpu.memory_space<vmem>>, vector<1x384xf32>
    %c5 = arith.constant 5 : index
    %c0_25 = arith.constant 0 : index
    %47 = vector.load %arg12[%c5, %c0_25] : memref<9x384xf32, #tpu.memory_space<vmem>>, vector<1x384xf32>
    tpu.vector_store %arg12[%c5, %c0_25], %46 {strides = array<i32>} : memref<9x384xf32, #tpu.memory_space<vmem>>, vector<1x384xf32>,
    %c0_26 = arith.constant 0 : index
    %c145 = arith.constant 145 : index
    %48 = vector.load %arg11[%c0_26, %c145] : memref<32x640xf32, #tpu.memory_space<vmem>>, vector<1x384xf32>
    %c6 = arith.constant 6 : index
    %c0_27 = arith.constant 0 : index
    %49 = vector.load %arg12[%c6, %c0_27] : memref<9x384xf32, #tpu.memory_space<vmem>>, vector<1x384xf32>
    tpu.vector_store %arg12[%c6, %c0_27], %48 {strides = array<i32>} : memref<9x384xf32, #tpu.memory_space<vmem>>, vector<1x384xf32>,
    %c0_28 = arith.constant 0 : index
    %c146 = arith.constant 146 : index
    %50 = vector.load %arg11[%c0_28, %c146] : memref<32x640xf32, #tpu.memory_space<vmem>>, vector<1x384xf32>
    %c7 = arith.constant 7 : index
    %c0_29 = arith.constant 0 : index
    %51 = vector.load %arg12[%c7, %c0_29] : memref<9x384xf32, #tpu.memory_space<vmem>>, vector<1x384xf32>
    tpu.vector_store %arg12[%c7, %c0_29], %50 {strides = array<i32>} : memref<9x384xf32, #tpu.memory_space<vmem>>, vector<1x384xf32>,
    %c0_30 = arith.constant 0 : index
    %c147 = arith.constant 147 : index
    %52 = vector.load %arg11[%c0_30, %c147] : memref<32x640xf32, #tpu.memory_space<vmem>>, vector<1x384xf32>
    %c8 = arith.constant 8 : index
    %c0_31 = arith.constant 0 : index
    %53 = vector.load %arg12[%c8, %c0_31] : memref<9x384xf32, #tpu.memory_space<vmem>>, vector<1x384xf32>
    tpu.vector_store %arg12[%c8, %c0_31], %52 {strides = array<i32>} : memref<9x384xf32, #tpu.memory_space<vmem>>, vector<1x384xf32>,
    %c0_32 = arith.constant 0 : index
    %c0_33 = arith.constant 0 : index
    %54 = vector.load %arg4[%c0_32, %c0_33] : memref<32x9xf32, #tpu.memory_space<vmem>>, vector<32x9xf32>
    %c0_34 = arith.constant 0 : index
    %c0_35 = arith.constant 0 : index
    %55 = vector.load %arg12[%c0_34, %c0_35] : memref<9x384xf32, #tpu.memory_space<vmem>>, vector<9x384xf32>
    %cst_36 = arith.constant dense<0.000000e+00> : vector<32x384xf32>
    %56 = tpu.matmul %54, %55, %cst_36 {dimension_numbers = #tpu.dot_dimension_numbers<[1], [0], [0], [1], [0, 0, 1, 1], [], []>} : vector<32x9xf32>, vector<9x384xf32>, vector<32x384xf32> -> vector<32x384xf32>
    %c0_37 = arith.constant 0 : index
    %c0_38 = arith.constant 0 : index
    %57 = vector.load %arg3[%c0_37, %c0_38] : memref<32x384xf32, #tpu.memory_space<vmem>>, vector<32x384xf32>
    %58 = vector.broadcast %1 : f32 to vector<32x384xf32>
    %59 = arith.mulf %58, %57 : vector<32x384xf32>
    %60 = arith.addf %56, %59 : vector<32x384xf32>
    %c0_39 = arith.constant 0 : index
    %c0_40 = arith.constant 0 : index
    %61 = vector.load %arg5[%c0_39, %c0_40] : memref<32x1xf32, #tpu.memory_space<vmem>>, vector<32x1xf32>
    %62 = vector.broadcast %61 : vector<32x1xf32> to vector<32x384xf32>
    %63 = arith.addf %60, %62 : vector<32x384xf32>
    %cst_41 = arith.constant 0.000000e+00 : f32
    %64 = vector.broadcast %cst_41 : f32 to vector<32x384xf32>
    %65 = arith.maximumf %63, %64 : vector<32x384xf32>
    %66 = arith.mulf %65, %32 : vector<32x384xf32>
    %c0_42 = arith.constant 0 : index
    %c128_43 = arith.constant 128 : index
    %67 = vector.load %arg11[%c0_42, %c128_43] : memref<32x640xf32, #tpu.memory_space<vmem>>, vector<32x384xf32>
    tpu.vector_store %arg11[%c0_42, %c128_43], %66 {strides = array<i32>} : memref<32x640xf32, #tpu.memory_space<vmem>>, vector<32x384xf32>,
    %cst_44 = arith.constant 0.000000e+00 : f32
    %68 = vector.broadcast %cst_44 : f32 to vector<32x384xf32>
    %c0_45 = arith.constant 0 : index
    %c109_46 = arith.constant 109 : index
    %69 = vector.load %arg11[%c0_45, %c109_46] : memref<32x640xf32, #tpu.memory_space<vmem>>, vector<32x384xf32>
    %c0_47 = arith.constant 0 : index
    %c0_48 = arith.constant 0 : index
    %c0_49 = arith.constant 0 : index
    %70 = vector.load %arg6[%c0_47, %c0_48, %c0_49] : memref<9x32x32xf32, #tpu.memory_space<vmem>>, vector<1x32x32xf32>
    %71 = vector.shape_cast %70 : vector<1x32x32xf32> to vector<32x32xf32>
    %cst_50 = arith.constant dense<0.000000e+00> : vector<32x384xf32>
    %72 = tpu.matmul %71, %69, %cst_50 {dimension_numbers = #tpu.dot_dimension_numbers<[1], [0], [0], [1], [0, 0, 1, 1], [], []>} : vector<32x32xf32>, vector<32x384xf32>, vector<32x384xf32> -> vector<32x384xf32>
    %73 = arith.addf %68, %72 : vector<32x384xf32>
    %c0_51 = arith.constant 0 : index
    %c110_52 = arith.constant 110 : index
    %74 = vector.load %arg11[%c0_51, %c110_52] : memref<32x640xf32, #tpu.memory_space<vmem>>, vector<32x384xf32>
    %c1_53 = arith.constant 1 : index
    %c0_54 = arith.constant 0 : index
    %c0_55 = arith.constant 0 : index
    %75 = vector.load %arg6[%c1_53, %c0_54, %c0_55] : memref<9x32x32xf32, #tpu.memory_space<vmem>>, vector<1x32x32xf32>
    %76 = vector.shape_cast %75 : vector<1x32x32xf32> to vector<32x32xf32>
    %cst_56 = arith.constant dense<0.000000e+00> : vector<32x384xf32>
    %77 = tpu.matmul %76, %74, %cst_56 {dimension_numbers = #tpu.dot_dimension_numbers<[1], [0], [0], [1], [0, 0, 1, 1], [], []>} : vector<32x32xf32>, vector<32x384xf32>, vector<32x384xf32> -> vector<32x384xf32>
    %78 = arith.addf %73, %77 : vector<32x384xf32>
    %c0_57 = arith.constant 0 : index
    %c111_58 = arith.constant 111 : index
    %79 = vector.load %arg11[%c0_57, %c111_58] : memref<32x640xf32, #tpu.memory_space<vmem>>, vector<32x384xf32>
    %c2_59 = arith.constant 2 : index
    %c0_60 = arith.constant 0 : index
    %c0_61 = arith.constant 0 : index
    %80 = vector.load %arg6[%c2_59, %c0_60, %c0_61] : memref<9x32x32xf32, #tpu.memory_space<vmem>>, vector<1x32x32xf32>
    %81 = vector.shape_cast %80 : vector<1x32x32xf32> to vector<32x32xf32>
    %cst_62 = arith.constant dense<0.000000e+00> : vector<32x384xf32>
    %82 = tpu.matmul %81, %79, %cst_62 {dimension_numbers = #tpu.dot_dimension_numbers<[1], [0], [0], [1], [0, 0, 1, 1], [], []>} : vector<32x32xf32>, vector<32x384xf32>, vector<32x384xf32> -> vector<32x384xf32>
    %83 = arith.addf %78, %82 : vector<32x384xf32>
    %c0_63 = arith.constant 0 : index
    %c127_64 = arith.constant 127 : index
    %84 = vector.load %arg11[%c0_63, %c127_64] : memref<32x640xf32, #tpu.memory_space<vmem>>, vector<32x384xf32>
    %c3_65 = arith.constant 3 : index
    %c0_66 = arith.constant 0 : index
    %c0_67 = arith.constant 0 : index
    %85 = vector.load %arg6[%c3_65, %c0_66, %c0_67] : memref<9x32x32xf32, #tpu.memory_space<vmem>>, vector<1x32x32xf32>
    %86 = vector.shape_cast %85 : vector<1x32x32xf32> to vector<32x32xf32>
    %cst_68 = arith.constant dense<0.000000e+00> : vector<32x384xf32>
    %87 = tpu.matmul %86, %84, %cst_68 {dimension_numbers = #tpu.dot_dimension_numbers<[1], [0], [0], [1], [0, 0, 1, 1], [], []>} : vector<32x32xf32>, vector<32x384xf32>, vector<32x384xf32> -> vector<32x384xf32>
    %88 = arith.addf %83, %87 : vector<32x384xf32>
    %c0_69 = arith.constant 0 : index
    %c128_70 = arith.constant 128 : index
    %89 = vector.load %arg11[%c0_69, %c128_70] : memref<32x640xf32, #tpu.memory_space<vmem>>, vector<32x384xf32>
    %c4_71 = arith.constant 4 : index
    %c0_72 = arith.constant 0 : index
    %c0_73 = arith.constant 0 : index
    %90 = vector.load %arg6[%c4_71, %c0_72, %c0_73] : memref<9x32x32xf32, #tpu.memory_space<vmem>>, vector<1x32x32xf32>
    %91 = vector.shape_cast %90 : vector<1x32x32xf32> to vector<32x32xf32>
    %cst_74 = arith.constant dense<0.000000e+00> : vector<32x384xf32>
    %92 = tpu.matmul %91, %89, %cst_74 {dimension_numbers = #tpu.dot_dimension_numbers<[1], [0], [0], [1], [0, 0, 1, 1], [], []>} : vector<32x32xf32>, vector<32x384xf32>, vector<32x384xf32> -> vector<32x384xf32>
    %93 = arith.addf %88, %92 : vector<32x384xf32>
    %c0_75 = arith.constant 0 : index
    %c129_76 = arith.constant 129 : index
    %94 = vector.load %arg11[%c0_75, %c129_76] : memref<32x640xf32, #tpu.memory_space<vmem>>, vector<32x384xf32>
    %c5_77 = arith.constant 5 : index
    %c0_78 = arith.constant 0 : index
    %c0_79 = arith.constant 0 : index
    %95 = vector.load %arg6[%c5_77, %c0_78, %c0_79] : memref<9x32x32xf32, #tpu.memory_space<vmem>>, vector<1x32x32xf32>
    %96 = vector.shape_cast %95 : vector<1x32x32xf32> to vector<32x32xf32>
    %cst_80 = arith.constant dense<0.000000e+00> : vector<32x384xf32>
    %97 = tpu.matmul %96, %94, %cst_80 {dimension_numbers = #tpu.dot_dimension_numbers<[1], [0], [0], [1], [0, 0, 1, 1], [], []>} : vector<32x32xf32>, vector<32x384xf32>, vector<32x384xf32> -> vector<32x384xf32>
    %98 = arith.addf %93, %97 : vector<32x384xf32>
    %c0_81 = arith.constant 0 : index
    %c145_82 = arith.constant 145 : index
    %99 = vector.load %arg11[%c0_81, %c145_82] : memref<32x640xf32, #tpu.memory_space<vmem>>, vector<32x384xf32>
    %c6_83 = arith.constant 6 : index
    %c0_84 = arith.constant 0 : index
    %c0_85 = arith.constant 0 : index
    %100 = vector.load %arg6[%c6_83, %c0_84, %c0_85] : memref<9x32x32xf32, #tpu.memory_space<vmem>>, vector<1x32x32xf32>
    %101 = vector.shape_cast %100 : vector<1x32x32xf32> to vector<32x32xf32>
    %cst_86 = arith.constant dense<0.000000e+00> : vector<32x384xf32>
    %102 = tpu.matmul %101, %99, %cst_86 {dimension_numbers = #tpu.dot_dimension_numbers<[1], [0], [0], [1], [0, 0, 1, 1], [], []>} : vector<32x32xf32>, vector<32x384xf32>, vector<32x384xf32> -> vector<32x384xf32>
    %103 = arith.addf %98, %102 : vector<32x384xf32>
    %c0_87 = arith.constant 0 : index
    %c146_88 = arith.constant 146 : index
    %104 = vector.load %arg11[%c0_87, %c146_88] : memref<32x640xf32, #tpu.memory_space<vmem>>, vector<32x384xf32>
    %c7_89 = arith.constant 7 : index
    %c0_90 = arith.constant 0 : index
    %c0_91 = arith.constant 0 : index
    %105 = vector.load %arg6[%c7_89, %c0_90, %c0_91] : memref<9x32x32xf32, #tpu.memory_space<vmem>>, vector<1x32x32xf32>
    %106 = vector.shape_cast %105 : vector<1x32x32xf32> to vector<32x32xf32>
    %cst_92 = arith.constant dense<0.000000e+00> : vector<32x384xf32>
    %107 = tpu.matmul %106, %104, %cst_92 {dimension_numbers = #tpu.dot_dimension_numbers<[1], [0], [0], [1], [0, 0, 1, 1], [], []>} : vector<32x32xf32>, vector<32x384xf32>, vector<32x384xf32> -> vector<32x384xf32>
    %108 = arith.addf %103, %107 : vector<32x384xf32>
    %c0_93 = arith.constant 0 : index
    %c147_94 = arith.constant 147 : index
    %109 = vector.load %arg11[%c0_93, %c147_94] : memref<32x640xf32, #tpu.memory_space<vmem>>, vector<32x384xf32>
    %c8_95 = arith.constant 8 : index
    %c0_96 = arith.constant 0 : index
    %c0_97 = arith.constant 0 : index
    %110 = vector.load %arg6[%c8_95, %c0_96, %c0_97] : memref<9x32x32xf32, #tpu.memory_space<vmem>>, vector<1x32x32xf32>
    %111 = vector.shape_cast %110 : vector<1x32x32xf32> to vector<32x32xf32>
    %cst_98 = arith.constant dense<0.000000e+00> : vector<32x384xf32>
    %112 = tpu.matmul %111, %109, %cst_98 {dimension_numbers = #tpu.dot_dimension_numbers<[1], [0], [0], [1], [0, 0, 1, 1], [], []>} : vector<32x32xf32>, vector<32x384xf32>, vector<32x384xf32> -> vector<32x384xf32>
    %113 = arith.addf %108, %112 : vector<32x384xf32>
    %c0_99 = arith.constant 0 : index
    %c0_100 = arith.constant 0 : index
    %114 = vector.load %arg7[%c0_99, %c0_100] : memref<32x1xf32, #tpu.memory_space<vmem>>, vector<32x1xf32>
    %115 = vector.broadcast %114 : vector<32x1xf32> to vector<32x384xf32>
    %116 = arith.addf %113, %115 : vector<32x384xf32>
    %cst_101 = arith.constant 0.000000e+00 : f32
    %117 = vector.broadcast %cst_101 : f32 to vector<32x384xf32>
    %118 = arith.maximumf %116, %117 : vector<32x384xf32>
    %119 = arith.mulf %118, %32 : vector<32x384xf32>
    %c0_102 = arith.constant 0 : index
    %c128_103 = arith.constant 128 : index
    %120 = vector.load %arg11[%c0_102, %c128_103] : memref<32x640xf32, #tpu.memory_space<vmem>>, vector<32x384xf32>
    tpu.vector_store %arg11[%c0_102, %c128_103], %119 {strides = array<i32>} : memref<32x640xf32, #tpu.memory_space<vmem>>, vector<32x384xf32>,
    %cst_104 = arith.constant 0.000000e+00 : f32
    %121 = vector.broadcast %cst_104 : f32 to vector<1x384xf32>
    %c0_105 = arith.constant 0 : index
    %c109_106 = arith.constant 109 : index
    %122 = vector.load %arg11[%c0_105, %c109_106] : memref<32x640xf32, #tpu.memory_space<vmem>>, vector<32x384xf32>
    %c0_107 = arith.constant 0 : index
    %c0_108 = arith.constant 0 : index
    %c0_109 = arith.constant 0 : index
    %123 = vector.load %arg8[%c0_107, %c0_108, %c0_109] : memref<9x1x32xf32, #tpu.memory_space<vmem>>, vector<1x1x32xf32>
    %124 = vector.shape_cast %123 : vector<1x1x32xf32> to vector<1x32xf32>
    %cst_110 = arith.constant dense<0.000000e+00> : vector<1x384xf32>
    %125 = tpu.matmul %124, %122, %cst_110 {dimension_numbers = #tpu.dot_dimension_numbers<[1], [0], [0], [1], [0, 0, 1, 1], [], []>} : vector<1x32xf32>, vector<32x384xf32>, vector<1x384xf32> -> vector<1x384xf32>
    %126 = arith.addf %121, %125 : vector<1x384xf32>
    %c0_111 = arith.constant 0 : index
    %c110_112 = arith.constant 110 : index
    %127 = vector.load %arg11[%c0_111, %c110_112] : memref<32x640xf32, #tpu.memory_space<vmem>>, vector<32x384xf32>
    %c1_113 = arith.constant 1 : index
    %c0_114 = arith.constant 0 : index
    %c0_115 = arith.constant 0 : index
    %128 = vector.load %arg8[%c1_113, %c0_114, %c0_115] : memref<9x1x32xf32, #tpu.memory_space<vmem>>, vector<1x1x32xf32>
    %129 = vector.shape_cast %128 : vector<1x1x32xf32> to vector<1x32xf32>
    %cst_116 = arith.constant dense<0.000000e+00> : vector<1x384xf32>
    %130 = tpu.matmul %129, %127, %cst_116 {dimension_numbers = #tpu.dot_dimension_numbers<[1], [0], [0], [1], [0, 0, 1, 1], [], []>} : vector<1x32xf32>, vector<32x384xf32>, vector<1x384xf32> -> vector<1x384xf32>
    %131 = arith.addf %126, %130 : vector<1x384xf32>
    %c0_117 = arith.constant 0 : index
    %c111_118 = arith.constant 111 : index
    %132 = vector.load %arg11[%c0_117, %c111_118] : memref<32x640xf32, #tpu.memory_space<vmem>>, vector<32x384xf32>
    %c2_119 = arith.constant 2 : index
    %c0_120 = arith.constant 0 : index
    %c0_121 = arith.constant 0 : index
    %133 = vector.load %arg8[%c2_119, %c0_120, %c0_121] : memref<9x1x32xf32, #tpu.memory_space<vmem>>, vector<1x1x32xf32>
    %134 = vector.shape_cast %133 : vector<1x1x32xf32> to vector<1x32xf32>
    %cst_122 = arith.constant dense<0.000000e+00> : vector<1x384xf32>
    %135 = tpu.matmul %134, %132, %cst_122 {dimension_numbers = #tpu.dot_dimension_numbers<[1], [0], [0], [1], [0, 0, 1, 1], [], []>} : vector<1x32xf32>, vector<32x384xf32>, vector<1x384xf32> -> vector<1x384xf32>
    %136 = arith.addf %131, %135 : vector<1x384xf32>
    %c0_123 = arith.constant 0 : index
    %c127_124 = arith.constant 127 : index
    %137 = vector.load %arg11[%c0_123, %c127_124] : memref<32x640xf32, #tpu.memory_space<vmem>>, vector<32x384xf32>
    %c3_125 = arith.constant 3 : index
    %c0_126 = arith.constant 0 : index
    %c0_127 = arith.constant 0 : index
    %138 = vector.load %arg8[%c3_125, %c0_126, %c0_127] : memref<9x1x32xf32, #tpu.memory_space<vmem>>, vector<1x1x32xf32>
    %139 = vector.shape_cast %138 : vector<1x1x32xf32> to vector<1x32xf32>
    %cst_128 = arith.constant dense<0.000000e+00> : vector<1x384xf32>
    %140 = tpu.matmul %139, %137, %cst_128 {dimension_numbers = #tpu.dot_dimension_numbers<[1], [0], [0], [1], [0, 0, 1, 1], [], []>} : vector<1x32xf32>, vector<32x384xf32>, vector<1x384xf32> -> vector<1x384xf32>
    %141 = arith.addf %136, %140 : vector<1x384xf32>
    %c0_129 = arith.constant 0 : index
    %c128_130 = arith.constant 128 : index
    %142 = vector.load %arg11[%c0_129, %c128_130] : memref<32x640xf32, #tpu.memory_space<vmem>>, vector<32x384xf32>
    %c4_131 = arith.constant 4 : index
    %c0_132 = arith.constant 0 : index
    %c0_133 = arith.constant 0 : index
    %143 = vector.load %arg8[%c4_131, %c0_132, %c0_133] : memref<9x1x32xf32, #tpu.memory_space<vmem>>, vector<1x1x32xf32>
    %144 = vector.shape_cast %143 : vector<1x1x32xf32> to vector<1x32xf32>
    %cst_134 = arith.constant dense<0.000000e+00> : vector<1x384xf32>
    %145 = tpu.matmul %144, %142, %cst_134 {dimension_numbers = #tpu.dot_dimension_numbers<[1], [0], [0], [1], [0, 0, 1, 1], [], []>} : vector<1x32xf32>, vector<32x384xf32>, vector<1x384xf32> -> vector<1x384xf32>
    %146 = arith.addf %141, %145 : vector<1x384xf32>
    %c0_135 = arith.constant 0 : index
    %c129_136 = arith.constant 129 : index
    %147 = vector.load %arg11[%c0_135, %c129_136] : memref<32x640xf32, #tpu.memory_space<vmem>>, vector<32x384xf32>
    %c5_137 = arith.constant 5 : index
    %c0_138 = arith.constant 0 : index
    %c0_139 = arith.constant 0 : index
    %148 = vector.load %arg8[%c5_137, %c0_138, %c0_139] : memref<9x1x32xf32, #tpu.memory_space<vmem>>, vector<1x1x32xf32>
    %149 = vector.shape_cast %148 : vector<1x1x32xf32> to vector<1x32xf32>
    %cst_140 = arith.constant dense<0.000000e+00> : vector<1x384xf32>
    %150 = tpu.matmul %149, %147, %cst_140 {dimension_numbers = #tpu.dot_dimension_numbers<[1], [0], [0], [1], [0, 0, 1, 1], [], []>} : vector<1x32xf32>, vector<32x384xf32>, vector<1x384xf32> -> vector<1x384xf32>
    %151 = arith.addf %146, %150 : vector<1x384xf32>
    %c0_141 = arith.constant 0 : index
    %c145_142 = arith.constant 145 : index
    %152 = vector.load %arg11[%c0_141, %c145_142] : memref<32x640xf32, #tpu.memory_space<vmem>>, vector<32x384xf32>
    %c6_143 = arith.constant 6 : index
    %c0_144 = arith.constant 0 : index
    %c0_145 = arith.constant 0 : index
    %153 = vector.load %arg8[%c6_143, %c0_144, %c0_145] : memref<9x1x32xf32, #tpu.memory_space<vmem>>, vector<1x1x32xf32>
    %154 = vector.shape_cast %153 : vector<1x1x32xf32> to vector<1x32xf32>
    %cst_146 = arith.constant dense<0.000000e+00> : vector<1x384xf32>
    %155 = tpu.matmul %154, %152, %cst_146 {dimension_numbers = #tpu.dot_dimension_numbers<[1], [0], [0], [1], [0, 0, 1, 1], [], []>} : vector<1x32xf32>, vector<32x384xf32>, vector<1x384xf32> -> vector<1x384xf32>
    %156 = arith.addf %151, %155 : vector<1x384xf32>
    %c0_147 = arith.constant 0 : index
    %c146_148 = arith.constant 146 : index
    %157 = vector.load %arg11[%c0_147, %c146_148] : memref<32x640xf32, #tpu.memory_space<vmem>>, vector<32x384xf32>
    %c7_149 = arith.constant 7 : index
    %c0_150 = arith.constant 0 : index
    %c0_151 = arith.constant 0 : index
    %158 = vector.load %arg8[%c7_149, %c0_150, %c0_151] : memref<9x1x32xf32, #tpu.memory_space<vmem>>, vector<1x1x32xf32>
    %159 = vector.shape_cast %158 : vector<1x1x32xf32> to vector<1x32xf32>
    %cst_152 = arith.constant dense<0.000000e+00> : vector<1x384xf32>
    %160 = tpu.matmul %159, %157, %cst_152 {dimension_numbers = #tpu.dot_dimension_numbers<[1], [0], [0], [1], [0, 0, 1, 1], [], []>} : vector<1x32xf32>, vector<32x384xf32>, vector<1x384xf32> -> vector<1x384xf32>
    %161 = arith.addf %156, %160 : vector<1x384xf32>
    %c0_153 = arith.constant 0 : index
    %c147_154 = arith.constant 147 : index
    %162 = vector.load %arg11[%c0_153, %c147_154] : memref<32x640xf32, #tpu.memory_space<vmem>>, vector<32x384xf32>
    %c8_155 = arith.constant 8 : index
    %c0_156 = arith.constant 0 : index
    %c0_157 = arith.constant 0 : index
    %163 = vector.load %arg8[%c8_155, %c0_156, %c0_157] : memref<9x1x32xf32, #tpu.memory_space<vmem>>, vector<1x1x32xf32>
    %164 = vector.shape_cast %163 : vector<1x1x32xf32> to vector<1x32xf32>
    %cst_158 = arith.constant dense<0.000000e+00> : vector<1x384xf32>
    %165 = tpu.matmul %164, %162, %cst_158 {dimension_numbers = #tpu.dot_dimension_numbers<[1], [0], [0], [1], [0, 0, 1, 1], [], []>} : vector<1x32xf32>, vector<32x384xf32>, vector<1x384xf32> -> vector<1x384xf32>
    %166 = arith.addf %161, %165 : vector<1x384xf32>
    %c0_159 = arith.constant 0 : index
    %c0_160 = arith.constant 0 : index
    %167 = vector.load %arg9[%c0_159, %c0_160] : memref<1x1xf32, #tpu.memory_space<vmem>>, vector<1x1xf32>
    %168 = vector.broadcast %167 : vector<1x1xf32> to vector<1x384xf32>
    %169 = arith.addf %166, %168 : vector<1x384xf32>
    %c0_161 = arith.constant 0 : index
    %c0_162 = arith.constant 0 : index
    %c0_163 = arith.constant 0 : index
    %170 = vector.load %arg10[%c0_161, %c0_162, %c0_163] : memref<1x1x384xf32, #tpu.memory_space<vmem>>, vector<1x1x384xf32>
    %171 = vector.shape_cast %170 : vector<1x1x384xf32> to vector<1x384xf32>
    %172 = vector.shape_cast %169 : vector<1x384xf32> to vector<1x1x384xf32>
    tpu.vector_store %arg10[%c0_161, %c0_162, %c0_163], %172 {strides = array<i32>} : memref<1x1x384xf32, #tpu.memory_space<vmem>>, vector<1x1x384xf32>,
    return
  }
  func.func @transform_0(%arg0: i32, %arg1: memref<2xf32, #tpu.memory_space<smem>>) -> (i32, i32, i32) {
    %c0_i32 = arith.constant 0 : i32
    %c0_i32_0 = arith.constant 0 : i32
    %c0_i32_1 = arith.constant 0 : i32
    return %arg0, %c0_i32, %c0_i32_0 : i32, i32, i32
  }
  func.func @transform_1(%arg0: i32, %arg1: memref<2xf32, #tpu.memory_space<smem>>) -> (i32, i32) {
    %c0_i32 = arith.constant 0 : i32
    %c0_i32_0 = arith.constant 0 : i32
    %c0_i32_1 = arith.constant 0 : i32
    return %c0_i32, %c0_i32_0 : i32, i32
  }
  func.func @transform_2(%arg0: i32, %arg1: memref<2xf32, #tpu.memory_space<smem>>) -> (i32, i32) {
    %c0_i32 = arith.constant 0 : i32
    %c0_i32_0 = arith.constant 0 : i32
    %c0_i32_1 = arith.constant 0 : i32
    return %c0_i32, %c0_i32_0 : i32, i32
  }
  func.func @transform_3(%arg0: i32, %arg1: memref<2xf32, #tpu.memory_space<smem>>) -> (i32, i32) {
    %c0_i32 = arith.constant 0 : i32
    %c0_i32_0 = arith.constant 0 : i32
    %c0_i32_1 = arith.constant 0 : i32
    return %c0_i32, %c0_i32_0 : i32, i32
  }
  func.func @transform_4(%arg0: i32, %arg1: memref<2xf32, #tpu.memory_space<smem>>) -> (i32, i32, i32) {
    %c0_i32 = arith.constant 0 : i32
    %c0_i32_0 = arith.constant 0 : i32
    %c0_i32_1 = arith.constant 0 : i32
    %c0_i32_2 = arith.constant 0 : i32
    return %c0_i32, %c0_i32_0, %c0_i32_1 : i32, i32, i32
  }
  func.func @transform_5(%arg0: i32, %arg1: memref<2xf32, #tpu.memory_space<smem>>) -> (i32, i32) {
    %c0_i32 = arith.constant 0 : i32
    %c0_i32_0 = arith.constant 0 : i32
    %c0_i32_1 = arith.constant 0 : i32
    return %c0_i32, %c0_i32_0 : i32, i32
  }
  func.func @transform_6(%arg0: i32, %arg1: memref<2xf32, #tpu.memory_space<smem>>) -> (i32, i32, i32) {
    %c0_i32 = arith.constant 0 : i32
    %c0_i32_0 = arith.constant 0 : i32
    %c0_i32_1 = arith.constant 0 : i32
    %c0_i32_2 = arith.constant 0 : i32
    return %c0_i32, %c0_i32_0, %c0_i32_1 : i32, i32, i32
  }
  func.func @transform_7(%arg0: i32, %arg1: memref<2xf32, #tpu.memory_space<smem>>) -> (i32, i32) {
    %c0_i32 = arith.constant 0 : i32
    %c0_i32_0 = arith.constant 0 : i32
    %c0_i32_1 = arith.constant 0 : i32
    return %c0_i32, %c0_i32_0 : i32, i32
  }
  func.func @transform_8(%arg0: i32, %arg1: memref<2xf32, #tpu.memory_space<smem>>) -> (i32, i32, i32) {
    %c0_i32 = arith.constant 0 : i32
    %c0_i32_0 = arith.constant 0 : i32
    %c0_i32_1 = arith.constant 0 : i32
    return %arg0, %c0_i32, %c0_i32_0 : i32, i32, i32
  }
}

</mosaic_0001>

<bundles_post_ra>
// kernel: noise_predictor_forward.1
= control target key start
LH: loop header
LB: loop body
LE: loop exit
PB: predicated region body
PF: predicated region fallthrough
CT: control target
= control target key end

     0   :  { %s8151_s0 = inlined_call_operand.vmem [shape: f32[2], index: 0, kind: input, shape index: {}]   ;;  %s8152_s1 = inlined_call_operand.vmem [shape: f32[2,1,384], index: 1, kind: input, shape index: {}]   ;;  %s8153_s2 = inlined_call_operand.vmem [shape: f32[32,384], index: 2, kind: input, shape index: {}]   ;;  %s8154_s3 = inlined_call_operand.vmem [shape: f32[32,9], index: 3, kind: input, shape index: {}]   ;;  %s8155_s4 = inlined_call_operand.vmem [shape: f32[32,1], index: 4, kind: input, shape index: {}]   ;;  %s8156_s5 = inlined_call_operand.vmem [shape: f32[9,32,32], index: 5, kind: input, shape index: {}]   ;;  %s8157_s6 = inlined_call_operand.vmem [shape: f32[32,1], index: 6, kind: input, shape index: {}]   ;;  %s8158_s7 = inlined_call_operand.vmem [shape: f32[9,1,32], index: 7, kind: input, shape index: {}]   ;;  %s8159_s9 = inlined_call_operand.vmem [shape: f32[2,1,384], index: 9, kind: output, shape index: {}]   ;;  %s8160_s8 = inlined_call_operand.<no memory space> [shape: f32[1,1], index: 8, kind: input, shape index: {}]  }
   0x1   :  { %s14_s11 = sshll.u32 %s8151_s0, 4  ;;  %v18_v0 = vstv %s8160_s8  ;;  %s15_s11 = int_to_ptr.vmem [resolvable:$true] %s14_s11 }
   0x2   :  { %19 = vst [vmem:[#allocation6] sm:$0x1] %v18_v0  ;;  %s5797_s14 = scalar_lea.vmem %s15_s11, 16  ;;  %p5802_p1 = scmp.lt.s32.totalorder %s15_s11, %s15_s11 }
   0x3   :  { %p5798_p0 = scmp.ne.s32.totalorder %s15_s11, %s5797_s14  ;;  %p5803_p2 = scmp.lt.s32.totalorder %s5797_s14, %s5797_s14 }
   0x5   :  { %p5804_p3 = por %p5803_p2, %p5802_p1 }
   0x7   :  { %p5805_p4 = pnand %p5804_p3, %p5798_p0 }
   0x9   :  { %5808 = shalt.err (!%p5805_p4)  }
   0xa   :  { %s5819_s15 = smov [#allocation5]  }
   0xb   :  { %17 = dma.vmem_to_smem %s15_s11, 16, %s5819_s15, [#allocation4] }
   0xc   :  { %5813 = dma.done.wait [#allocation4], 16 }
   0xd   :  { %5814 = vsyncadd [#allocation4], 4294967280 }
   0xe   :  { %21 = sfence }
   0xf   :  { %s5888_s16 = smov 0  }
  0x10 LB: > { %s5894_s0 = sadd.s32 4294967295, %s5817_s16   ;;  %p5123_p5 = scmp.ge.s32.totalorder %s5817_s16, 1  ;;  %s5817_s16 = sphi %s5888_s16, %s27_s16  }
  0x11   : > { %p270_p6 = scmp.lt.s32.totalorder %s5817_s16, 3 }
  0x13   : > { %p271_p7 = pnand %p5123_p5, %p270_p6 }
  0x15   : > { %274 = sbr.rel (%p271_p7) target bundleno = 1494 (0x5d6), region = 52 }
  0x1a   : > { %p302_p8 = scmp.lt.s32.totalorder %s5894_s0, 1  ;;  %v8165_v1 = vmov 0.0   ;;  %v8164_v2 = vlaneseq  ;;  %v8215_v3 = vmov 0  ;;  %s5821_s21 = smov 109   ;;  %v5929_v14 = vld [vmem:[%s8154_s3] sm:$0xff]  ;;  %vm523_vm1 = vcmask 72704  }
  0x1b   : > { %315 = vst [vmem:[#allocation2 + $0x20] sm:$0xff] %v8165_v1  ;;  %311 = vst [vmem:[#allocation2] sm:$0xff] %v8165_v1  ;;  %610 = vmatprep.mubr.f32.mxu0 %v8165_v1  ;;  %s5822_s22 = smov 18   ;;  %s5823_s23 = smov 17   ;;  %5394 = vmatprep.mubr.msk.f32.mxu1 %vm523_vm1, %v5929_v14  ;;  %v723_v15 = vld [vmem:[%s8155_s4 + $0x18] sm:$0xff]  ;;  %v722_v16 = vld [vmem:[%s8155_s4 + $0x10] sm:$0xff] }
  0x1c   : > { %s5903_s8 = scalar_select %p302_p8, %s5894_s0, 1  ;;  %vm5907_vm0 = vcmp.lt.s32.totalorder %v8164_v2, 384  ;;  %v5829_v17 = vmov 0   ;;  %v720_v18 = vld [vmem:[%s8155_s4] sm:$0xff]  ;;  %v721_v19 = vld [vmem:[%s8155_s4 + $0x8] sm:$0xff]  ;;  %vm8161_vm2 = vcmask 891904  }
  0x1d   : > { %v8216_v3 = vsel %vm5907_vm0, 4294967295, %v8215_v3  ;;  %s5824_s24 = smov 19   ;;  %s5825_s25 = smov 127   ;;  %5653 = vset.pattern.permute.xlu0 %v5829_v17  ;;  %5654 = vset.pattern.permute.xlu1 %v5829_v17  ;;  %vm412_vm3 = vcmask 146432   ;;  %vm423_vm4 = vcmask 138240   ;;  %vm402_vm5 = vcmask 154624  }
  0x1e   : > { %s5625_s17 = smul.u32 3, %s5903_s8  ;;  %8217 = vst [vmem:[#allocation8_spill] sm:$0xff] %v8216_v3  ;;  %s5826_s26 = smov 1   ;;  %vm449_vm6 = vcmask 1039360   ;;  %vm434_vm7 = vcmask 7168   ;;  %vm536_vm8 = vcmask 1040384  }
  0x1f   : > { %s5827_s29 = smov 110   ;;  %s5828_s30 = smov 111   ;;  %vm8162_vm9 = vcmask 900096   ;;  %vm8163_vm10 = vcmask 908288   ;;  %v489_v47 = vld [vmem:[%s8154_s3 + $0x8] sm:$0xff]  ;;  %v490_v51 = vld [vmem:[%s8154_s3 + $0x10] sm:$0xff] }
  0x20   : > { %s305_s20 = scalar_lea.vmem %s8152_s1, %s5625_s17  ;;  %v491_v52 = vld [vmem:[%s8154_s3 + $0x18] sm:$0xff]  ;;  %v320_v53 = vand.u32 127, %v8164_v2  ;;  %s310_s13 = sld [smem:[#allocation5 + %s5894_s0]] }
  0x21   : > { %v389_v4 = vld [vmem:[%s305_s20] sm:$0x7] }
  0x22   : > { %395 = vst.msk [vmem:[#allocation2 + $0x8] ss:$8 sm:$0x7] %vm5907_vm0, %v389_v4  ;;  %v322_v54 = vadd.s32 256, %v320_v53  ;;  %v6018_v57 = vmul.u32.u64.low 3817748708, %v320_v53  ;;  %v6019_v58 = vmul.u32.u64.high 3817748708, %v320_v53, %v6018_v57 }
  0x23   : > { %v321_v61 = vadd.s32 128, %v320_v53 }
  0x24   : > { %v6015_v55 = vmul.u32.u64.low 3817748708, %v322_v54  ;;  %v6016_v56 = vmul.u32.u64.high 3817748708, %v322_v54, %v6015_v55  ;;  %v329_v60 = vshrl.u32 %v6019_v58, 4 }
  0x25   : > { %v6023_v0 = vmul.u32.u64.low 3817748708, %v321_v61  ;;  %v6024_v4 = vmul.u32.u64.high 3817748708, %v321_v61, %v6023_v0 }
  0x26   : > { %v351_v59 = vshrl.u32 %v6016_v56, 4  ;;  %v330_v63 = vmul.u32 18, %v329_v60 }
  0x28   : > { %v352_v62 = vmul.u32 18, %v351_v59 }
  0x29   : > { %v477_v5 = vld [vmem:[#allocation2 + $0x8] ss:$8 sm:$0xf] }
  0x2a   : > { %v407_v6 = vld [vmem:[#allocation2] ss:$8 sm:$0xf]  ;;  %479 = vrot.lane.b32.xlu0 %v477_v5, %s5821_s21  ;;  %v353_v5 = vsub.s32 %v322_v54, %v352_v62 }
  0x2b   : > { %409 = vrot.lane.b32.xlu1 %v407_v6, %s5822_s22  ;;  %v418_v7 = vld [vmem:[#allocation2] ss:$8 sm:$0xf]  ;;  %v331_v6 = vsub.s32 %v320_v53, %v330_v63 }
  0x2c   : > { %v397_v8 = vld [vmem:[#allocation2] ss:$8 sm:$0xf]  ;;  %vm358_vm11 = vcmp.ne.s32.totalorder %v353_v5, 0  ;;  %vm361_vm12 = vcmp.lt.s32.totalorder %v353_v5, 0 }
  0x2d   : > { %v440_v9 = vld [vmem:[#allocation2 + $0x8] ss:$8 sm:$0x7]  ;;  %vm356_vm13 = vcmp.ne.s32.totalorder %v331_v6, 0  ;;  %vm359_vm14 = vcmp.lt.s32.totalorder %v331_v6, 0  ;;  %vm364_vm15 = vmand %vm361_vm12, %vm358_vm11  ;;  %v502_v63 = vld [vmem:[%s8153_s2 + $0x20] sm:$0xff] }
  0x2e   : > { %399 = vrot.lane.b32.xlu0 %v397_v8, %s5824_s24  ;;  %442 = vst.msk [vmem:[#allocation3 + $0x4] ss:$8 sm:$0x7] %vm5907_vm0, %v440_v9  ;;  %v444_v10 = vld [vmem:[#allocation2 + $0x8] ss:$8 sm:$0xf] }
  0x2f   : > { %420 = vrot.lane.b32.xlu1 %v418_v7, %s5823_s23  ;;  %v429_v11 = vld [vmem:[#allocation2] ss:$8 sm:$0xf]  ;;  %v367_v7 = vadd.s32 18, %v353_v5  ;;  %v340_v8 = vshrl.u32 %v6024_v4, 4  ;;  %v365_v9 = vadd.s32 18, %v331_v6 }
  0x30   : > { %v466_v12 = vld [vmem:[#allocation2 + $0x8] ss:$8 sm:$0xf] }
  0x31   : > { %v455_v13 = vld [vmem:[#allocation2 + $0x8] ss:$8 sm:$0xf] }
  0x32   : > { %431 = vrot.lane.b32.xlu0 %v429_v11, %s5826_s26  ;;  %v501_v53 = vld [vmem:[%s8153_s2 + $0x18] sm:$0xff] }
  0x33   : > { %446 = vrot.lane.b32.xlu1 %v444_v10, %s5825_s25  ;;  %v370_v10 = vsel %vm364_vm15, %v367_v7, %v353_v5  ;;  %v506_v7 = vld [vmem:[%s8153_s2 + $0x40] sm:$0xff] }
  0x34   : > { %vm376_vm11 = vcmp.ge.s32.totalorder %v370_v10, 1  ;;  %vm382_vm15 = vcmp.le.s32.totalorder %v370_v10, 16 }
  0x36   : > { %457 = vrot.lane.b32.xlu0 %v455_v13, %s5828_s30  ;;  %v6033_v13 = vstv %s310_s13 }
  0x37   : > { %468 = vrot.lane.b32.xlu1 %v466_v12, %s5827_s29  ;;  %v498_v12 = vld [vmem:[%s8153_s2] sm:$0xff]  ;;  %v514_v56 = vmul.f32 %v6033_v13, %v501_v53  ;;  %v515_v5 = vmul.f32 %v6033_v13, %v502_v63  ;;  %v519_v10 = vmul.f32 %v6033_v13, %v506_v7 }
  0x3a   : > { %741 = vperm.xlu0 %5653, %v723_v15  }
  0x3b   : > { %736 = vperm.xlu1 %5654, %v722_v16   ;;  %v503_v16 = vld [vmem:[%s8153_s2 + $0x28] sm:$0xff] }
  0x3e   : > { %726 = vperm.xlu0 %5653, %v720_v18   ;;  %v511_v18 = vmul.f32 %v6033_v13, %v498_v12 }
  0x3f   : > { %731 = vperm.xlu1 %5654, %v721_v19   ;;  %v516_v19 = vmul.f32 %v6033_v13, %v503_v16 }
  0x42   : > { %5661 = vrot.lane.b32.xlu0 %v8165_v1, %s5822_s22 }
  0x43   : > { %5656 = vrot.lane.b32.xlu1 %v8165_v1, %s5822_s22 }
  0x46   : > { %5666 = vrot.lane.b32.xlu0 %v8165_v1, %s5824_s24 }
  0x47   : > { %5691 = vrot.lane.b32.xlu1 %v8165_v1, %s5826_s26 }
  0x4a   : > { %5671 = vrot.lane.b32.xlu0 %v8165_v1, %s5823_s23 }
  0x4e   : > { %5676 = vrot.lane.b32.xlu0 %v8165_v1, %s5824_s24 }
  0x52   : > { %5681 = vrot.lane.b32.xlu0 %v8165_v1, %s5823_s23 }
  0x56   : > { %5686 = vrot.lane.b32.xlu0 %v8165_v1, %s5826_s26 }
  0x5a   : > { %5696 = vrot.lane.b32.xlu0 %v8165_v1, %s5825_s25 }
  0x9c   : > { %v480_v20 = vpop.permute.xlu0 %479 }
  0x9d   : > { %v410_v21 = vpop.permute.xlu1 %409  ;;  %v481_v22 = vrot.slane %v480_v20, 1 }
  0x9e   : > { %v411_v23 = vrot.slane %v410_v21, 1 }
  0x9f   : > { %v483_v24 = vsel %vm8161_vm2, %v480_v20, %v481_v22 }
  0xa0   : > { %v413_v25 = vsel %vm412_vm3, %v410_v21, %v411_v23  ;;  %486 = vst.msk [vmem:[#allocation3 + $0x18] ss:$8 sm:$0x7] %vm5907_vm0, %v483_v24  ;;  %v400_v27 = vpop.permute.xlu0 %399  ;;  %v499_v24 = vld [vmem:[%s8153_s2 + $0x8] sm:$0xff] }
  0xa1   : > { %416 = vst.msk [vmem:[#allocation3 + $0x1] ss:$8 sm:$0x7] %vm5907_vm0, %v413_v25  ;;  %v421_v26 = vpop.permute.xlu1 %420  ;;  %v401_v29 = vrot.slane %v400_v27, 1 }
  0xa2   : > { %v422_v28 = vrot.slane %v421_v26, 1 }
  0xa3   : > { %v403_v31 = vsel %vm402_vm5, %v400_v27, %v401_v29 }
  0xa4   : > { %v424_v30 = vsel %vm423_vm4, %v421_v26, %v422_v28  ;;  %405 = vst.msk [vmem:[#allocation3] ss:$8 sm:$0x7] %vm5907_vm0, %v403_v31  ;;  %v432_v33 = vpop.permute.xlu0 %431  ;;  %v512_v31 = vmul.f32 %v6033_v13, %v499_v24 }
  0xa5   : > { %427 = vst.msk [vmem:[#allocation3 + $0x2] ss:$8 sm:$0x7] %vm5907_vm0, %v424_v30  ;;  %v447_v32 = vpop.permute.xlu1 %446  ;;  %v433_v35 = vrot.slane %v432_v33, 1 }
  0xa6   : > { %v448_v34 = vrot.slane %v447_v32, 1 }
  0xa7   : > { %v435_v37 = vsel %vm434_vm7, %v432_v33, %v433_v35  ;;  %v496_v38 = vld [vmem:[#allocation3 + $0x20] sm:$0x1]  ;;  %v497_v39 = vld [vmem:[#allocation3 + $0x28] sm:$0x1]  ;;  %v495_v40 = vld [vmem:[#allocation3 + $0x18] sm:$0x1] }
  0xa8   : > { %v450_v36 = vsel %vm449_vm6, %v447_v32, %v448_v34  ;;  %438 = vst.msk [vmem:[#allocation3 + $0x3] ss:$8 sm:$0x7] %vm5907_vm0, %v435_v37  ;;  %5124 = vmatprep.subr.msk.mxu0 %vm536_vm8, %v496_v38  ;;  %5390 = vmatprep.subr.msk.mxu1 %vm536_vm8, %v497_v39  ;;  %v458_v42 = vpop.permute.xlu0 %457  ;;  %v500_v32 = vld [vmem:[%s8153_s2 + $0x10] sm:$0xff] }
  0xa9   : > { %453 = vst.msk [vmem:[#allocation3 + $0x5] ss:$8 sm:$0x7] %vm5907_vm0, %v450_v36  ;;  %v469_v41 = vpop.permute.xlu1 %468  ;;  %v459_v44 = vrot.slane %v458_v42, 1  ;;  %5125 = vmatpush1.msk.msra.mxu0 %vm536_vm8, %v495_v40  ;;  %5391 = vmatpush3.msk.msra.mxu1 %vm536_vm8, %v497_v39  ;;  %vm373_vm8 = vcmp.lt.s32.totalorder %v322_v54, 288  ;;  %v513_v38 = vmul.f32 %v6033_v13, %v500_v32  ;;  %v507_v32 = vld [vmem:[%s8153_s2 + $0x48] sm:$0xff] }
  0xaa   : > { %v470_v43 = vrot.slane %v469_v41, 1 }
  0xab   : > { %v461_v46 = vsel %vm8163_vm10, %v458_v42, %v459_v44 }
  0xac   : > { %v472_v45 = vsel %vm8162_vm9, %v469_v41, %v470_v43  ;;  %464 = vst.msk [vmem:[#allocation3 + $0x6] ss:$8 sm:$0x7] %vm5907_vm0, %v461_v46 }
  0xad   : > { %475 = vst.msk [vmem:[#allocation3 + $0x7] ss:$8 sm:$0x7] %vm5907_vm0, %v472_v45 }
  0xb4   : > { %v493_v48 = vld [vmem:[#allocation3 + $0x8] sm:$0xff]  ;;  %v494_v49 = vld [vmem:[#allocation3 + $0x10] sm:$0xff]  ;;  %v492_v50 = vld [vmem:[#allocation3] sm:$0xff] }
  0xb5   : > { %576 = vmatprep.subr.mxu0 %v493_v48  ;;  %5392 = vmatprep.subr.mxu1 %v494_v49  ;;  %v6038_v17 = vpop.permute.xlu0 %741 }
  0xb6   : > { %577 = vmatpush1.msra.mxu0 %v492_v50  ;;  %5393 = vmatpush3.msra.mxu1 %v494_v49  ;;  %v6028_v11 = vpop.permute.xlu1 %736  ;;  %v509_v49 = vld [vmem:[%s8153_s2 + $0x58] sm:$0xff] }
  0xb7   : > { %5126 = vmatmul.mubr.msk.f32.vlgmr.msra.gmra.mxu0 %vm523_vm1, %v5929_v14  ;;  %5395 = vmatmul.mubr.msk.f32.vlgmr.msra.gmra.mxu1 %vm523_vm1, %v489_v47  ;;  %v341_v14 = vmul.u32 18, %v340_v8 }
  0xb8   : > { %616 = vmatprep.mubr.f32.mxu0 %v8165_v1  ;;  %5397 = vmatprep.mubr.msk.f32.mxu1 %vm523_vm1, %v490_v51 }
  0xb9   : > { %v342_v20 = vsub.s32 %v321_v61, %v341_v14  ;;  %v727_v27 = vpop.permute.xlu0 %726 }
  0xba   : > { %v6042_v21 = vpop.permute.xlu1 %731 }
  0xbb   : > { %5127 = vmatmul.mubr.msk.f32.gmra.mxu0 %vm523_vm1, %v489_v47  ;;  %5398 = vmatmul.mubr.msk.f32.gmra.mxu1 %vm523_vm1, %v491_v52  ;;  %vm357_vm9 = vcmp.ne.s32.totalorder %v342_v20, 0  ;;  %vm360_vm10 = vcmp.lt.s32.totalorder %v342_v20, 0  ;;  %v366_v30 = vadd.s32 18, %v342_v20 }
  0xbc   : > { %622 = vmatprep.mubr.f32.mxu0 %v8165_v1  ;;  %966 = vmatprep.mubr.f32.mxu1 %v8165_v1 }
  0xbf   : > { %5128 = vmatmul.mubr.msk.f32.gmra.mxu0 %vm523_vm1, %v490_v51 }
  0xc0   : > { %628 = vmatprep.mubr.f32.mxu0 %v8165_v1 }
  0xc3   : > { %5129 = vmatmul.mubr.msk.f32.gmra.mxu0 %vm523_vm1, %v491_v52  ;;  %vm362_vm1 = vmand %vm359_vm14, %vm356_vm13  ;;  %v522_v52 = vmul.f32 %v6033_v13, %v509_v49 }
  0xc4   : > { %v368_v15 = vsel %vm362_vm1, %v365_v9, %v331_v6  ;;  %vm379_vm14 = vmand %vm373_vm8, %vm376_vm11  ;;  %vm889_vm11 = vcmask 261120  }
  0xc5   : > { %vm374_vm12 = vcmp.ge.s32.totalorder %v368_v15, 1  ;;  %vm380_vm13 = vcmp.le.s32.totalorder %v368_v15, 16  ;;  %vm385_vm2 = vmand %vm379_vm14, %vm382_vm15 }
  0xc6   : > { %vm383_vm1 = vmand %vm374_vm12, %vm380_vm13  ;;  %v6056_v34 = vsel %vm385_vm2, 1.0, %v8165_v1  ;;  %vm8248_vm12 = vcmask 908288  }
  0xc7   : > { %v6053_v33 = vsel %vm383_vm1, 1.0, %v8165_v1  ;;  %8219 = vst [vmem:[#allocation10_spill] sm:$0xff] %v6056_v34  ;;  %vm363_vm8 = vmand %vm360_vm10, %vm357_vm9 }
  0xc8   : > { %8218 = vst [vmem:[#allocation9_spill] sm:$0xff] %v6053_v33  ;;  %v369_v41 = vsel %vm363_vm8, %v366_v30, %v342_v20  ;;  %vm8249_vm13 = vmmov %vm8248_vm12 }
  0xc9   : > { %vm375_vm2 = vcmp.ge.s32.totalorder %v369_v41, 1  ;;  %vm381_vm9 = vcmp.le.s32.totalorder %v369_v41, 16  ;;  %v508_v41 = vld [vmem:[%s8153_s2 + $0x50] sm:$0xff]  ;;  %vm8250_vm14 = vmmov %vm8248_vm12 }
  0xca   : > { %vm384_vm10 = vmand %vm375_vm2, %vm381_vm9 }
  0xcb   : > { %v6074_v48 = vsel %vm384_vm10, 1.0, %v8165_v1  ;;  %vm8252_vm15 = vmmov %vm8248_vm12 }
  0xcc   : > { %8222 = vst [vmem:[#allocation13_spill] sm:$0xff] %v6074_v48  ;;  %vm8253_vm1 = vmmov %vm8248_vm12 }
  0xcd   : > { %vm8255_vm8 = vmmov %vm8253_vm1 }
  0xce   : > { %vm8256_vm2 = vmmov %vm8253_vm1 }
  0xcf   : > { %vm8257_vm9 = vmmov %vm8253_vm1 }
  0xd0   : > { %vm8258_vm10 = vmmov %vm8253_vm1 }
 0x177   : > { %v612_v22 = vpop.f32.mrf.mxu0  ;;  %v5396_v23 = vpop.f32.mrf.mxu1 }
 0x178   : > { %v613_v25 = vadd.f32 %v612_v22, %v511_v18  ;;  %v707_v26 = vadd.f32 %v5396_v23, %v516_v19 }
 0x179   : > { %v614_v35 = vpop.f32.mrf.mxu0  ;;  %v701_v43 = vpop.f32.mrf.mxu1 }
 0x17a   : > { %v744_v28 = vadd.f32 %v727_v27, %v613_v25  ;;  %v749_v29 = vadd.f32 %v6042_v21, %v707_v26  ;;  %v615_v42 = vadd.f32 %v614_v35, %v512_v31  ;;  %v702_v45 = vadd.f32 %v701_v43, %v513_v38  ;;  %v505_v26 = vld [vmem:[%s8153_s2 + $0x38] sm:$0xff] }
 0x17b   : > { %v5399_v54 = vpop.f32.mrf.mxu1  ;;  %v618_v58 = vpop.f32.mrf.mxu0 }
 0x17c   : > { %v756_v36 = vmax.f32 %v744_v28, 0.0  ;;  %v761_v37 = vmax.f32 %v749_v29, 0.0  ;;  %v745_v44 = vadd.f32 %v727_v27, %v615_v42  ;;  %v746_v47 = vadd.f32 %v727_v27, %v702_v45 }
 0x17d   : > { %v717_v57 = vadd.f32 %v5399_v54, %v522_v52  ;;  %v619_v59 = vadd.f32 %v618_v58, %v514_v56  ;;  %v620_v6 = vpop.f32.mrf.mxu0  ;;  %v711_v12 = vpop.f32.mrf.mxu1  ;;  %v518_v28 = vmul.f32 %v6033_v13, %v505_v26 }
 0x17e   : > { %v6060_v39 = vmul.f32 %v756_v36, %v6053_v33  ;;  %v6063_v40 = vmul.f32 %v761_v37, %v6056_v34  ;;  %v757_v46 = vmax.f32 %v745_v44, 0.0  ;;  %v758_v51 = vmax.f32 %v746_v47, 0.0 }
 0x17f   : > { %v755_v60 = vadd.f32 %v6038_v17, %v717_v57  ;;  %v747_v61 = vadd.f32 %v6042_v21, %v619_v59  ;;  %v621_v9 = vadd.f32 %v620_v6, %v515_v5  ;;  %v712_v15 = vadd.f32 %v711_v12, %v519_v10  ;;  %v624_v24 = vpop.f32.mrf.mxu0  ;;  %v6251_v59 = vld [vmem:[%s8156_s5 + $0x20] sm:$0xff] }
 0x180   : > { %8220 = vst [vmem:[#allocation11_spill] sm:$0xff] %v6060_v39  ;;  %8221 = vst [vmem:[#allocation12_spill] sm:$0xff] %v6063_v40  ;;  %1090 = vrot.lane.b32.xlu0 %v6063_v40, %s5824_s24  ;;  %835 = vrot.lane.b32.xlu1 %v6060_v39, %s5822_s22  ;;  %v6084_v50 = vmul.f32 %v757_v46, %v6074_v48  ;;  %v6095_v55 = vmul.f32 %v758_v51, %v6056_v34 }
 0x181   : > { %v767_v62 = vmax.f32 %v755_v60, 0.0  ;;  %v759_v0 = vmax.f32 %v747_v61, 0.0  ;;  %v748_v14 = vadd.f32 %v6042_v21, %v621_v9  ;;  %v752_v18 = vadd.f32 %v6028_v11, %v712_v15  ;;  %v504_v21 = vld [vmem:[%s8153_s2 + $0x30] sm:$0xff]  ;;  %v626_v29 = vpop.f32.mrf.mxu0  ;;  %5408 = vmatprep.mubr.msk.f32.mxu0 %vm889_vm11, %v6251_v59  ;;  %v6259_v60 = vpop.permute.xlu1 %5656 }
 0x182   : > { %8223 = vst [vmem:[#allocation14_spill] sm:$0xff] %v6084_v50  ;;  %v517_v23 = vmul.f32 %v6033_v13, %v504_v21  ;;  %v627_v31 = vadd.f32 %v626_v29, %v518_v28  ;;  %v520_v37 = vmul.f32 %v6033_v13, %v507_v32  ;;  %v521_v44 = vmul.f32 %v6033_v13, %v508_v41  ;;  %v6207_v13 = vpop.permute.xlu0 %5661 }
 0x183   : > { %v6116_v4 = vmul.f32 %v767_v62, %v6056_v34  ;;  %v6127_v8 = vmul.f32 %v759_v0, %v6053_v33  ;;  %v760_v16 = vmax.f32 %v748_v14, 0.0  ;;  %v764_v20 = vmax.f32 %v752_v18, 0.0  ;;  %v630_v38 = vpop.f32.mrf.mxu0 }
 0x184   : > { %1596 = vrot.lane.b32.xlu0 %v6063_v40, %s5826_s26  ;;  %847 = vrot.lane.b32.xlu1 %v6063_v40, %s5822_s22  ;;  %v625_v25 = vadd.f32 %v624_v24, %v517_v23  ;;  %v751_v36 = vadd.f32 %v6028_v11, %v627_v31  ;;  %v631_v43 = vadd.f32 %v630_v38, %v520_v37 }
 0x185   : > { %v6145_v19 = vmul.f32 %v760_v16, %v6074_v48  ;;  %v6155_v22 = vmul.f32 %v764_v20, %v6056_v34  ;;  %v632_v45 = vpop.f32.mrf.mxu0  ;;  %v6271_v62 = vpop.permute.xlu1 %5691 }
 0x186   : > { %v750_v27 = vadd.f32 %v6028_v11, %v625_v25  ;;  %v763_v42 = vmax.f32 %v751_v36, 0.0  ;;  %v753_v46 = vadd.f32 %v6038_v17, %v631_v43  ;;  %v633_v47 = vadd.f32 %v632_v45, %v521_v44  ;;  %v6217_v54 = vpop.permute.xlu0 %5666 }
 0x187   : > { %8224 = vst [vmem:[#allocation15_spill] sm:$0xff] %v6145_v19  ;;  %8225 = vst [vmem:[#allocation16_spill] sm:$0xff] %v6155_v22 }
 0x188   : > { %1584 = vrot.lane.b32.xlu0 %v6060_v39, %s5826_s26  ;;  %1078 = vrot.lane.b32.xlu1 %v6060_v39, %s5824_s24  ;;  %v762_v30 = vmax.f32 %v750_v27, 0.0  ;;  %v6200_v11 = vmul.f32 %v763_v42, %v6074_v48  ;;  %v765_v49 = vmax.f32 %v753_v46, 0.0  ;;  %v754_v51 = vadd.f32 %v6038_v17, %v633_v47 }
 0x18a   : > { %v6183_v35 = vmul.f32 %v762_v30, %v6053_v33  ;;  %8227 = vst [vmem:[#allocation18_spill] sm:$0xff] %v6200_v11  ;;  %v6215_v52 = vmul.f32 %v765_v49, %v6053_v33  ;;  %v766_v53 = vmax.f32 %v754_v51, 0.0  ;;  %v6230_v56 = vpop.permute.xlu0 %5671 }
 0x18c   : > { %837 = vrot.lane.b32.xlu0 %v6084_v50, %s5822_s22  ;;  %1325 = vrot.lane.b32.xlu1 %v6060_v39, %s5823_s23  ;;  %8226 = vst [vmem:[#allocation17_spill] sm:$0xff] %v6183_v35  ;;  %8228 = vst [vmem:[#allocation19_spill] sm:$0xff] %v6215_v52  ;;  %v6224_v17 = vmul.f32 %v766_v53, %v6074_v48  ;;  %v8232_v48 = vmov 0.0  }
 0x18e   : > { %v6236_v57 = vpop.permute.xlu0 %5676 }
 0x190   : > { %839 = vrot.lane.b32.xlu0 %v6095_v55, %s5822_s22  ;;  %1337 = vrot.lane.b32.xlu1 %v6063_v40, %s5823_s23 }
 0x192   : > { %v6246_v58 = vpop.permute.xlu0 %5681 }
 0x194   : > { %1082 = vrot.lane.b32.xlu0 %v6095_v55, %s5824_s24  ;;  %1080 = vrot.lane.b32.xlu1 %v6084_v50, %s5824_s24 }
 0x196   : > { %v6261_v61 = vpop.permute.xlu0 %5686 }
 0x198   : > { %1327 = vrot.lane.b32.xlu0 %v6084_v50, %s5823_s23  ;;  %1586 = vrot.lane.b32.xlu1 %v6084_v50, %s5826_s26 }
 0x19a   : > { %v6273_v63 = vpop.permute.xlu0 %5696 }
 0x19b   : > { %8229 = vst [vmem:[#allocation20_spill] sm:$0xff] %v6273_v63 }
 0x19c   : > { %1329 = vrot.lane.b32.xlu0 %v6095_v55, %s5823_s23  ;;  %863 = vrot.lane.b32.xlu1 %v6116_v4, %s5822_s22 }
 0x1a0   : > { %1588 = vrot.lane.b32.xlu0 %v6095_v55, %s5826_s26  ;;  %1086 = vrot.lane.b32.xlu1 %v6127_v8, %s5824_s24 }
 0x1a4   : > { %843 = vrot.lane.b32.xlu0 %v6127_v8, %s5822_s22  ;;  %1353 = vrot.lane.b32.xlu1 %v6116_v4, %s5823_s23 }
 0x1a8   : > { %1106 = vrot.lane.b32.xlu0 %v6116_v4, %s5824_s24  ;;  %2104 = vrot.lane.b32.xlu1 %v6116_v4, %s5825_s25 }
 0x1ac   : > { %1333 = vrot.lane.b32.xlu0 %v6127_v8, %s5823_s23  ;;  %845 = vrot.lane.b32.xlu1 %v6145_v19, %s5822_s22 }
 0x1b0   : > { %1612 = vrot.lane.b32.xlu0 %v6116_v4, %s5826_s26  ;;  %1098 = vrot.lane.b32.xlu1 %v6155_v22, %s5824_s24 }
 0x1b4   : > { %1592 = vrot.lane.b32.xlu0 %v6127_v8, %s5826_s26  ;;  %1088 = vrot.lane.b32.xlu1 %v6145_v19, %s5824_s24 }
 0x1b8   : > { %855 = vrot.lane.b32.xlu0 %v6155_v22, %s5822_s22  ;;  %1335 = vrot.lane.b32.xlu1 %v6145_v19, %s5823_s23 }
 0x1bc   : > { %1345 = vrot.lane.b32.xlu0 %v6155_v22, %s5823_s23  ;;  %1604 = vrot.lane.b32.xlu1 %v6155_v22, %s5826_s26 }
 0x1c0   : > { %851 = vrot.lane.b32.xlu0 %v6183_v35, %s5822_s22  ;;  %1594 = vrot.lane.b32.xlu1 %v6145_v19, %s5826_s26 }
 0x1c4   : > { %1341 = vrot.lane.b32.xlu0 %v6183_v35, %s5823_s23  ;;  %2096 = vrot.lane.b32.xlu1 %v6155_v22, %s5825_s25 }
 0x1c8   : > { %1096 = vrot.lane.b32.xlu0 %v6200_v11, %s5824_s24  ;;  %1094 = vrot.lane.b32.xlu1 %v6183_v35, %s5824_s24 }
 0x1cc   : > { %1602 = vrot.lane.b32.xlu0 %v6200_v11, %s5826_s26  ;;  %1600 = vrot.lane.b32.xlu1 %v6183_v35, %s5826_s26 }
 0x1d0   : > { %1349 = vrot.lane.b32.xlu0 %v6215_v52, %s5823_s23  ;;  %853 = vrot.lane.b32.xlu1 %v6200_v11, %s5822_s22 }
 0x1d4   : > { %861 = vrot.lane.b32.xlu0 %v6224_v17, %s5822_s22  ;;  %1343 = vrot.lane.b32.xlu1 %v6200_v11, %s5823_s23 }
 0x1d8   : > { %2088 = vrot.lane.b32.xlu0 %v6063_v40, %s5825_s25  ;;  %859 = vrot.lane.b32.xlu1 %v6215_v52, %s5822_s22 }
 0x1dc   : > { %2080 = vrot.lane.b32.xlu0 %v6095_v55, %s5825_s25  ;;  %1102 = vrot.lane.b32.xlu1 %v6215_v52, %s5824_s24 }
 0x1e0   : > { %2100 = vrot.lane.b32.xlu0 %v6215_v52, %s5825_s25  ;;  %1608 = vrot.lane.b32.xlu1 %v6215_v52, %s5826_s26 }
 0x1e4   : > { %2092 = vrot.lane.b32.xlu0 %v6183_v35, %s5825_s25  ;;  %5701 = vrot.lane.b32.xlu1 %v8165_v1, %s5825_s25 }
 0x1e8   : > { %2086 = vrot.lane.b32.xlu0 %v6145_v19, %s5825_s25  ;;  %2094 = vrot.lane.b32.xlu1 %v6200_v11, %s5825_s25 }
 0x1ec   : > { %2355 = vrot.lane.b32.xlu0 %v6155_v22, %s5828_s30  ;;  %2363 = vrot.lane.b32.xlu1 %v6116_v4, %s5828_s30 }
 0x1f0   : > { %2351 = vrot.lane.b32.xlu0 %v6183_v35, %s5828_s30  ;;  %2359 = vrot.lane.b32.xlu1 %v6215_v52, %s5828_s30 }
 0x1f2   : > { %v6279_v0 = vpop.permute.xlu1 %835  ;;  %v6281_v5 = vpop.permute.xlu0 %1090 }
 0x1f4   : > { %2345 = vrot.lane.b32.xlu0 %v6145_v19, %s5828_s30  ;;  %2353 = vrot.lane.b32.xlu1 %v6200_v11, %s5828_s30 }
 0x1f6   : > { %v6287_v6 = vpop.permute.xlu1 %847  ;;  %v6289_v7 = vpop.permute.xlu0 %1596 }
 0x1f8   : > { %2076 = vrot.lane.b32.xlu0 %v6060_v39, %s5825_s25  ;;  %1104 = vrot.lane.b32.xlu1 %v6224_v17, %s5824_s24 }
 0x1fa   : > { %v6295_v9 = vpop.permute.xlu1 %1078  ;;  %v6297_v10 = vpop.permute.xlu0 %1584 }
 0x1fc   : > { %2337 = vrot.lane.b32.xlu0 %v6084_v50, %s5828_s30  ;;  %2084 = vrot.lane.b32.xlu1 %v6127_v8, %s5825_s25 }
 0x1fe   : > { %v6303_v12 = vpop.permute.xlu1 %1325  ;;  %v6305_v14 = vpop.permute.xlu0 %837 }
 0x200   : > { %2335 = vrot.lane.b32.xlu0 %v6060_v39, %s5828_s30  ;;  %1351 = vrot.lane.b32.xlu1 %v6224_v17, %s5823_s23 }
 0x202   : > { %v6311_v15 = vpop.permute.xlu1 %1337  ;;  %v6313_v16 = vpop.permute.xlu0 %839 }
 0x204   : > { %2622 = vrot.lane.b32.xlu0 %v6116_v4, %s5827_s29  ;;  %2078 = vrot.lane.b32.xlu1 %v6084_v50, %s5825_s25 }
 0x206   : > { %v6319_v18 = vpop.permute.xlu1 %1080  ;;  %v6321_v20 = vpop.permute.xlu0 %1082 }
 0x208   : > { %5716 = vrot.lane.b32.xlu0 %v8165_v1, %s5828_s30  ;;  %2347 = vrot.lane.b32.xlu1 %v6063_v40, %s5828_s30 }
 0x20a   : > { %v6327_v21 = vpop.permute.xlu1 %1586  ;;  %v6329_v23 = vpop.permute.xlu0 %1327 }
 0x20c   : > { %2606 = vrot.lane.b32.xlu0 %v6063_v40, %s5827_s29  ;;  %2343 = vrot.lane.b32.xlu1 %v6127_v8, %s5828_s30 }
 0x20e   : > { %v864_v24 = vpop.permute.xlu1 %863  ;;  %v6335_v25 = vpop.permute.xlu0 %1329 }
 0x210   : > { %2598 = vrot.lane.b32.xlu0 %v6095_v55, %s5827_s29  ;;  %1610 = vrot.lane.b32.xlu1 %v6224_v17, %s5826_s26 }
 0x212   : > { %v6341_v26 = vpop.permute.xlu1 %1086  ;;  %v6343_v27 = vpop.permute.xlu0 %1588 }
 0x214   : > { %2618 = vrot.lane.b32.xlu0 %v6215_v52, %s5827_s29  ;;  %2339 = vrot.lane.b32.xlu1 %v6095_v55, %s5828_s30 }
 0x216   : > { %v6349_v28 = vpop.permute.xlu1 %1353  ;;  %v6351_v29 = vpop.permute.xlu0 %843 }
 0x218   : > { %2610 = vrot.lane.b32.xlu0 %v6183_v35, %s5827_s29  ;;  %5706 = vrot.lane.b32.xlu1 %v8165_v1, %s5828_s30 }
 0x21a   : > { %v6357_v30 = vpop.permute.xlu1 %2104  ;;  %v6359_v31 = vpop.permute.xlu0 %1106 }
 0x21b   : > { %8230 = vst [vmem:[#allocation21_spill] sm:$0xff] %v6357_v30  ;;  %v3109_v30 = vld [vmem:[%s8157_s6 + $0x10] sm:$0xff] }
 0x21c   : > { %2361 = vrot.lane.b32.xlu0 %v6224_v17, %s5828_s30  ;;  %5711 = vrot.lane.b32.xlu1 %v8165_v1, %s5827_s29 }
 0x21e   : > { %v6365_v32 = vpop.permute.xlu1 %845  ;;  %v6367_v36 = vpop.permute.xlu0 %1333 }
 0x220   : > { %2604 = vrot.lane.b32.xlu0 %v6145_v19, %s5827_s29  ;;  %2614 = vrot.lane.b32.xlu1 %v6155_v22, %s5827_s29 }
 0x222   : > { %v6373_v37 = vpop.permute.xlu1 %1098  ;;  %v6375_v38 = vpop.permute.xlu0 %1612 }
 0x224   : > { %2873 = vrot.lane.b32.xlu0 %v6155_v22, %s5821_s21  ;;  %5721 = vrot.lane.b32.xlu1 %v8165_v1, %s5827_s29 }
 0x226   : > { %v6381_v41 = vpop.permute.xlu1 %1088  ;;  %v6383_v42 = vpop.permute.xlu0 %1592 }
 0x228   : > { %2612 = vrot.lane.b32.xlu1 %v6200_v11, %s5827_s29  ;;  %2869 = vrot.lane.b32.xlu0 %v6183_v35, %s5821_s21 }
 0x22a   : > { %v6389_v43 = vpop.permute.xlu1 %1335  ;;  %v856_v44 = vpop.permute.xlu0 %855 }
 0x22c   : > { %2881 = vrot.lane.b32.xlu1 %v6116_v4, %s5821_s21  ;;  %2863 = vrot.lane.b32.xlu0 %v6145_v19, %s5821_s21  ;;  %v5658_v19 = vunpack.i.l.bf16 %v6259_v60 }
 0x22e   : > { %v6395_v45 = vpop.permute.xlu1 %1604  ;;  %v6397_v46 = vpop.permute.xlu0 %1345 }
 0x230   : > { %2102 = vrot.lane.b32.xlu1 %v6224_v17, %s5825_s25  ;;  %2594 = vrot.lane.b32.xlu0 %v6060_v39, %s5827_s29 }
 0x232   : > { %v6403_v47 = vpop.permute.xlu1 %1594  ;;  %v852_v49 = vpop.permute.xlu0 %851 }
 0x234   : > { %2877 = vrot.lane.b32.xlu1 %v6215_v52, %s5821_s21  ;;  %2879 = vrot.lane.b32.xlu0 %v6224_v17, %s5821_s21 }
 0x236   : > { %v6409_v51 = vpop.permute.xlu1 %2096  ;;  %v6411_v53 = vpop.permute.xlu0 %1341 }
 0x237   : > { %8231 = vst [vmem:[#allocation22_spill] sm:$0xff] %v6409_v51 }
 0x238   : > { %2871 = vrot.lane.b32.xlu1 %v6200_v11, %s5821_s21  ;;  %2855 = vrot.lane.b32.xlu0 %v6084_v50, %s5821_s21  ;;  %v3107_v11 = vld [vmem:[%s8157_s6] sm:$0xff] }
 0x23a   : > { %v6417_v2 = vpop.permute.xlu1 %1094  ;;  %v6419_v1 = vpop.permute.xlu0 %1096 }
 0x23c   : > { %2602 = vrot.lane.b32.xlu1 %v6127_v8, %s5827_s29  ;;  %2853 = vrot.lane.b32.xlu0 %v6060_v39, %s5821_s21 }
 0x23e   : > { %v6425_v3 = vpop.permute.xlu1 %1600  ;;  %v6427_v34 = vpop.permute.xlu0 %1602 }
 0x240   : > { %2596 = vrot.lane.b32.xlu1 %v6084_v50, %s5827_s29  ;;  %2875 = vrot.lane.b32.xlu0 %v8232_v48, %s5821_s21 }
 0x242   : > { %v854_v33 = vpop.permute.xlu1 %853  ;;  %v6433_v51 = vpop.permute.xlu0 %1349 }
 0x243   : > { %v873_v35 = vsel %vm412_vm3, %v854_v33, %v856_v44 }
 0x244   : > { %2865 = vrot.lane.b32.xlu1 %v6063_v40, %s5821_s21  ;;  %2859 = vrot.lane.b32.xlu0 %v8232_v48, %s5821_s21 }
 0x246   : > { %v6442_v39 = vpop.permute.xlu1 %1343  ;;  %v862_v63 = vpop.permute.xlu0 %861 }
 0x247   : > { %v876_v50 = vsel %vm412_vm3, %v862_v63, %v864_v24 }
 0x248   : > { %2620 = vrot.lane.b32.xlu1 %v6224_v17, %s5827_s29  ;;  %3123 = vperm.xlu0 %5653, %v3109_v30   ;;  %v870_v30 = vsel %vm412_vm3, %v6365_v32, %v6287_v6 }
 0x249   : > { %5400 = vmatprep.subr.mxu0 %v876_v50 }
 0x24a   : > { %5401 = vmatpush3.msra.mxu0 %v876_v50  ;;  %v860_v40 = vpop.permute.xlu1 %859  ;;  %v6449_v22 = vpop.permute.xlu0 %2088  ;;  %v5659_v50 = vunpack.i.h.bf16 %v6259_v60 }
 0x24b   : > { %8233 = vst [vmem:[#allocation23_spill] sm:$0xff] %v6449_v22  ;;  %5402 = vmatprep.subr.mxu0 %v873_v35  ;;  %v875_v24 = vsel %vm412_vm3, %v860_v40, %v862_v63  ;;  %v874_v52 = vsel %vm412_vm3, %v5658_v19, %v860_v40  ;;  %v872_v63 = vsel %vm412_vm3, %v852_v49, %v854_v33 }
 0x24c   : > { %5403 = vmatpush3.msra.mxu0 %v873_v35  ;;  %2861 = vrot.lane.b32.xlu1 %v6127_v8, %s5821_s21  ;;  %v867_v40 = vsel %vm412_vm3, %v6305_v14, %v6313_v16  ;;  %v871_v19 = vsel %vm412_vm3, %v5659_v50, %v852_v49  ;;  %v5664_v35 = vunpack.i.h.bf16 %v6207_v13  ;;  %v869_v33 = vsel %vm412_vm3, %v6351_v29, %v6365_v32  ;;  %v5137_v16 = vld [vmem:[%s8156_s5 + $0x30] sm:$0xff] }
 0x24d   : > { %3113 = vperm.xlu0 %5653, %v3107_v11   ;;  %926 = vmatprep.subr.mxu1 %v875_v24  ;;  %v5663_v11 = vunpack.i.l.bf16 %v6207_v13  ;;  %v866_v32 = vsel %vm412_vm3, %v6279_v0, %v6305_v14 }
 0x24e   : > { %5404 = vmatprep.subr.mxu0 %v870_v30  ;;  %927 = vmatpush1.msra.mxu1 %v874_v52  ;;  %v6462_v44 = vpop.permute.xlu1 %1102  ;;  %v6465_v22 = vpop.permute.xlu0 %2080  ;;  %v5136_v52 = vld [vmem:[%s8156_s5 + $0x28] sm:$0xff]  ;;  %v865_v49 = vsel %vm412_vm3, %v5664_v35, %v6279_v0 }
 0x24f   : > { %5405 = vmatpush3.msra.mxu0 %v870_v30  ;;  %928 = vmatprep.subr.mxu1 %v872_v63  ;;  %v868_v60 = vsel %vm412_vm3, %v5663_v11, %v6351_v29  ;;  %v5138_v29 = vld [vmem:[%s8156_s5 + $0x38] sm:$0xff] }
 0x250   : > { %5406 = vmatprep.subr.mxu0 %v867_v40  ;;  %929 = vmatpush1.msra.mxu1 %v871_v19  ;;  %v3110_v30 = vld [vmem:[%s8157_s6 + $0x18] sm:$0xff]  ;;  %v808_v19 = vld [vmem:[%s8156_s5] sm:$0xff] }
 0x251   : > { %5407 = vmatpush3.msra.mxu0 %v867_v40  ;;  %2857 = vrot.lane.b32.xlu1 %v6095_v55, %s5821_s21  ;;  %v3108_v40 = vld [vmem:[%s8157_s6 + $0x8] sm:$0xff] }
 0x252   : > { %930 = vmatprep.subr.mxu1 %v869_v33  ;;  %v6483_v6 = vpop.permute.xlu1 %1608  ;;  %v6485_v13 = vpop.permute.xlu0 %2100  ;;  %5409 = vmatmul.mubr.msk.f32.vlgmr.msra.gmra.mxu0 %vm889_vm11, %v5136_v52 }
 0x253   : > { %931 = vmatpush1.msra.mxu1 %v868_v60  ;;  %5411 = vmatprep.mubr.msk.f32.mxu0 %vm889_vm11, %v5137_v16  ;;  %v5668_v60 = vunpack.i.l.bf16 %v6217_v54 }
 0x254   : > { %932 = vmatprep.subr.mxu1 %v866_v32 }
 0x255   : > { %933 = vmatpush1.msra.mxu1 %v865_v49  ;;  %2883 = vrot.lane.b32.xlu1 %v8232_v48, %s5821_s21 }
 0x256   : > { %v6502_v24 = vpop.permute.xlu1 %5701  ;;  %v6504_v50 = vpop.permute.xlu0 %2092  ;;  %5139 = vmatmul.mubr.msk.f32.vlgmr.msra.gmra.mxu1 %vm889_vm11, %v6251_v59  ;;  %5412 = vmatmul.mubr.msk.f32.gmra.mxu0 %vm889_vm11, %v5138_v29 }
 0x257   : > { %972 = vmatprep.mubr.f32.mxu1 %v8232_v48  ;;  %1208 = vmatprep.mubr.f32.mxu0 %v8232_v48 }
 0x259   : > { %2867 = vrot.lane.b32.xlu1 %v8232_v48, %s5821_s21 }
 0x25a   : > { %v6513_v0 = vpop.permute.xlu1 %2094  ;;  %v6515_v14 = vpop.permute.xlu0 %2086  ;;  %5140 = vmatmul.mubr.msk.f32.gmra.mxu1 %vm889_vm11, %v5136_v52 }
 0x25b   : > { %978 = vmatprep.mubr.f32.mxu1 %v8232_v48 }
 0x25d   : > { %3128 = vperm.xlu1 %5654, %v3110_v30   ;;  %v5669_v30 = vunpack.i.h.bf16 %v6217_v54 }
 0x25e   : > { %v6522_v59 = vpop.permute.xlu1 %2363  ;;  %v6524_v63 = vpop.permute.xlu0 %2355  ;;  %5141 = vmatmul.mubr.msk.f32.gmra.mxu1 %vm889_vm11, %v5137_v16 }
 0x25f   : > { %984 = vmatprep.mubr.f32.mxu1 %v8232_v48 }
 0x261   : > { %3118 = vperm.xlu1 %5654, %v3108_v40   ;;  %v1115_v40 = vsel %vm402_vm5, %v6417_v2, %v6419_v1 }
 0x262   : > { %v6534_v35 = vpop.permute.xlu1 %2359  ;;  %v6536_v11 = vpop.permute.xlu0 %2351  ;;  %5142 = vmatmul.mubr.msk.f32.gmra.mxu1 %vm889_vm11, %v5138_v29  ;;  %v1117_v29 = vsel %vm402_vm5, %v5668_v60, %v6462_v44  ;;  %v1112_v60 = vsel %vm402_vm5, %v6341_v26, %v6381_v41 }
 0x263   : > { %8234 = vst [vmem:[#allocation24_spill] sm:$0xff] %v6536_v11  ;;  %5422 = vmatprep.mubr.msk.f32.mxu1 %vm889_vm11, %v808_v19  ;;  %v5679_v11 = vunpack.i.h.bf16 %v6236_v57 }
 0x266   : > { %v6540_v33 = vpop.permute.xlu1 %2353  ;;  %v6542_v52 = vpop.permute.xlu0 %2345 }
 0x267   : > { %8235 = vst [vmem:[#allocation25_spill] sm:$0xff] %v6542_v52  ;;  %v1116_v52 = vsel %vm402_vm5, %v6419_v1, %v6373_v37  ;;  %v1113_v1 = vsel %vm402_vm5, %v6381_v41, %v6281_v5  ;;  %v1110_v37 = vsel %vm402_vm5, %v6319_v18, %v6321_v20 }
 0x26a   : > { %v1105_v48 = vpop.permute.xlu1 %1104  ;;  %v6545_v16 = vpop.permute.xlu0 %2076 }
 0x26b   : > { %v1118_v32 = vsel %vm402_vm5, %v6462_v44, %v1105_v48  ;;  %v1119_v49 = vsel %vm402_vm5, %v1105_v48, %v6359_v31  ;;  %v5678_v31 = vunpack.i.l.bf16 %v6236_v57  ;;  %v1114_v44 = vsel %vm402_vm5, %v5669_v30, %v6417_v2 }
 0x26c   : > { %1168 = vmatprep.subr.mxu0 %v1118_v32  ;;  %5414 = vmatprep.subr.mxu1 %v1119_v49  ;;  %v1109_v2 = vsel %vm402_vm5, %v6295_v9, %v6319_v18  ;;  %v5673_v32 = vunpack.i.l.bf16 %v6230_v56 }
 0x26d   : > { %1169 = vmatpush1.msra.mxu0 %v1117_v29  ;;  %5415 = vmatpush3.msra.mxu1 %v1119_v49  ;;  %v1111_v57 = vsel %vm402_vm5, %v5678_v31, %v6341_v26  ;;  %v1108_v26 = vsel %vm402_vm5, %v5679_v11, %v6295_v9  ;;  %v810_v9 = vld [vmem:[%s8156_s5 + $0x10] sm:$0xff]  ;;  %v5674_v11 = vunpack.i.h.bf16 %v6230_v56  ;;  %v811_v56 = vld [vmem:[%s8156_s5 + $0x18] sm:$0xff]  ;;  %v6615_v29 = vld [vmem:[#allocation2 + $0x20] sm:$0xff]  ;;  %v5684_v31 = vunpack.i.h.bf16 %v6246_v58 }
 0x26e   : > { %v6562_v54 = vpop.permute.xlu1 %2084  ;;  %v6564_v48 = vpop.permute.xlu0 %2337  ;;  %1170 = vmatprep.subr.mxu0 %v1115_v40  ;;  %5416 = vmatprep.subr.mxu1 %v1116_v52  ;;  %v1364_v20 = vsel %vm423_vm4, %v5673_v32, %v6433_v51 }
 0x26f   : > { %1171 = vmatpush1.msra.mxu0 %v1114_v44  ;;  %5417 = vmatpush3.msra.mxu1 %v1116_v52  ;;  %v809_v52 = vld [vmem:[%s8156_s5 + $0x8] sm:$0xff]  ;;  %v1361_v40 = vsel %vm423_vm4, %v5674_v11, %v6411_v53  ;;  %v5683_v44 = vunpack.i.l.bf16 %v6246_v58  ;;  %v5694_v11 = vunpack.i.h.bf16 %v6271_v62 }
 0x270   : > { %1172 = vmatprep.subr.mxu0 %v1112_v60  ;;  %5418 = vmatprep.subr.mxu1 %v1113_v1 }
 0x271   : > { %1173 = vmatpush1.msra.mxu0 %v1111_v57  ;;  %5419 = vmatpush3.msra.mxu1 %v1113_v1  ;;  %v1358_v58 = vsel %vm423_vm4, %v5683_v44, %v6367_v36  ;;  %v1356_v1 = vsel %vm423_vm4, %v6303_v12, %v6329_v23  ;;  %v1357_v57 = vsel %vm423_vm4, %v6329_v23, %v6335_v25  ;;  %v8237_v44 = vld [vmem:[#allocation18_spill] sm:$0xff] }
 0x272   : > { %v1352_v5 = vpop.permute.xlu1 %1351  ;;  %v6585_v41 = vpop.permute.xlu0 %2335  ;;  %1174 = vmatprep.subr.mxu0 %v1109_v2  ;;  %5420 = vmatprep.subr.mxu1 %v1110_v37 }
 0x273   : > { %1175 = vmatpush1.msra.mxu0 %v1108_v26  ;;  %5421 = vmatpush3.msra.mxu1 %v1110_v37  ;;  %v1365_v49 = vsel %vm423_vm4, %v6433_v51, %v1352_v5  ;;  %v1366_v18 = vsel %vm423_vm4, %v1352_v5, %v6349_v28  ;;  %v1363_v51 = vsel %vm423_vm4, %v6442_v39, %v6397_v46  ;;  %v5688_v5 = vunpack.i.l.bf16 %v6261_v61 }
 0x274   : > { %5147 = vmatmul.mubr.msk.f32.vlgmr.msra.gmra.mxu0 %vm889_vm11, %v808_v19  ;;  %5423 = vmatmul.mubr.msk.f32.vlgmr.msra.gmra.mxu1 %vm889_vm11, %v809_v52  ;;  %v1362_v19 = vsel %vm423_vm4, %v6411_v53, %v6442_v39  ;;  %v1359_v39 = vsel %vm423_vm4, %v6367_v36, %v6389_v43  ;;  %v1360_v46 = vsel %vm423_vm4, %v6389_v43, %v6311_v15  ;;  %v5155_v36 = vld [vmem:[%s8156_s5 + $0x40] sm:$0xff] }
 0x275   : > { %1415 = vmatprep.subr.mxu1 %v1365_v49  ;;  %5428 = vmatprep.subr.mxu0 %v1366_v18  ;;  %v1355_v15 = vsel %vm423_vm4, %v5684_v31, %v6303_v12  ;;  %v5156_v12 = vld [vmem:[%s8156_s5 + $0x48] sm:$0xff]  ;;  %v1623_v49 = vsel %vm434_vm7, %v5688_v5, %v6483_v6  ;;  %v5169_v31 = vld [vmem:[%s8156_s5 + $0x70] sm:$0xff] }
 0x276   : > { %1416 = vmatpush1.msra.mxu1 %v1364_v20  ;;  %5429 = vmatpush3.msra.mxu0 %v1366_v18  ;;  %v6602_v30 = vpop.permute.xlu1 %2078  ;;  %v6604_v28 = vpop.permute.xlu0 %2622  ;;  %v1622_v18 = vsel %vm434_vm7, %v6427_v34, %v6395_v45  ;;  %v1621_v20 = vsel %vm434_vm7, %v6425_v3, %v6427_v34  ;;  %v5693_v45 = vunpack.i.l.bf16 %v6271_v62  ;;  %v1618_v34 = vsel %vm434_vm7, %v6383_v42, %v6403_v47 }
 0x277   : > { %1417 = vmatprep.subr.mxu1 %v1362_v19  ;;  %5430 = vmatprep.subr.mxu0 %v1363_v51  ;;  %v1616_v62 = vsel %vm434_vm7, %v6327_v21, %v6343_v27  ;;  %v8236_v27 = vld [vmem:[#allocation19_spill] sm:$0xff] }
 0x278   : > { %1214 = vmatprep.mubr.f32.mxu0 %v6615_v29  ;;  %5425 = vmatprep.mubr.msk.f32.mxu1 %vm889_vm11, %v810_v9  ;;  %v1617_v19 = vsel %vm434_vm7, %v5693_v45, %v6383_v42  ;;  %v5167_v42 = vld [vmem:[%s8156_s5 + $0x60] sm:$0xff] }
 0x279   : > { %1418 = vmatpush1.msra.mxu1 %v1361_v40  ;;  %5431 = vmatpush3.msra.mxu0 %v1363_v51 }
 0x27a   : > { %5148 = vmatmul.mubr.msk.f32.gmra.mxu0 %vm889_vm11, %v809_v52  ;;  %5426 = vmatmul.mubr.msk.f32.gmra.mxu1 %vm889_vm11, %v811_v56  ;;  %v6631_v60 = vpop.permute.xlu1 %2347  ;;  %v6635_v53 = vpop.permute.xlu0 %5716  ;;  %v5157_v52 = vld [vmem:[%s8156_s5 + $0x50] sm:$0xff] }
 0x27b   : > { %1419 = vmatprep.subr.mxu1 %v1359_v39  ;;  %5432 = vmatprep.subr.mxu0 %v1360_v46  ;;  %v5170_v39 = vld [vmem:[%s8156_s5 + $0x78] sm:$0xff] }
 0x27c   : > { %1420 = vmatpush1.msra.mxu1 %v1358_v58  ;;  %5433 = vmatpush3.msra.mxu0 %v1360_v46  ;;  %v8238_v46 = vld [vmem:[#allocation16_spill] sm:$0xff]  ;;  %v8239_v58 = vld [vmem:[#allocation17_spill] sm:$0xff] }
 0x27d   : > { %1421 = vmatprep.subr.mxu1 %v1356_v1  ;;  %5434 = vmatprep.subr.mxu0 %v1357_v57 }
 0x27e   : > { %1220 = vmatprep.mubr.f32.mxu0 %v6615_v29  ;;  %1422 = vmatpush1.msra.mxu1 %v1355_v15  ;;  %v6649_v43 = vpop.permute.xlu1 %2343  ;;  %v6659_v23 = vpop.permute.xlu0 %2606 }
 0x27f   : > { %1455 = vmatprep.mubr.f32.mxu1 %v6615_v29  ;;  %5435 = vmatpush3.msra.mxu0 %v1357_v57  ;;  %v8241_v57 = vld [vmem:[#allocation12_spill] sm:$0xff] }
 0x280   : > { %5149 = vmatmul.mubr.msk.f32.gmra.mxu0 %vm889_vm11, %v810_v9  ;;  %5159 = vmatmul.mubr.msk.f32.vlgmr.msra.gmra.mxu1 %vm889_vm11, %v5155_v36 }
 0x281   : > { %1226 = vmatprep.mubr.f32.mxu0 %v6615_v29  ;;  %1461 = vmatprep.mubr.f32.mxu1 %v6615_v29 }
 0x282   : > { %v1611_v25 = vpop.permute.xlu1 %1610  ;;  %v6676_v32 = vpop.permute.xlu0 %2598 }
 0x283   : > { %v1624_v2 = vsel %vm434_vm7, %v6483_v6, %v1611_v25  ;;  %v1625_v37 = vsel %vm434_vm7, %v1611_v25, %v6375_v38  ;;  %v5689_v38 = vunpack.i.h.bf16 %v6261_v61  ;;  %v5158_v61 = vld [vmem:[%s8156_s5 + $0x58] sm:$0xff] }
 0x284   : > { %5150 = vmatmul.mubr.msk.f32.gmra.mxu0 %vm889_vm11, %v811_v56  ;;  %5160 = vmatmul.mubr.msk.f32.gmra.mxu1 %vm889_vm11, %v5156_v12  ;;  %v1615_v56 = vsel %vm434_vm7, %v6297_v10, %v6327_v21  ;;  %v8243_v25 = vld [vmem:[#allocation20_spill] sm:$0xff] }
 0x285   : > { %1467 = vmatprep.mubr.f32.mxu1 %v6615_v29  ;;  %5436 = vmatprep.mubr.msk.f32.mxu0 %vm889_vm11, %v5155_v36  ;;  %v1620_v6 = vsel %vm434_vm7, %v5689_v38, %v6425_v3  ;;  %v1619_v3 = vsel %vm434_vm7, %v6403_v47, %v6289_v7  ;;  %v1614_v7 = vsel %vm434_vm7, %v5694_v11, %v6297_v10  ;;  %v5168_v47 = vld [vmem:[%s8156_s5 + $0x68] sm:$0xff] }
 0x286   : > { %1674 = vmatprep.subr.mxu0 %v1624_v2  ;;  %5442 = vmatprep.subr.mxu1 %v1625_v37  ;;  %v6673_v26 = vpop.permute.xlu1 %2339  ;;  %v6709_v51 = vpop.permute.xlu0 %2618  ;;  %v8242_v36 = vld [vmem:[#allocation14_spill] sm:$0xff]  ;;  %v5698_v2 = vunpack.i.l.bf16 %v8243_v25 }
 0x287   : > { %5443 = vmatpush3.msra.mxu1 %v1625_v37  ;;  %v8244_v37 = vld [vmem:[#allocation11_spill] sm:$0xff] }
 0x288   : > { %5161 = vmatmul.mubr.msk.f32.gmra.mxu1 %vm889_vm11, %v5157_v52  ;;  %5437 = vmatmul.mubr.msk.f32.vlgmr.msra.gmra.mxu0 %vm889_vm11, %v5156_v12  ;;  %v5179_v12 = vld [vmem:[%s8156_s5 + $0x80] sm:$0xff] }
 0x289   : > { %1675 = vmatpush1.msra.mxu0 %v1623_v49  ;;  %5444 = vmatprep.subr.mxu1 %v1622_v18  ;;  %v5703_v49 = vunpack.i.l.bf16 %v6502_v24 }
 0x28a   : > { %1676 = vmatprep.subr.mxu0 %v1621_v20  ;;  %1473 = vmatprep.mubr.f32.mxu1 %v6615_v29  ;;  %v6694_v9 = vpop.permute.xlu1 %5706  ;;  %v6734_v10 = vpop.permute.xlu0 %2610  ;;  %v8246_v20 = vld [vmem:[#allocation22_spill] sm:$0xff] }
 0x28b   : > { %5439 = vmatprep.mubr.msk.f32.mxu0 %vm889_vm11, %v5157_v52  ;;  %1677 = vmatpush1.msra.mxu0 %v1620_v6  ;;  %v8245_v52 = vld [vmem:[#allocation21_spill] sm:$0xff]  ;;  %v5704_v6 = vunpack.i.h.bf16 %v6502_v24 }
 0x28c   : > { %5445 = vmatpush3.msra.mxu1 %v1622_v18  ;;  %5440 = vmatmul.mubr.msk.f32.gmra.mxu0 %vm889_vm11, %v5158_v61  ;;  %v2119_v5 = vsel %vm449_vm6, %v8245_v52, %v5698_v2 }
 0x28d   : > { %5162 = vmatmul.mubr.msk.f32.gmra.mxu1 %vm889_vm11, %v5158_v61  ;;  %1678 = vmatprep.subr.mxu0 %v1618_v34  ;;  %v8247_v34 = vld [vmem:[#allocation23_spill] sm:$0xff]  ;;  %v2110_v24 = vsel %vm449_vm6, %v6465_v22, %v5704_v6 }
 0x28e   : > { %5446 = vmatprep.subr.mxu1 %v1619_v3  ;;  %1679 = vmatpush1.msra.mxu0 %v1617_v19  ;;  %v6714_v40 = vpop.permute.xlu1 %5711  ;;  %v6756_v1 = vpop.permute.xlu0 %2361  ;;  %v2113_v11 = vsel %vm449_vm6, %v8247_v34, %v5703_v49  ;;  %v5181_v19 = vld [vmem:[%s8156_s5 + $0x90] sm:$0xff] }
 0x28f   : > { %5447 = vmatpush3.msra.mxu1 %v1619_v3  ;;  %1680 = vmatprep.subr.mxu0 %v1615_v56  ;;  %v5714_v49 = vunpack.i.h.bf16 %v6714_v40 }
 0x290   : > { %5448 = vmatprep.subr.mxu1 %v1616_v62  ;;  %1681 = vmatpush1.msra.mxu0 %v1614_v7  ;;  %v2377_v7 = vsel %vm8248_vm12, %v6756_v1, %v6522_v59  ;;  %vm8259_vm12 = vmmov %vm8253_vm1 }
 0x291   : > { %1714 = vmatprep.mubr.f32.mxu0 %v6615_v29  ;;  %5449 = vmatpush3.msra.mxu1 %v1616_v62 }
 0x292   : > { %5450 = vmatprep.mubr.msk.f32.mxu1 %vm889_vm11, %v5167_v42  ;;  %5171 = vmatmul.mubr.msk.f32.vlgmr.msra.gmra.mxu0 %vm889_vm11, %v5167_v42  ;;  %v6730_v21 = vpop.permute.xlu1 %2614  ;;  %v6781_v18 = vpop.permute.xlu0 %2604 }
 0x293   : > { %5451 = vmatmul.mubr.msk.f32.vlgmr.msra.gmra.mxu1 %vm889_vm11, %v5168_v47  ;;  %1877 = vmatprep.subr.mxu1 %v6224_v17 }
 0x294   : > { %5456 = vmatprep.subr.mxu0 %v6116_v4  ;;  %1878 = vmatpush1.msra.mxu1 %v8236_v27  ;;  %v5191_v27 = vld [vmem:[%s8156_s5 + $0xa0] sm:$0xff] }
 0x295   : > { %5457 = vmatpush3.msra.mxu0 %v6116_v4  ;;  %1879 = vmatprep.subr.mxu1 %v8237_v44  ;;  %v8240_v4 = vld [vmem:[#allocation15_spill] sm:$0xff]  ;;  %v2114_v44 = vsel %vm449_vm6, %v6504_v50, %v6513_v0  ;;  %v5708_v50 = vunpack.i.l.bf16 %v6694_v9 }
 0x296   : > { %5458 = vmatprep.subr.mxu0 %v8238_v46  ;;  %1720 = vmatprep.mubr.f32.mxu0 %v6615_v29  ;;  %v6748_v17 = vpop.permute.xlu1 %5721  ;;  %v6804_v56 = vpop.permute.xlu0 %2873 }
 0x297   : > { %5453 = vmatprep.mubr.msk.f32.mxu1 %vm889_vm11, %v5169_v31  ;;  %1880 = vmatpush1.msra.mxu1 %v8239_v58  ;;  %v2111_v58 = vsel %vm449_vm6, %v6562_v54, %v6515_v14  ;;  %v2108_v54 = vsel %vm449_vm6, %v6545_v16, %v6602_v30  ;;  %v5709_v16 = vunpack.i.h.bf16 %v6694_v9 }
 0x298   : > { %5459 = vmatpush3.msra.mxu0 %v8238_v46  ;;  %5454 = vmatmul.mubr.msk.f32.gmra.mxu1 %vm889_vm11, %v5170_v39  ;;  %v2112_v46 = vsel %vm449_vm6, %v6515_v14, %v8247_v34 }
 0x299   : > { %5172 = vmatmul.mubr.msk.f32.gmra.mxu0 %vm889_vm11, %v5168_v47  ;;  %1881 = vmatprep.subr.mxu1 %v8240_v4  ;;  %v5182_v47 = vld [vmem:[%s8156_s5 + $0x98] sm:$0xff]  ;;  %v5192_v4 = vld [vmem:[%s8156_s5 + $0xa8] sm:$0xff] }
 0x29a   : > { %5460 = vmatprep.subr.mxu0 %v8241_v57  ;;  %1882 = vmatpush1.msra.mxu1 %v6127_v8  ;;  %v6760_v15 = vpop.permute.xlu1 %2612  ;;  %v5699_v8 = vunpack.i.h.bf16 %v8243_v25  ;;  %v2378_v25 = vsel %vm8253_vm1, %v6522_v59, %v5708_v50  ;;  %v2368_v59 = vsel %vm8257_vm9, %v6564_v48, %v6673_v26  ;;  %vm8265_vm9 = vcmask 891904  }
 0x29b   : > { %5461 = vmatpush3.msra.mxu0 %v8241_v57  ;;  %1883 = vmatprep.subr.mxu1 %v8242_v36  ;;  %v2109_v57 = vsel %vm449_vm6, %v6602_v30, %v6465_v22  ;;  %v2376_v36 = vsel %vm8249_vm13, %v6534_v35, %v6756_v1  ;;  %v2374_v22 = vsel %vm8250_vm14, %v6540_v33, %v6524_v63  ;;  %v8251_v35 = vld [vmem:[#allocation24_spill] sm:$0xff]  ;;  %vm8260_vm13 = vcmask 900096  }
 0x29c   : > { %5462 = vmatprep.subr.mxu0 %v6095_v55  ;;  %1726 = vmatprep.mubr.f32.mxu0 %v6615_v29  ;;  %v2116_v61 = vsel %vm449_vm6, %v8246_v20, %v5699_v8  ;;  %v2373_v1 = vsel %vm8252_vm15, %v8251_v35, %v6540_v33  ;;  %v8254_v8 = vld [vmem:[#allocation25_spill] sm:$0xff]  ;;  %vm8261_vm14 = vmmov %vm8260_vm13  ;;  %v5229_v35 = vld [vmem:[%s8156_s5 + $0x110] sm:$0xff] }
 0x29d   : > { %1884 = vmatpush1.msra.mxu1 %v8244_v37  ;;  %1917 = vmatprep.mubr.f32.mxu1 %v6615_v29  ;;  %v5713_v37 = vunpack.i.l.bf16 %v6714_v40  ;;  %v2371_v9 = vsel %vm8255_vm8, %v8254_v8, %v6631_v60  ;;  %v5203_v33 = vld [vmem:[%s8156_s5 + $0xc0] sm:$0xff]  ;;  %v5724_v40 = vunpack.i.h.bf16 %v6748_v17  ;;  %vm8262_vm15 = vmmov %vm8260_vm13 }
 0x29e   : > { %5463 = vmatpush3.msra.mxu0 %v6095_v55  ;;  %5183 = vmatmul.mubr.msk.f32.vlgmr.msra.gmra.mxu1 %vm889_vm11, %v5179_v12  ;;  %v6777_v38 = vpop.permute.xlu1 %2881  ;;  %v5180_v55 = vld [vmem:[%s8156_s5 + $0x88] sm:$0xff]  ;;  %vm8263_vm8 = vmmov %vm8260_vm13 }
 0x29f   : > { %5173 = vmatmul.mubr.msk.f32.gmra.mxu0 %vm889_vm11, %v5169_v31  ;;  %5470 = vmatprep.subr.mxu1 %v2119_v5 }
 0x2a0   : > { %5471 = vmatpush3.msra.mxu1 %v2119_v5  ;;  %1732 = vmatprep.mubr.f32.mxu0 %v6615_v29  ;;  %v2367_v5 = vsel %vm8258_vm10, %v6585_v41, %v6564_v48  ;;  %v5719_v41 = vunpack.i.h.bf16 %v6635_v53  ;;  %vm8266_vm10 = vmmov %vm8263_vm8 }
 0x2a1   : > { %5472 = vmatprep.subr.mxu1 %v2116_v61  ;;  %1923 = vmatprep.mubr.f32.mxu1 %v6615_v29 }
 0x2a2   : > { %5473 = vmatpush3.msra.mxu1 %v2116_v61  ;;  %v2103_v45 = vpop.permute.xlu1 %2102  ;;  %v2637_v61 = vsel %vm8260_vm13, %v6604_v28, %v5713_v37  ;;  %vm8268_vm13 = vmmov %vm8265_vm9 }
 0x2a3   : > { %5174 = vmatmul.mubr.msk.f32.gmra.mxu0 %vm889_vm11, %v5170_v39  ;;  %5184 = vmatmul.mubr.msk.f32.gmra.mxu1 %vm889_vm11, %v5180_v55  ;;  %v2118_v3 = vsel %vm449_vm6, %v2103_v45, %v8245_v52  ;;  %v2117_v42 = vsel %vm449_vm6, %v6485_v13, %v2103_v45  ;;  %v2115_v13 = vsel %vm449_vm6, %v6513_v0, %v8246_v20  ;;  %v6832_v39 = vpop.permute.xlu0 %2869  ;;  %v6849_v0 = vld [vmem:[%s8156_s5 + $0xb0] sm:$0xff]  ;;  %v5723_v20 = vunpack.i.l.bf16 %v6748_v17  ;;  %v5204_v45 = vld [vmem:[%s8156_s5 + $0xc8] sm:$0xff] }
 0x2a4   : > { %5474 = vmatprep.subr.mxu1 %v2113_v11  ;;  %1929 = vmatprep.mubr.f32.mxu1 %v6615_v29  ;;  %v2370_v52 = vsel %vm8256_vm2, %v6649_v43, %v8254_v8  ;;  %v2375_v43 = vsel %vm8259_vm12, %v6524_v63, %v5709_v16  ;;  %v2634_v63 = vsel %vm8261_vm14, %v6730_v21, %v5714_v49  ;;  %vm8264_vm2 = vmmov %vm8253_vm1  ;;  %v5228_v16 = vld [vmem:[%s8156_s5 + $0x108] sm:$0xff] }
 0x2a5   : > { %5475 = vmatpush3.msra.mxu1 %v2113_v11  ;;  %5464 = vmatprep.mubr.msk.f32.mxu0 %vm889_vm11, %v5179_v12  ;;  %v6872_v12 = vld [vmem:[%s8156_s5 + $0xb8] sm:$0xff]  ;;  %v2631_v34 = vsel %vm8262_vm15, %v6659_v23, %v5723_v20  ;;  %v2628_v11 = vsel %vm8263_vm8, %v6676_v32, %v5724_v40  ;;  %vm8267_vm12 = vmmov %vm8263_vm8 }
 0x2a6   : > { %5476 = vmatprep.subr.mxu1 %v2110_v24  ;;  %2168 = vmatprep.subr.mxu0 %v2118_v3  ;;  %v6806_v62 = vpop.permute.xlu1 %2877  ;;  %v2369_v3 = vsel %vm8264_vm2, %v6673_v26, %v5719_v41  ;;  %v5206_v26 = vld [vmem:[%s8156_s5 + $0xd8] sm:$0xff]  ;;  %vm8269_vm14 = vmmov %vm8263_vm8 }
 0x2a7   : > { %5477 = vmatpush3.msra.mxu1 %v2110_v24  ;;  %5465 = vmatmul.mubr.msk.f32.vlgmr.msra.gmra.mxu0 %vm889_vm11, %v5180_v55  ;;  %v6875_v30 = vpop.permute.xlu0 %2863  ;;  %v5718_v55 = vunpack.i.l.bf16 %v6635_v53  ;;  %vm8270_vm15 = vmmov %vm8265_vm9 }
 0x2a8   : > { %5185 = vmatmul.mubr.msk.f32.gmra.mxu1 %vm889_vm11, %v5181_v19  ;;  %2427 = vmatprep.subr.mxu1 %v2377_v7  ;;  %vm8273_vm2 = vmmov %vm8266_vm10 }
 0x2a9   : > { %1935 = vmatprep.mubr.f32.mxu1 %v6615_v29  ;;  %5467 = vmatprep.mubr.msk.f32.mxu0 %vm889_vm11, %v5181_v19  ;;  %v2372_v53 = vsel %vm8253_vm1, %v6631_v60, %v5718_v55  ;;  %v5205_v60 = vld [vmem:[%s8156_s5 + $0xd0] sm:$0xff]  ;;  %vm8271_vm1 = vmmov %vm8265_vm9 }
 0x2aa   : > { %2169 = vmatpush1.msra.mxu0 %v2117_v42  ;;  %v6826_v31 = vpop.permute.xlu1 %2871  ;;  %vm8272_vm8 = vmmov %vm8271_vm1 }
 0x2ab   : > { %5468 = vmatmul.mubr.msk.f32.gmra.mxu0 %vm889_vm11, %v5182_v47  ;;  %2170 = vmatprep.subr.mxu0 %v2115_v13  ;;  %v6911_v6 = vpop.permute.xlu0 %2594  ;;  %v2891_v50 = vsel %vm8272_vm8, %v6832_v39, %v6826_v31  ;;  %vm8280_vm8 = vmmov %vm8271_vm1 }
 0x2ac   : > { %5186 = vmatmul.mubr.msk.f32.gmra.mxu1 %vm889_vm11, %v5182_v47  ;;  %2171 = vmatpush1.msra.mxu0 %v2114_v44  ;;  %v5216_v47 = vld [vmem:[%s8156_s5 + $0xe8] sm:$0xff] }
 0x2ad   : > { %5478 = vmatprep.mubr.msk.f32.mxu1 %vm889_vm11, %v5191_v27  ;;  %2172 = vmatprep.subr.mxu0 %v2112_v46 }
 0x2ae   : > { %2173 = vmatpush1.msra.mxu0 %v2111_v58  ;;  %2208 = vmatprep.mubr.f32.mxu0 %v6615_v29  ;;  %v6855_v14 = vpop.permute.xlu1 %2602  ;;  %v2633_v58 = vsel %vm8269_vm14, %v6760_v15, %v6730_v21  ;;  %v2632_v21 = vsel %vm8273_vm2, %v6734_v10, %v6760_v15  ;;  %v5218_v10 = vld [vmem:[%s8156_s5 + $0xf8] sm:$0xff]  ;;  %vm8278_vm14 = vmmov %vm8271_vm1 }
 0x2af   : > { %2174 = vmatprep.subr.mxu0 %v2109_v57  ;;  %v2880_v17 = vpop.permute.xlu0 %2879 }
 0x2b0   : > { %5479 = vmatmul.mubr.msk.f32.vlgmr.msra.gmra.mxu1 %vm889_vm11, %v5192_v4  ;;  %2175 = vmatpush1.msra.mxu0 %v2108_v54  ;;  %v2895_v19 = vsel %vm8265_vm9, %v2880_v17, %v6777_v38  ;;  %v2894_v46 = vsel %vm8268_vm13, %v6806_v62, %v2880_v17  ;;  %vm8274_vm9 = vmmov %vm8271_vm1 }
 0x2b1   : > { %2428 = vmatpush1.msra.mxu1 %v2376_v36  ;;  %5481 = vmatprep.mubr.msk.f32.mxu1 %vm889_vm11, %v6849_v0  ;;  %vm8277_vm13 = vmmov %vm8273_vm2 }
 0x2b2   : > { %2429 = vmatprep.subr.mxu1 %v2374_v22  ;;  %5195 = vmatmul.mubr.msk.f32.vlgmr.msra.gmra.mxu0 %vm889_vm11, %v5191_v27  ;;  %v6883_v2 = vpop.permute.xlu1 %2596 }
 0x2b3   : > { %2430 = vmatpush1.msra.mxu1 %v2373_v1  ;;  %5484 = vmatprep.subr.mxu0 %v2378_v25  ;;  %v2856_v13 = vpop.permute.xlu0 %2855  ;;  %v2627_v54 = vsel %vm8277_vm13, %v6883_v2, %v6676_v32  ;;  %vm8351_vm13 = vcmask 908288  }
 0x2b4   : > { %2431 = vmatprep.subr.mxu1 %v2371_v9  ;;  %5482 = vmatmul.mubr.msk.f32.gmra.mxu1 %vm889_vm11, %v6872_v12 }
 0x2b5   : > { %2432 = vmatpush1.msra.mxu1 %v2370_v52  ;;  %2467 = vmatprep.mubr.f32.mxu1 %v6615_v29 }
 0x2b6   : > { %2433 = vmatprep.subr.mxu1 %v2368_v59  ;;  %5485 = vmatpush3.msra.mxu0 %v2378_v25  ;;  %v6914_v48 = vpop.permute.xlu1 %2865  ;;  %v5230_v25 = vld [vmem:[%s8156_s5 + $0x118] sm:$0xff] }
 0x2b7   : > { %2434 = vmatpush1.msra.mxu1 %v2367_v5  ;;  %5486 = vmatprep.subr.mxu0 %v2375_v43  ;;  %v2889_v62 = vsel %vm8274_vm9, %v6875_v30, %v6914_v48  ;;  %v2854_v39 = vpop.permute.xlu0 %2853  ;;  %vm8282_vm9 = vmmov %vm8271_vm1 }
 0x2b8   : > { %5498 = vmatprep.subr.mxu1 %v2637_v61  ;;  %5207 = vmatmul.mubr.msk.f32.vlgmr.msra.gmra.mxu1 %vm889_vm11, %v5203_v33  ;;  %v2885_v36 = vsel %vm8271_vm1, %v2854_v39, %v2856_v13 }
 0x2b9   : > { %5499 = vmatpush3.msra.mxu1 %v2637_v61  ;;  %2214 = vmatprep.mubr.f32.mxu0 %v6615_v29 }
 0x2ba   : > { %5500 = vmatprep.subr.mxu1 %v2634_v63  ;;  %2473 = vmatprep.mubr.f32.mxu1 %v6615_v29  ;;  %v2621_v24 = vpop.permute.xlu1 %2620 }
 0x2bb   : > { %5501 = vmatpush3.msra.mxu1 %v2634_v63  ;;  %5487 = vmatpush3.msra.mxu0 %v2375_v43  ;;  %v2636_v7 = vsel %vm8266_vm10, %v2621_v24, %v6604_v28  ;;  %v5215_v28 = vld [vmem:[%s8156_s5 + $0xe0] sm:$0xff]  ;;  %v2635_v27 = vsel %vm8267_vm12, %v6709_v51, %v2621_v24  ;;  %v2892_v51 = vsel %vm8270_vm15, %v6826_v31, %v6804_v56  ;;  %vm8275_vm10 = vmmov %vm8273_vm2  ;;  %v2876_v22 = vpop.permute.xlu0 %2875 }
 0x2bc   : > { %5502 = vmatprep.subr.mxu1 %v2631_v34  ;;  %5196 = vmatmul.mubr.msk.f32.gmra.mxu0 %vm889_vm11, %v5192_v4  ;;  %v2630_v31 = vsel %vm8275_vm10, %v6781_v18, %v6659_v23  ;;  %vm8276_vm12 = vmmov %vm8273_vm2 }
 0x2bd   : > { %5208 = vmatmul.mubr.msk.f32.gmra.mxu1 %vm889_vm11, %v5204_v45  ;;  %5488 = vmatprep.subr.mxu0 %v2372_v53  ;;  %v2629_v15 = vsel %vm8276_vm12, %v6855_v14, %v6781_v18  ;;  %vm8279_vm15 = vmmov %vm8273_vm2  ;;  %v5227_v14 = vld [vmem:[%s8156_s5 + $0x100] sm:$0xff]  ;;  %vm5830_vm12 = vmmov 0  }
 0x2be   : > { %5503 = vmatpush3.msra.mxu1 %v2631_v34  ;;  %5489 = vmatpush3.msra.mxu0 %v2372_v53  ;;  %v2862_v42 = vpop.permute.xlu1 %2861  ;;  %v2626_v18 = vsel %vm8279_vm15, %v6911_v6, %v6883_v2  ;;  %vm8281_vm2 = vmmov %vm8271_vm1  ;;  %v7057_v2 = vpack.i.bf16 %v6615_v29, %v6615_v29 }
 0x2bf   : > { %5504 = vmatprep.subr.mxu1 %v2628_v11  ;;  %5490 = vmatprep.subr.mxu0 %v2369_v3  ;;  %v2888_v4 = vsel %vm8271_vm1, %v2862_v42, %v6875_v30  ;;  %v2860_v1 = vpop.permute.xlu0 %2859  ;;  %vm8283_vm10 = vmmov %vm8271_vm1 }
 0x2c0   : > { %5505 = vmatpush3.msra.mxu1 %v2628_v11  ;;  %2220 = vmatprep.mubr.f32.mxu0 %v6615_v29  ;;  %8284 = vst [vmem:[#allocation19_spill] sm:$0xff] %v7057_v2  ;;  %vm8357_vm15 = vmmov %vm8351_vm13 }
 0x2c1   : > { %2479 = vmatprep.mubr.f32.mxu1 %v6615_v29  ;;  %5491 = vmatpush3.msra.mxu0 %v2369_v3  ;;  %vm8364_vm1 = vmmov %vm8351_vm13 }
 0x2c2   : > { %2945 = vmatprep.subr.mxu1 %v2895_v19  ;;  %5197 = vmatmul.mubr.msk.f32.gmra.mxu0 %vm889_vm11, %v6849_v0  ;;  %v5217_v0 = vld [vmem:[%s8156_s5 + $0xf0] sm:$0xff] }
 0x2c3   : > { %5209 = vmatmul.mubr.msk.f32.gmra.mxu1 %vm889_vm11, %v5205_v60  ;;  %2226 = vmatprep.mubr.f32.mxu0 %v6615_v29  ;;  %v6966_v44 = vpop.permute.xlu1 %2857 }
 0x2c4   : > { %2485 = vmatprep.mubr.f32.mxu1 %v6615_v29  ;;  %2686 = vmatprep.subr.mxu0 %v2636_v7  ;;  %v2886_v23 = vsel %vm8278_vm14, %v2856_v13, %v6966_v44  ;;  %vm8354_vm14 = vmmov %vm8351_vm13 }
 0x2c5   : > { %5731 = vrot.lane.b32.xlu0 %v7057_v2, %s5822_s22  ;;  %5726 = vrot.lane.b32.xlu1 %v7057_v2, %s5822_s22 }
 0x2c6   : > { %5198 = vmatmul.mubr.msk.f32.gmra.mxu0 %vm889_vm11, %v6872_v12 }
 0x2c7   : > { %5210 = vmatmul.mubr.msk.f32.gmra.mxu1 %vm889_vm11, %v5206_v26  ;;  %5492 = vmatprep.mubr.msk.f32.mxu0 %vm889_vm11, %v5203_v33  ;;  %v2884_v57 = vpop.permute.xlu1 %2883 }
 0x2c8   : > { %5506 = vmatprep.mubr.msk.f32.mxu1 %vm889_vm11, %v5215_v28  ;;  %v2896_v32 = vsel %vm8280_vm8, %v6777_v38, %v2884_v57  ;;  %v2893_v38 = vsel %vm8281_vm2, %v6804_v56, %v2876_v22  ;;  %v2887_v56 = vsel %vm8283_vm10, %v6966_v44, %v2860_v1  ;;  %vm8365_vm8 = vmmov %vm8364_vm1 }
 0x2c9   : > { %5736 = vrot.lane.b32.xlu0 %v7057_v2, %s5824_s24  ;;  %vm8369_vm2 = vmmov %vm8364_vm1 }
 0x2ca   : > { %5493 = vmatmul.mubr.msk.f32.vlgmr.msra.gmra.mxu0 %vm889_vm11, %v5204_v45 }
 0x2cb   : > { %5507 = vmatmul.mubr.msk.f32.vlgmr.msra.gmra.mxu1 %vm889_vm11, %v5216_v47  ;;  %2687 = vmatpush1.msra.mxu0 %v2635_v27  ;;  %v2868_v12 = vpop.permute.xlu1 %2867 }
 0x2cc   : > { %2946 = vmatpush1.msra.mxu1 %v2894_v46  ;;  %2688 = vmatprep.subr.mxu0 %v2633_v58  ;;  %v2890_v30 = vsel %vm8282_vm9, %v6914_v48, %v2868_v12  ;;  %vm8404_vm9 = vmmov %vm8364_vm1 }
 0x2cd   : > { %2947 = vmatprep.subr.mxu1 %v2892_v51  ;;  %5495 = vmatprep.mubr.msk.f32.mxu0 %vm889_vm11, %v5205_v60 }
 0x2ce   : > { %2948 = vmatpush1.msra.mxu1 %v2891_v50  ;;  %2689 = vmatpush1.msra.mxu0 %v2632_v21 }
 0x2cf   : > { %2949 = vmatprep.subr.mxu1 %v2889_v62  ;;  %5496 = vmatmul.mubr.msk.f32.gmra.mxu0 %vm889_vm11, %v5206_v26 }
 0x2d0   : > { %2690 = vmatprep.subr.mxu0 %v2630_v31  ;;  %2950 = vmatpush1.msra.mxu1 %v2888_v4 }
 0x2d1   : > { %2691 = vmatpush1.msra.mxu0 %v2629_v15  ;;  %5509 = vmatprep.mubr.msk.f32.mxu1 %vm889_vm11, %v5217_v0 }
 0x2d2   : > { %2692 = vmatprep.subr.mxu0 %v2627_v54  ;;  %5510 = vmatmul.mubr.msk.f32.gmra.mxu1 %vm889_vm11, %v5218_v10 }
 0x2d3   : > { %2693 = vmatpush1.msra.mxu0 %v2626_v18  ;;  %2726 = vmatprep.mubr.f32.mxu0 %v6615_v29 }
 0x2d4   : > { %5219 = vmatmul.mubr.msk.f32.vlgmr.msra.gmra.mxu0 %vm889_vm11, %v5215_v28  ;;  %2951 = vmatprep.subr.mxu1 %v2886_v23 }
 0x2d5   : > { %2952 = vmatpush1.msra.mxu1 %v2885_v36  ;;  %2985 = vmatprep.mubr.f32.mxu1 %v6615_v29 }
 0x2d6   : > { %5231 = vmatmul.mubr.msk.f32.vlgmr.msra.gmra.mxu1 %vm889_vm11, %v5227_v14  ;;  %2732 = vmatprep.mubr.f32.mxu0 %v6615_v29 }
 0x2d7   : > { %5512 = vmatprep.subr.mxu0 %v2896_v32  ;;  %2991 = vmatprep.mubr.f32.mxu1 %v6615_v29 }
 0x2d8   : > { %5220 = vmatmul.mubr.msk.f32.gmra.mxu0 %vm889_vm11, %v5216_v47  ;;  %5526 = vmatprep.subr.mxu1 %v6615_v29 }
 0x2d9   : > { %5513 = vmatpush3.msra.mxu0 %v2896_v32  ;;  %2738 = vmatprep.mubr.f32.mxu0 %v6615_v29 }
 0x2da   : > { %5232 = vmatmul.mubr.msk.f32.gmra.mxu1 %vm889_vm11, %v5228_v16  ;;  %5514 = vmatprep.subr.mxu0 %v2893_v38 }
 0x2db   : > { %5515 = vmatpush3.msra.mxu0 %v2893_v38  ;;  %2997 = vmatprep.mubr.f32.mxu1 %v6615_v29 }
 0x2dc   : > { %5221 = vmatmul.mubr.msk.f32.gmra.mxu0 %vm889_vm11, %v5217_v0  ;;  %5516 = vmatprep.subr.mxu0 %v2890_v30 }
 0x2dd   : > { %5517 = vmatpush3.msra.mxu0 %v2890_v30  ;;  %2744 = vmatprep.mubr.f32.mxu0 %v6615_v29 }
 0x2de   : > { %5233 = vmatmul.mubr.msk.f32.gmra.mxu1 %vm889_vm11, %v5229_v35  ;;  %5518 = vmatprep.subr.mxu0 %v2887_v56 }
 0x2df   : > { %5519 = vmatpush3.msra.mxu0 %v2887_v56  ;;  %3003 = vmatprep.mubr.f32.mxu1 %v6615_v29 }
 0x2e0   : > { %5222 = vmatmul.mubr.msk.f32.gmra.mxu0 %vm889_vm11, %v5218_v10  ;;  %5741 = vrot.lane.b32.xlu0 %v7057_v2, %s5824_s24 }
 0x2e1   : > { %5520 = vmatprep.mubr.msk.f32.mxu0 %vm889_vm11, %v5227_v14 }
 0x2e2   : > { %5234 = vmatmul.mubr.msk.f32.gmra.mxu1 %vm889_vm11, %v5230_v25 }
 0x2e4   : > { %5521 = vmatmul.mubr.msk.f32.vlgmr.msra.gmra.mxu0 %vm889_vm11, %v5228_v16  ;;  %5746 = vrot.lane.b32.xlu0 %v7057_v2, %s5823_s23 }
 0x2e5   : > { %5523 = vmatprep.mubr.msk.f32.mxu0 %vm889_vm11, %v5229_v35 }
 0x2e8   : > { %5524 = vmatmul.mubr.msk.f32.gmra.mxu0 %vm889_vm11, %v5230_v25  ;;  %5751 = vrot.lane.b32.xlu0 %v7057_v2, %s5823_s23 }
 0x2e9   : > { %3337 = vmatprep.mubr.f32.mxu0 %v6615_v29 }
 0x2ec   : > { %5756 = vrot.lane.b32.xlu0 %v7057_v2, %s5826_s26 }
 0x2f0   : > { %5761 = vrot.lane.b32.xlu0 %v7057_v2, %s5826_s26 }
 0x2f4   : > { %5766 = vrot.lane.b32.xlu0 %v7057_v2, %s5825_s25 }
 0x2f8   : > { %5771 = vrot.lane.b32.xlu0 %v7057_v2, %s5825_s25 }
 0x2fc   : > { %5776 = vrot.lane.b32.xlu0 %v7057_v2, %s5828_s30 }
 0x300   : > { %5781 = vrot.lane.b32.xlu0 %v7057_v2, %s5828_s30 }
 0x312   : > { %v5410_v59 = vpop.f32.mrf.mxu0 }
 0x314   : > { %v1057_v5 = vpop.f32.mrf.mxu0 }
 0x316   : > { %v7079_v29 = vpop.f32.mrf.mxu1  ;;  %v5413_v49 = vpop.f32.mrf.mxu0 }
 0x318   : > { %v7083_v37 = vpop.f32.mrf.mxu1  ;;  %v1067_v61 = vpop.f32.mrf.mxu0 }
 0x31a   : > { %v7087_v8 = vpop.f32.mrf.mxu1 }
 0x31c   : > { %v7089_v9 = vpop.f32.mrf.mxu1 }
 0x31e   : > { %v7091_v52 = vpop.f32.mrf.mxu1 }
 0x320   : > { %v7093_v33 = vpop.f32.mrf.mxu1 }
 0x322   : > { %v7095_v43 = vpop.f32.mrf.mxu1 }
 0x324   : > { %v7097_v20 = vpop.f32.mrf.mxu1 }
 0x334   : > { %v7099_v55 = vpop.f32.mrf.mxu0  ;;  %v5424_v6 = vpop.f32.mrf.mxu1 }
 0x335   : > { %v7101_v48 = vadd.f32 %v5424_v6, %v5410_v59 }
 0x336   : > { %v7103_v63 = vpop.f32.mrf.mxu0  ;;  %v1299_v41 = vpop.f32.mrf.mxu1 }
 0x337   : > { %v7105_v40 = vadd.f32 %v1299_v41, %v1057_v5 }
 0x33a   : > { %v7107_v45 = vpop.f32.mrf.mxu0  ;;  %v5427_v34 = vpop.f32.mrf.mxu1 }
 0x33b   : > { %v7109_v53 = vadd.f32 %v5427_v34, %v5413_v49 }
 0x33c   : > { %v7111_v17 = vpop.f32.mrf.mxu0  ;;  %v1309_v11 = vpop.f32.mrf.mxu1 }
 0x33d   : > { %v7113_v3 = vadd.f32 %v1309_v11, %v1067_v61 }
 0x340   : > { %v7115_v24 = vpop.f32.mrf.mxu0  ;;  %v1457_v60 = vpop.f32.mrf.mxu1 }
 0x342   : > { %v7117_v19 = vpop.f32.mrf.mxu0  ;;  %v1459_v7 = vpop.f32.mrf.mxu1 }
 0x344   : > { %v7119_v26 = vpop.f32.mrf.mxu0  ;;  %v7121_v42 = vpop.f32.mrf.mxu1 }
 0x346   : > { %v7123_v28 = vpop.f32.mrf.mxu0  ;;  %v7125_v47 = vpop.f32.mrf.mxu1 }
 0x348   : > { %v7127_v27 = vpop.f32.mrf.mxu1  ;;  %v7129_v13 = vpop.f32.mrf.mxu0 }
 0x34a   : > { %v7131_v44 = vpop.f32.mrf.mxu1  ;;  %v7133_v46 = vpop.f32.mrf.mxu0 }
 0x34c   : > { %v7135_v58 = vpop.f32.mrf.mxu0 }
 0x34d   : > { %v7137_v51 = vpop.f32.mrf.mxu1 }
 0x34e   : > { %v7139_v4 = vpop.f32.mrf.mxu0 }
 0x34f   : > { %v7141_v50 = vpop.f32.mrf.mxu1 }
 0x352   : > { %v1716_v21 = vpop.f32.mrf.mxu0 }
 0x353   : > { %v7143_v62 = vpop.f32.mrf.mxu1 }
 0x354   : > { %v1718_v0 = vpop.f32.mrf.mxu0 }
 0x355   : > { %v7145_v31 = vpop.f32.mrf.mxu1 }
 0x358   : > { %v7147_v10 = vpop.f32.mrf.mxu1 }
 0x359   : > { %v1722_v15 = vpop.f32.mrf.mxu0 }
 0x35a   : > { %v7149_v39 = vpop.f32.mrf.mxu1 }
 0x35b   : > { %v7151_v57 = vpop.f32.mrf.mxu0 }
 0x35e   : > { %v1919_v54 = vpop.f32.mrf.mxu1 }
 0x35f   : > { %v7153_v23 = vpop.f32.mrf.mxu0 }
 0x360   : > { %v1921_v18 = vpop.f32.mrf.mxu1 }
 0x361   : > { %v7155_v14 = vpop.f32.mrf.mxu0 }
 0x363   : > { %v7157_v36 = vpop.f32.mrf.mxu0  ;;  %v1925_v32 = vpop.f32.mrf.mxu1 }
 0x365   : > { %v7159_v22 = vpop.f32.mrf.mxu0  ;;  %v7161_v12 = vpop.f32.mrf.mxu1 }
 0x366   : > { %8285 = vst [vmem:[#allocation18_spill] sm:$0xff] %v7159_v22 }
 0x367   : > { %v7163_v16 = vpop.f32.mrf.mxu0 }
 0x368   : > { %8286 = vst [vmem:[#allocation16_spill] sm:$0xff] %v7163_v16  ;;  %v7165_v38 = vpop.f32.mrf.mxu1 }
 0x369   : > { %v7169_v35 = vpop.f32.mrf.mxu0 }
 0x36a   : > { %v7167_v30 = vpop.f32.mrf.mxu1  ;;  %8288 = vst [vmem:[#allocation15_spill] sm:$0xff] %v7169_v35 }
 0x36b   : > { %8287 = vst [vmem:[#allocation17_spill] sm:$0xff] %v7167_v30  ;;  %v7173_v56 = vpop.f32.mrf.mxu0 }
 0x36c   : > { %v7171_v1 = vpop.f32.mrf.mxu1  ;;  %8290 = vst [vmem:[#allocation14_spill] sm:$0xff] %v7173_v56 }
 0x36d   : > { %8289 = vst [vmem:[#allocation12_spill] sm:$0xff] %v7171_v1  ;;  %v7179_v5 = vpop.f32.mrf.mxu0 }
 0x36e   : > { %v7175_v25 = vpop.f32.mrf.mxu1  ;;  %8293 = vst [vmem:[#allocation21_spill] sm:$0xff] %v7179_v5 }
 0x36f   : > { %8291 = vst [vmem:[#allocation20_spill] sm:$0xff] %v7175_v25 }
 0x370   : > { %v7177_v59 = vpop.f32.mrf.mxu1 }
 0x371   : > { %8292 = vst [vmem:[#allocation11_spill] sm:$0xff] %v7177_v59 }
 0x372   : > { %v7181_v49 = vpop.f32.mrf.mxu1  ;;  %v2210_v6 = vpop.f32.mrf.mxu0 }
 0x373   : > { %8294 = vst [vmem:[#allocation22_spill] sm:$0xff] %v7181_v49 }
 0x374   : > { %v7183_v61 = vpop.f32.mrf.mxu1  ;;  %v2212_v34 = vpop.f32.mrf.mxu0 }
 0x375   : > { %8295 = vst [vmem:[#allocation23_spill] sm:$0xff] %v7183_v61  ;;  %v1211_v61 = vadd.f32 %v7099_v55, %v7079_v29 }
 0x376   : > { %v7185_v41 = vpop.f32.mrf.mxu1 }
 0x377   : > { %8296 = vst [vmem:[#allocation24_spill] sm:$0xff] %v7185_v41 }
 0x378   : > { %v2469_v11 = vpop.f32.mrf.mxu1 }
 0x37a   : > { %v2471_v2 = vpop.f32.mrf.mxu1 }
 0x37c   : > { %v2216_v35 = vpop.f32.mrf.mxu0 }
 0x37d   : > { %v7187_v1 = vpop.f32.mrf.mxu1 }
 0x37e   : > { %8297 = vst [vmem:[#allocation25_spill] sm:$0xff] %v7187_v1  ;;  %v2218_v56 = vpop.f32.mrf.mxu0  ;;  %v1217_v1 = vadd.f32 %v7107_v45, %v7087_v8 }
 0x37f   : > { %v7189_v16 = vpop.f32.mrf.mxu1 }
 0x380   : > { %8298 = vst [vmem:[#allocation26_spill] sm:$0xff] %v7189_v16  ;;  %v1213_v16 = vadd.f32 %v7103_v63, %v7083_v37  ;;  %v1219_v37 = vadd.f32 %v7111_v17, %v7089_v9  ;;  %v1568_v63 = vadd.f32 %v7121_v42, %v1217_v1  ;;  %v1231_v9 = vadd.f32 %v7123_v28, %v7097_v20 }
 0x381   : > { %v1576_v28 = vadd.f32 %v7135_v58, %v7109_v53 }
 0x382   : > { %v7191_v25 = vpop.f32.mrf.mxu0  ;;  %v1566_v29 = vadd.f32 %v1459_v7, %v1213_v16  ;;  %v1229_v7 = vadd.f32 %v7119_v26, %v7095_v43  ;;  %v1569_v16 = vadd.f32 %v7125_v47, %v1219_v37  ;;  %v7239_v43 = vpop.permute.xlu0 %3123  ;;  %v1567_v26 = vadd.f32 %v7133_v46, %v7105_v40 }
 0x383   : > { %8299 = vst [vmem:[#allocation27_spill] sm:$0xff] %v7191_v25  ;;  %v7193_v59 = vpop.f32.mrf.mxu1  ;;  %v1575_v40 = vadd.f32 %v7141_v50, %v1231_v9 }
 0x384   : > { %8300 = vst [vmem:[#allocation28_spill] sm:$0xff] %v7193_v59  ;;  %v7195_v5 = vpop.f32.mrf.mxu0  ;;  %v1565_v59 = vadd.f32 %v1457_v60, %v1211_v61  ;;  %v1825_v8 = vadd.f32 %v1718_v0, %v1566_v29  ;;  %v1225_v60 = vadd.f32 %v7117_v19, %v7093_v33  ;;  %v1570_v33 = vadd.f32 %v7129_v13, %v7101_v48 }
 0x385   : > { %8301 = vst [vmem:[#allocation29_spill] sm:$0xff] %v7195_v5  ;;  %v7199_v49 = vpop.f32.mrf.mxu1  ;;  %v1828_v42 = vadd.f32 %v7151_v57, %v1569_v16  ;;  %v1574_v20 = vadd.f32 %v7137_v51, %v1229_v7  ;;  %v1573_v48 = vadd.f32 %v7139_v4, %v7113_v3  ;;  %v1826_v51 = vadd.f32 %v7145_v31, %v1567_v26  ;;  %v7262_v4 = vpop.permute.xlu1 %3128 }
 0x386   : > { %8302 = vst [vmem:[#allocation30_spill] sm:$0xff] %v7199_v49  ;;  %v7201_v41 = vpop.f32.mrf.mxu0  ;;  %v1824_v55 = vadd.f32 %v1716_v21, %v1565_v59  ;;  %v1572_v19 = vadd.f32 %v7131_v44, %v1225_v60 }
 0x387   : > { %8303 = vst [vmem:[#allocation31_spill] sm:$0xff] %v7201_v41  ;;  %v7203_v22 = vpop.f32.mrf.mxu1  ;;  %v2031_v44 = vadd.f32 %v7161_v12, %v1828_v42  ;;  %v1832_v12 = vadd.f32 %v7149_v39, %v1573_v48  ;;  %v8315_v42 = vld [vmem:[#allocation20_spill] sm:$0xff] }
 0x388   : > { %8304 = vst [vmem:[#allocation32_spill] sm:$0xff] %v7203_v22  ;;  %v7205_v30 = vpop.f32.mrf.mxu0  ;;  %v1223_v22 = vadd.f32 %v7115_v24, %v7091_v52  ;;  %v2027_v45 = vadd.f32 %v1919_v54, %v1824_v55  ;;  %v1827_v52 = vadd.f32 %v1722_v15, %v1568_v63  ;;  %v2028_v24 = vadd.f32 %v1921_v18, %v1825_v8  ;;  %v8308_v55 = vld [vmem:[#allocation25_spill] sm:$0xff]  ;;  %v8310_v8 = vld [vmem:[#allocation15_spill] sm:$0xff] }
 0x389   : > { %v7211_v25 = vpop.f32.mrf.mxu1  ;;  %v1829_v54 = vadd.f32 %v7143_v62, %v1570_v33  ;;  %v1831_v18 = vadd.f32 %v7155_v14, %v1572_v19  ;;  %v1833_v62 = vadd.f32 %v7157_v36, %v1574_v20  ;;  %v2029_v39 = vadd.f32 %v8310_v8, %v1826_v51  ;;  %v8314_v19 = vld [vmem:[#allocation14_spill] sm:$0xff] }
 0x38a   : > { %v7213_v5 = vpop.f32.mrf.mxu0  ;;  %v2318_v59 = vadd.f32 %v2210_v6, %v2027_v45  ;;  %v1571_v17 = vadd.f32 %v7127_v27, %v1223_v22  ;;  %v2030_v47 = vadd.f32 %v1925_v32, %v1827_v52  ;;  %v2319_v0 = vadd.f32 %v2212_v34, %v2028_v24  ;;  %v8306_v1 = vld [vmem:[#allocation27_spill] sm:$0xff]  ;;  %v7269_v34 = vpop.permute.xlu0 %3113  ;;  %v8311_v45 = vld [vmem:[#allocation12_spill] sm:$0xff]  ;;  %v8313_v24 = vld [vmem:[#allocation26_spill] sm:$0xff] }
 0x38b   : > { %v7215_v49 = vpop.f32.mrf.mxu1  ;;  %v2322_v32 = vadd.f32 %v2218_v56, %v2031_v44  ;;  %v8309_v56 = vld [vmem:[#allocation16_spill] sm:$0xff]  ;;  %v2036_v36 = vadd.f32 %v8311_v45, %v1833_v62  ;;  %v7283_v44 = vpop.permute.xlu1 %3118 }
 0x38c   : > { %v7219_v41 = vpop.f32.mrf.mxu0  ;;  %v1830_v27 = vadd.f32 %v7153_v23, %v1571_v17  ;;  %v2577_v46 = vadd.f32 %v2469_v11, %v2318_v59  ;;  %v2321_v57 = vadd.f32 %v2216_v35, %v2030_v47  ;;  %v1835_v23 = vadd.f32 %v7147_v10, %v1576_v28  ;;  %v8305_v35 = vld [vmem:[#allocation17_spill] sm:$0xff]  ;;  %v8307_v11 = vld [vmem:[#allocation18_spill] sm:$0xff] }
 0x38d   : > { %v7228_v21 = vpop.f32.mrf.mxu1  ;;  %v2578_v50 = vadd.f32 %v2471_v2, %v2319_v0  ;;  %v2034_v31 = vadd.f32 %v8305_v35, %v1831_v18  ;;  %v1834_v29 = vadd.f32 %v8307_v11, %v1575_v40  ;;  %v2032_v63 = vadd.f32 %v8309_v56, %v1829_v54  ;;  %v8312_v60 = vld [vmem:[#allocation29_spill] sm:$0xff]  ;;  %v8316_v0 = vld [vmem:[#allocation28_spill] sm:$0xff]  ;;  %v8323_v11 = vld [vmem:[#allocation22_spill] sm:$0xff] }
 0x38e   : > { %v2033_v53 = vadd.f32 %v7165_v38, %v1830_v27  ;;  %v2580_v37 = vadd.f32 %v8308_v55, %v2321_v57  ;;  %v2581_v59 = vadd.f32 %v8313_v24, %v2322_v32  ;;  %v2038_v26 = vadd.f32 %v8314_v19, %v1835_v23  ;;  %v8317_v28 = vld [vmem:[#allocation31_spill] sm:$0xff]  ;;  %v8318_v18 = vld [vmem:[#allocation21_spill] sm:$0xff]  ;;  %v8320_v23 = vld [vmem:[#allocation30_spill] sm:$0xff] }
 0x38f   : > { %v7231_v61 = vpop.f32.mrf.mxu0  ;;  %v2325_v7 = vadd.f32 %v8312_v60, %v2034_v31  ;;  %v2037_v47 = vadd.f32 %v8315_v42, %v1834_v29  ;;  %v2327_v48 = vadd.f32 %v8317_v28, %v2036_v36  ;;  %v8321_v31 = vld [vmem:[#allocation9_spill] sm:$0xff]  ;;  %v2320_v29 = vadd.f32 %v8323_v11, %v2029_v39  ;;  %v8324_v55 = vld [vmem:[#allocation23_spill] sm:$0xff] }
 0x390   : > { %v2324_v14 = vadd.f32 %v8306_v1, %v2033_v53  ;;  %v2035_v53 = vadd.f32 %v8318_v18, %v1832_v12  ;;  %v8325_v12 = vld [vmem:[#allocation32_spill] sm:$0xff] }
 0x391   : > { %v7244_v15 = vpop.f32.mrf.mxu0  ;;  %v2584_v32 = vadd.f32 %v8320_v23, %v2325_v7 }
 0x392   : > { %v7252_v13 = vpop.f32.mrf.mxu1  ;;  %v2583_v20 = vadd.f32 %v8316_v0, %v2324_v14 }
 0x394   : > { %v2728_v58 = vpop.f32.mrf.mxu0  ;;  %v7260_v3 = vpop.f32.mrf.mxu1 }
 0x395   : > { %v2836_v22 = vadd.f32 %v2728_v58, %v2577_v46  ;;  %v8319_v58 = vld [vmem:[#allocation11_spill] sm:$0xff] }
 0x396   : > { %v2730_v6 = vpop.f32.mrf.mxu0  ;;  %v2987_v38 = vpop.f32.mrf.mxu1 }
 0x397   : > { %v2837_v10 = vadd.f32 %v2730_v6, %v2578_v50  ;;  %v3095_v2 = vadd.f32 %v2987_v38, %v2836_v22  ;;  %v2323_v50 = vadd.f32 %v8319_v58, %v2032_v63  ;;  %v2328_v22 = vadd.f32 %v7205_v30, %v2037_v47  ;;  %v8326_v30 = vld [vmem:[#allocation13_spill] sm:$0xff] }
 0x398   : > { %v2734_v16 = vpop.f32.mrf.mxu0  ;;  %v2989_v52 = vpop.f32.mrf.mxu1 }
 0x399   : > { %v3131_v9 = vadd.f32 %v7269_v34, %v3095_v2  ;;  %v2839_v17 = vadd.f32 %v2734_v16, %v2580_v37  ;;  %v3096_v33 = vadd.f32 %v2989_v52, %v2837_v10  ;;  %v2329_v37 = vadd.f32 %v8324_v55, %v2038_v26  ;;  %v8329_v26 = vld [vmem:[#allocation24_spill] sm:$0xff] }
 0x39a   : > { %v2736_v27 = vpop.f32.mrf.mxu0  ;;  %v2993_v40 = vpop.f32.mrf.mxu1  ;;  %v2586_v10 = vadd.f32 %v8325_v12, %v2327_v48  ;;  %v2587_v39 = vadd.f32 %v7211_v25, %v2328_v22  ;;  %v2582_v7 = vadd.f32 %v7213_v5, %v2323_v50  ;;  %v2579_v16 = vadd.f32 %v7219_v41, %v2320_v29 }
 0x39b   : > { %v3143_v46 = vmax.f32 %v3131_v9, 0.0  ;;  %v3132_v57 = vadd.f32 %v7269_v34, %v3096_v33  ;;  %v2840_v54 = vadd.f32 %v2736_v27, %v2581_v59  ;;  %v3098_v51 = vadd.f32 %v2993_v40, %v2839_v17 }
 0x39c   : > { %v2740_v62 = vpop.f32.mrf.mxu0  ;;  %v2995_v35 = vpop.f32.mrf.mxu1  ;;  %v2326_v42 = vadd.f32 %v8329_v26, %v2035_v53  ;;  %v2588_v25 = vadd.f32 %v7231_v61, %v2329_v37  ;;  %v2841_v27 = vadd.f32 %v7215_v49, %v2582_v7  ;;  %v2838_v40 = vadd.f32 %v7228_v21, %v2579_v16 }
 0x39d   : > { %v7291_v1 = vmul.f32 %v3143_v46, %v8321_v31  ;;  %v3144_v14 = vmax.f32 %v3132_v57, 0.0  ;;  %v3134_v6 = vadd.f32 %v7283_v44, %v3098_v51  ;;  %v2842_v38 = vadd.f32 %v2740_v62, %v2583_v20 }
 0x39e   : > { %v3099_v2 = vadd.f32 %v2995_v35, %v2840_v54  ;;  %v2742_v56 = vpop.f32.mrf.mxu0  ;;  %v2999_v63 = vpop.f32.mrf.mxu1  ;;  %v2585_v46 = vadd.f32 %v7244_v15, %v2326_v42  ;;  %v2847_v50 = vadd.f32 %v7252_v13, %v2588_v25 }
 0x39f   : > { %8322 = vst [vmem:[#allocation17_spill] sm:$0xff] %v7291_v1  ;;  %3167 = vst [vmem:[#allocation2 + $0x8] sm:$0xff] %v7291_v1  ;;  %v7299_v8 = vmul.f32 %v3144_v14, %v8326_v30  ;;  %v3146_v45 = vmax.f32 %v3134_v6, 0.0  ;;  %v2843_v36 = vadd.f32 %v2742_v56, %v2584_v32  ;;  %v3101_v60 = vadd.f32 %v2999_v63, %v2842_v38  ;;  %v7498_v42 = vpop.permute.xlu1 %5726 }
 0x3a0   : > { %3216 = vrot.lane.b32.xlu0 %v7291_v1, %s5822_s22  ;;  %v3135_v52 = vadd.f32 %v7283_v44, %v3099_v2  ;;  %v2746_v24 = vpop.f32.mrf.mxu0  ;;  %v3001_v59 = vpop.f32.mrf.mxu1  ;;  %v2844_v62 = vadd.f32 %v7260_v3, %v2585_v46  ;;  %v8335_v3 = vld [vmem:[#allocation10_spill] sm:$0xff] }
 0x3a1   : > { %8327 = vst [vmem:[#allocation27_spill] sm:$0xff] %v7299_v8  ;;  %3168 = vst [vmem:[#allocation2 + $0x10] sm:$0xff] %v7299_v8  ;;  %v7309_v9 = vmul.f32 %v3146_v45, %v8321_v31  ;;  %v3137_v17 = vadd.f32 %v7239_v43, %v3101_v60  ;;  %v2845_v33 = vadd.f32 %v2746_v24, %v2586_v10 }
 0x3a2   : > { %v3102_v19 = vadd.f32 %v3001_v59, %v2843_v36  ;;  %v3147_v5 = vmax.f32 %v3135_v52, 0.0  ;;  %v2748_v47 = vpop.f32.mrf.mxu0  ;;  %v3005_v41 = vpop.f32.mrf.mxu1 }
 0x3a3   : > { %8328 = vst [vmem:[#allocation18_spill] sm:$0xff] %v7309_v9  ;;  %v3149_v0 = vmax.f32 %v3137_v17, 0.0  ;;  %v2846_v28 = vadd.f32 %v2748_v47, %v2587_v39  ;;  %v3104_v48 = vadd.f32 %v3005_v41, %v2845_v33  ;;  %v8341_v41 = vld [vmem:[#allocation19_spill] sm:$0xff] }
 0x3a4   : > { %v3138_v20 = vadd.f32 %v7239_v43, %v3102_v19  ;;  %3416 = vrot.lane.b32.xlu0 %v7291_v1, %s5824_s24  ;;  %v7321_v57 = vmul.f32 %v3147_v5, %v8326_v30  ;;  %v3007_v61 = vpop.f32.mrf.mxu1  ;;  %v5522_v54 = vpop.f32.mrf.mxu0 }
 0x3a5   : > { %v7324_v51 = vmul.f32 %v3149_v0, %v8321_v31  ;;  %v3140_v53 = vadd.f32 %v7262_v4, %v3104_v48  ;;  %v3105_v58 = vadd.f32 %v3007_v61, %v2846_v28  ;;  %v3100_v23 = vadd.f32 %v5522_v54, %v2841_v27  ;;  %v7540_v54 = vld [vmem:[#allocation2 + $0x20] sm:$0xff] }
 0x3a6   : > { %8330 = vst [vmem:[#allocation25_spill] sm:$0xff] %v7321_v57  ;;  %v3150_v18 = vmax.f32 %v3138_v20, 0.0  ;;  %v3076_v49 = vpop.f32.mrf.mxu0  ;;  %5534 = vmatprep.mubr.msk.f32.mxu1 %vm5830_vm12, %v7540_v54 }
 0x3a7   : > { %8331 = vst [vmem:[#allocation16_spill] sm:$0xff] %v7324_v51  ;;  %v3152_v15 = vmax.f32 %v3140_v53, 0.0  ;;  %v3141_v32 = vadd.f32 %v7262_v4, %v3105_v58  ;;  %v3097_v22 = vadd.f32 %v3076_v49, %v2838_v40  ;;  %v3136_v35 = vadd.f32 %v7283_v44, %v3100_v23 }
 0x3a8   : > { %v7329_v21 = vmul.f32 %v3150_v18, %v8326_v30  ;;  %3618 = vrot.lane.b32.xlu0 %v7291_v1, %s5823_s23  ;;  %v5525_v14 = vpop.f32.mrf.mxu0 }
 0x3a9   : > { %v7337_v6 = vmul.f32 %v3152_v15, %v8321_v31  ;;  %v3153_v13 = vmax.f32 %v3141_v32, 0.0  ;;  %v3133_v38 = vadd.f32 %v7269_v34, %v3097_v22  ;;  %v3106_v11 = vadd.f32 %v5525_v14, %v2847_v50 }
 0x3aa   : > { %8332 = vst [vmem:[#allocation15_spill] sm:$0xff] %v7329_v21  ;;  %v3148_v29 = vmax.f32 %v3136_v35, 0.0  ;;  %v3086_v55 = vpop.f32.mrf.mxu0 }
 0x3ab   : > { %8333 = vst [vmem:[#allocation12_spill] sm:$0xff] %v7337_v6  ;;  %v7341_v37 = vmul.f32 %v3153_v13, %v8326_v30  ;;  %v3145_v12 = vmax.f32 %v3133_v38, 0.0  ;;  %v3142_v10 = vadd.f32 %v7262_v4, %v3106_v11  ;;  %v3103_v2 = vadd.f32 %v3086_v55, %v2844_v62 }
 0x3ac   : > { %3823 = vrot.lane.b32.xlu0 %v7291_v1, %s5826_s26  ;;  %v7347_v44 = vmul.f32 %v3148_v29, %v8335_v3 }
 0x3ad   : > { %8334 = vst [vmem:[#allocation29_spill] sm:$0xff] %v7341_v37  ;;  %v7350_v31 = vmul.f32 %v3145_v12, %v8335_v3  ;;  %v3154_v34 = vmax.f32 %v3142_v10, 0.0  ;;  %v3139_v56 = vadd.f32 %v7239_v43, %v3103_v2  ;;  %v7396_v43 = vpop.permute.xlu0 %5731 }
 0x3ae   : > { %3228 = vrot.lane.b32.xlu1 %v7347_v44, %s5822_s22 }
 0x3af   : > { %8336 = vst [vmem:[#allocation26_spill] sm:$0xff] %v7350_v31  ;;  %3169 = vst [vmem:[#allocation2 + $0x18] sm:$0xff] %v7350_v31  ;;  %v7357_v4 = vmul.f32 %v3154_v34, %v8335_v3  ;;  %v3151_v63 = vmax.f32 %v3139_v56, 0.0 }
 0x3b0   : > { %4219 = vrot.lane.b32.xlu0 %v7347_v44, %s5825_s25 }
 0x3b1   : > { %v7362_v30 = vmul.f32 %v3151_v63, %v8335_v3  ;;  %v7402_v45 = vpop.permute.xlu0 %5736 }
 0x3b2   : > { %3428 = vrot.lane.b32.xlu1 %v7347_v44, %s5824_s24 }
 0x3b4   : > { %4424 = vrot.lane.b32.xlu0 %v7347_v44, %s5828_s30 }
 0x3b5   : > { %v7412_v36 = vpop.permute.xlu0 %5741 }
 0x3b6   : > { %3630 = vrot.lane.b32.xlu1 %v7347_v44, %s5823_s23 }
 0x3b8   : > { %3827 = vrot.lane.b32.xlu0 %v7350_v31, %s5826_s26 }
 0x3b9   : > { %v7418_v60 = vpop.permute.xlu0 %5746 }
 0x3ba   : > { %3835 = vrot.lane.b32.xlu1 %v7347_v44, %s5826_s26 }
 0x3bc   : > { %4211 = vrot.lane.b32.xlu0 %v7350_v31, %s5825_s25 }
 0x3bd   : > { %v7428_v39 = vpop.permute.xlu0 %5751 }
 0x3be   : > { %4207 = vrot.lane.b32.xlu1 %v7291_v1, %s5825_s25 }
 0x3c0   : > { %4416 = vrot.lane.b32.xlu0 %v7350_v31, %s5828_s30 }
 0x3c1   : > { %v7434_v7 = vpop.permute.xlu0 %5756 }
 0x3c2   : > { %4412 = vrot.lane.b32.xlu1 %v7291_v1, %s5828_s30 }
 0x3c4   : > { %3224 = vrot.lane.b32.xlu0 %v7309_v9, %s5822_s22 }
 0x3c5   : > { %v7444_v16 = vpop.permute.xlu0 %5761 }
 0x3c6   : > { %3218 = vrot.lane.b32.xlu1 %v7299_v8, %s5822_s22 }
 0x3c8   : > { %3424 = vrot.lane.b32.xlu0 %v7309_v9, %s5824_s24 }
 0x3c9   : > { %v7450_v52 = vpop.permute.xlu0 %5766 }
 0x3ca   : > { %3220 = vrot.lane.b32.xlu1 %v7350_v31, %s5822_s22  ;;  %8337 = vst [vmem:[#allocation14_spill] sm:$0xff] %v7450_v52 }
 0x3cc   : > { %3626 = vrot.lane.b32.xlu0 %v7309_v9, %s5823_s23 }
 0x3cd   : > { %v7460_v24 = vpop.permute.xlu0 %5771 }
 0x3ce   : > { %3418 = vrot.lane.b32.xlu1 %v7299_v8, %s5824_s24  ;;  %8338 = vst [vmem:[#allocation20_spill] sm:$0xff] %v7460_v24  ;;  %v5774_v27 = vunpack.i.h.bf16 %v7460_v24 }
 0x3d0   : > { %3831 = vrot.lane.b32.xlu0 %v7309_v9, %s5826_s26 }
 0x3d1   : > { %v7466_v59 = vpop.permute.xlu0 %5776 }
 0x3d2   : > { %3420 = vrot.lane.b32.xlu1 %v7350_v31, %s5824_s24 }
 0x3d4   : > { %4235 = vrot.lane.b32.xlu0 %v7357_v4, %s5825_s25 }
 0x3d5   : > { %v7476_v17 = vpop.permute.xlu0 %5781 }
 0x3d6   : > { %3620 = vrot.lane.b32.xlu1 %v7299_v8, %s5823_s23  ;;  %8339 = vst [vmem:[#allocation28_spill] sm:$0xff] %v7476_v17 }
 0x3d8   : > { %3236 = vrot.lane.b32.xlu0 %v7362_v30, %s5822_s22 }
 0x3da   : > { %3622 = vrot.lane.b32.xlu1 %v7350_v31, %s5823_s23 }
 0x3dc   : > { %3436 = vrot.lane.b32.xlu0 %v7362_v30, %s5824_s24 }
 0x3de   : > { %3825 = vrot.lane.b32.xlu1 %v7299_v8, %s5826_s26 }
 0x3e0   : > { %3638 = vrot.lane.b32.xlu0 %v7362_v30, %s5823_s23 }
 0x3e2   : > { %4209 = vrot.lane.b32.xlu1 %v7299_v8, %s5825_s25 }
 0x3e4   : > { %3843 = vrot.lane.b32.xlu0 %v7362_v30, %s5826_s26 }
 0x3e6   : > { %4414 = vrot.lane.b32.xlu1 %v7299_v8, %s5828_s30 }
 0x3e8   : > { %3232 = vrot.lane.b32.xlu0 %v7324_v51, %s5822_s22 }
 0x3ea   : > { %3244 = vrot.lane.b32.xlu1 %v7357_v4, %s5822_s22 }
 0x3ec   : > { %4223 = vrot.lane.b32.xlu0 %v7324_v51, %s5825_s25 }
 0x3ee   : > { %3444 = vrot.lane.b32.xlu1 %v7357_v4, %s5824_s24 }
 0x3f0   : > { %4428 = vrot.lane.b32.xlu0 %v7324_v51, %s5828_s30 }
 0x3f2   : > { %3646 = vrot.lane.b32.xlu1 %v7357_v4, %s5823_s23 }
 0x3f4   : > { %3434 = vrot.lane.b32.xlu0 %v7329_v21, %s5824_s24 }
 0x3f6   : > { %3851 = vrot.lane.b32.xlu1 %v7357_v4, %s5826_s26 }
 0x3f8   : > { %3636 = vrot.lane.b32.xlu0 %v7329_v21, %s5823_s23 }
 0x3fa   : > { %4215 = vrot.lane.b32.xlu1 %v7309_v9, %s5825_s25 }
 0x3fc   : > { %3841 = vrot.lane.b32.xlu0 %v7329_v21, %s5826_s26 }
 0x3fe   : > { %4440 = vrot.lane.b32.xlu1 %v7357_v4, %s5828_s30 }
 0x400   : > { %4225 = vrot.lane.b32.xlu0 %v7329_v21, %s5825_s25 }
 0x402   : > { %4420 = vrot.lane.b32.xlu1 %v7309_v9, %s5828_s30 }
 0x404   : > { %4430 = vrot.lane.b32.xlu0 %v7329_v21, %s5828_s30 }
 0x406   : > { %4645 = vrot.lane.b32.xlu1 %v7357_v4, %s5827_s29 }
 0x408   : > { %3242 = vrot.lane.b32.xlu0 %v7341_v37, %s5822_s22 }
 0x40a   : > { %3226 = vrot.lane.b32.xlu1 %v7321_v57, %s5822_s22 }
 0x40c   : > { %4635 = vrot.lane.b32.xlu0 %v7329_v21, %s5827_s29 }
 0x40e   : > { %3426 = vrot.lane.b32.xlu1 %v7321_v57, %s5824_s24 }
 0x410   : > { %3442 = vrot.lane.b32.xlu0 %v7341_v37, %s5824_s24 }
 0x412   : > { %v7482_v33 = vpop.permute.xlu0 %3216  ;;  %3628 = vrot.lane.b32.xlu1 %v7321_v57, %s5823_s23 }
 0x414   : > { %4633 = vrot.lane.b32.xlu0 %v7324_v51, %s5827_s29 }
 0x416   : > { %v7488_v19 = vpop.permute.xlu0 %3416  ;;  %3833 = vrot.lane.b32.xlu1 %v7321_v57, %s5826_s26 }
 0x418   : > { %3644 = vrot.lane.b32.xlu0 %v7341_v37, %s5823_s23 }
 0x41a   : > { %v7494_v26 = vpop.permute.xlu0 %3618  ;;  %4227 = vrot.lane.b32.xlu1 %v7362_v30, %s5825_s25 }
 0x41c   : > { %4629 = vrot.lane.b32.xlu0 %v7347_v44, %s5827_s29 }
 0x41e   : > { %v7502_v25 = vpop.permute.xlu0 %3823  ;;  %4217 = vrot.lane.b32.xlu1 %v7321_v57, %s5825_s25 }
 0x420   : > { %3849 = vrot.lane.b32.xlu0 %v7341_v37, %s5826_s26  ;;  %v7508_v5 = vpop.permute.xlu1 %3228 }
 0x422   : > { %v7510_v47 = vpop.permute.xlu0 %4219  ;;  %4432 = vrot.lane.b32.xlu1 %v7362_v30, %s5828_s30 }
 0x423   : > { %8340 = vst [vmem:[#allocation31_spill] sm:$0xff] %v7510_v47 }
 0x424   : > { %5786 = vrot.lane.b32.xlu0 %v8341_v41, %s5827_s29  ;;  %v7516_v0 = vpop.permute.xlu1 %3428 }
 0x426   : > { %v7518_v20 = vpop.permute.xlu0 %4424  ;;  %4422 = vrot.lane.b32.xlu1 %v7321_v57, %s5828_s30 }
 0x427   : > { %8342 = vst [vmem:[#allocation21_spill] sm:$0xff] %v7518_v20 }
 0x428   : > { %4621 = vrot.lane.b32.xlu0 %v7350_v31, %s5827_s29  ;;  %v7524_v28 = vpop.permute.xlu1 %3630 }
 0x42a   : > { %v3828_v48 = vpop.permute.xlu0 %3827  ;;  %3432 = vrot.lane.b32.xlu1 %v7324_v51, %s5824_s24 }
 0x42c   : > { %5791 = vrot.lane.b32.xlu0 %v8341_v41, %s5827_s29  ;;  %v7531_v40 = vpop.permute.xlu1 %3835 }
 0x42e   : > { %v4212_v46 = vpop.permute.xlu0 %4211  ;;  %3634 = vrot.lane.b32.xlu1 %v7324_v51, %s5823_s23 }
 0x42f   : > { %v7534_v61 = vsel %vm449_vm6, %v4212_v46, %v5774_v27 }
 0x430   : > { %8343 = vst [vmem:[#allocation11_spill] sm:$0xff] %v7534_v61  ;;  %4840 = vrot.lane.b32.xlu0 %v7329_v21, %s5821_s21  ;;  %v7544_v18 = vpop.permute.xlu1 %4207  ;;  %v5778_v61 = vunpack.i.l.bf16 %v7466_v59 }
 0x431   : > { %8344 = vst [vmem:[#allocation30_spill] sm:$0xff] %v7544_v18 }
 0x432   : > { %v7546_v53 = vpop.permute.xlu0 %4416  ;;  %3839 = vrot.lane.b32.xlu1 %v7324_v51, %s5826_s26 }
 0x433   : > { %8345 = vst [vmem:[#allocation9_spill] sm:$0xff] %v7546_v53 }
 0x434   : > { %4838 = vrot.lane.b32.xlu0 %v7324_v51, %s5821_s21  ;;  %v7552_v58 = vpop.permute.xlu1 %4412 }
 0x435   : > { %8346 = vst [vmem:[#allocation22_spill] sm:$0xff] %v7552_v58 }
 0x436   : > { %v7554_v50 = vpop.permute.xlu0 %3224  ;;  %3234 = vrot.lane.b32.xlu1 %v7329_v21, %s5822_s22 }
 0x438   : > { %4438 = vrot.lane.b32.xlu0 %v7341_v37, %s5828_s30  ;;  %v7560_v23 = vpop.permute.xlu1 %3218 }
 0x43a   : > { %v7562_v49 = vpop.permute.xlu0 %3424  ;;  %3240 = vrot.lane.b32.xlu1 %v7337_v6, %s5822_s22 }
 0x43c   : > { %4834 = vrot.lane.b32.xlu0 %v7347_v44, %s5821_s21  ;;  %v7568_v15 = vpop.permute.xlu1 %3220 }
 0x43e   : > { %v7570_v32 = vpop.permute.xlu0 %3626  ;;  %3440 = vrot.lane.b32.xlu1 %v7337_v6, %s5824_s24 }
 0x440   : > { %4643 = vrot.lane.b32.xlu0 %v7341_v37, %s5827_s29  ;;  %v3419_v22 = vpop.permute.xlu1 %3418 }
 0x441   : > { %v7580_v35 = vsel %vm402_vm5, %v7488_v19, %v3419_v22 }
 0x442   : > { %v7576_v62 = vpop.permute.xlu0 %3831  ;;  %3642 = vrot.lane.b32.xlu1 %v7337_v6, %s5823_s23 }
 0x444   : > { %4852 = vrot.lane.b32.xlu0 %v7540_v54, %s5821_s21  ;;  %v3421_v14 = vpop.permute.xlu1 %3420 }
 0x445   : > { %v7587_v13 = vsel %vm402_vm5, %v3419_v22, %v3421_v14 }
 0x446   : > { %v7589_v38 = vpop.permute.xlu0 %4235  ;;  %3847 = vrot.lane.b32.xlu1 %v7337_v6, %s5826_s26 }
 0x447   : > { %8347 = vst [vmem:[#allocation23_spill] sm:$0xff] %v7589_v38 }
 0x448   : > { %4848 = vrot.lane.b32.xlu0 %v7341_v37, %s5821_s21  ;;  %v3621_v11 = vpop.permute.xlu1 %3620 }
 0x449   : > { %v7599_v55 = vsel %vm423_vm4, %v7494_v26, %v3621_v11 }
 0x44a   : > { %v7595_v29 = vpop.permute.xlu0 %3236  ;;  %4231 = vrot.lane.b32.xlu1 %v7337_v6, %s5825_s25 }
 0x44c   : > { %4826 = vrot.lane.b32.xlu0 %v7350_v31, %s5821_s21  ;;  %v3623_v12 = vpop.permute.xlu1 %3622 }
 0x44d   : > { %v7606_v10 = vsel %vm423_vm4, %v3621_v11, %v3623_v12 }
 0x44e   : > { %v3437_v2 = vpop.permute.xlu0 %3436  ;;  %4436 = vrot.lane.b32.xlu1 %v7337_v6, %s5828_s30 }
 0x450   : > { %4844 = vrot.lane.b32.xlu0 %v7540_v54, %s5821_s21  ;;  %v3826_v3 = vpop.permute.xlu1 %3825 }
 0x451   : > { %v7613_v34 = vsel %vm434_vm7, %v3826_v3, %v3828_v48  ;;  %v7617_v63 = vsel %vm434_vm7, %v7502_v25, %v3826_v3 }
 0x452   : > { %v3639_v56 = vpop.permute.xlu0 %3638  ;;  %4641 = vrot.lane.b32.xlu1 %v7337_v6, %s5827_s29 }
 0x454   : > { %4828 = vrot.lane.b32.xlu0 %v7540_v54, %s5821_s21  ;;  %v7623_v41 = vpop.permute.xlu1 %4209 }
 0x455   : > { %8348 = vst [vmem:[#allocation32_spill] sm:$0xff] %v7623_v41  ;;  %v7627_v22 = vsel %vm449_vm6, %v7623_v41, %v4212_v46 }
 0x456   : > { %v3844_v27 = vpop.permute.xlu0 %3843  ;;  %8349 = vst [vmem:[#allocation13_spill] sm:$0xff] %v7627_v22  ;;  %4637 = vrot.lane.b32.xlu1 %v7362_v30, %s5827_s29 }
 0x458   : > { %v7631_v48 = vpop.permute.xlu1 %4414 }
 0x459   : > { %8350 = vst [vmem:[#allocation24_spill] sm:$0xff] %v7631_v48  ;;  %v7638_v11 = vsel %vm8351_vm13, %v7631_v48, %v7546_v53  ;;  %vm8410_vm13 = vmmov %vm8364_vm1 }
 0x45a   : > { %v7633_v14 = vpop.permute.xlu0 %3232  ;;  %8352 = vst [vmem:[#allocation10_spill] sm:$0xff] %v7638_v11  ;;  %4627 = vrot.lane.b32.xlu1 %v7321_v57, %s5827_s29 }
 0x45c   : > { %v3245_v12 = vpop.permute.xlu1 %3244 }
 0x45e   : > { %v4224_v3 = vpop.permute.xlu0 %4223  ;;  %4625 = vrot.lane.b32.xlu1 %v7309_v9, %s5827_s29 }
 0x460   : > { %v7644_v46 = vpop.permute.xlu1 %3444 }
 0x462   : > { %v4429_v58 = vpop.permute.xlu0 %4428  ;;  %4619 = vrot.lane.b32.xlu1 %v7299_v8, %s5827_s29 }
 0x464   : > { %v7648_v22 = vpop.permute.xlu1 %3646 }
 0x466   : > { %v7650_v18 = vpop.permute.xlu0 %3434  ;;  %4233 = vrot.lane.b32.xlu1 %v7341_v37, %s5825_s25 }
 0x467   : > { %v7654_v11 = vsel %vm402_vm5, %v7650_v18, %v3437_v2 }
 0x468   : > { %v7658_v48 = vpop.permute.xlu1 %3851 }
 0x46a   : > { %v7660_v41 = vpop.permute.xlu0 %3636  ;;  %4617 = vrot.lane.b32.xlu1 %v7291_v1, %s5827_s29 }
 0x46b   : > { %v7664_v53 = vsel %vm423_vm4, %v7660_v41, %v3639_v56 }
 0x46c   : > { %v4216_v20 = vpop.permute.xlu1 %4215 }
 0x46e   : > { %v7668_v17 = vpop.permute.xlu0 %3841  ;;  %4850 = vrot.lane.b32.xlu1 %v7357_v4, %s5821_s21 }
 0x46f   : > { %v7672_v2 = vsel %vm434_vm7, %v7668_v17, %v3844_v27 }
 0x470   : > { %v7677_v47 = vpop.permute.xlu1 %4440 }
 0x471   : > { %8353 = vst [vmem:[#allocation19_spill] sm:$0xff] %v7677_v47  ;;  %v7681_v56 = vsel %vm8354_vm14, %v7677_v47, %v5778_v61 }
 0x472   : > { %8355 = vst [vmem:[#allocation33_spill] sm:$0xff] %v7681_v56  ;;  %v4226_v51 = vpop.permute.xlu0 %4225  ;;  %4846 = vrot.lane.b32.xlu1 %v7337_v6, %s5821_s21 }
 0x473   : > { %v7684_v21 = vsel %vm449_vm6, %v4224_v3, %v4226_v51 }
 0x474   : > { %8356 = vst [vmem:[#allocation34_spill] sm:$0xff] %v7684_v21  ;;  %v4421_v27 = vpop.permute.xlu1 %4420 }
 0x476   : > { %v4431_v38 = vpop.permute.xlu0 %4430  ;;  %4842 = vrot.lane.b32.xlu1 %v7362_v30, %s5821_s21 }
 0x477   : > { %v7689_v24 = vsel %vm8357_vm15, %v4429_v58, %v4431_v38  ;;  %vm8413_vm15 = vcmask 891904  }
 0x478   : > { %8358 = vst [vmem:[#allocation35_spill] sm:$0xff] %v7689_v24  ;;  %v7693_v31 = vpop.permute.xlu1 %4645 }
 0x479   : > { %8359 = vst [vmem:[#allocation36_spill] sm:$0xff] %v7693_v31 }
 0x47a   : > { %v3243_v37 = vpop.permute.xlu0 %3242  ;;  %4832 = vrot.lane.b32.xlu1 %v7321_v57, %s5821_s21 }
 0x47b   : > { %v3257_v61 = vsel %vm412_vm3, %v3243_v37, %v3245_v12  ;;  %v5025_v12 = vld [vmem:[#allocation6] sm:$0x1] }
 0x47c   : > { %5527 = vmatpush3.msra.mxu1 %v3257_v61  ;;  %v3227_v3 = vpop.permute.xlu1 %3226 }
 0x47d   : > { %5528 = vmatprep.subr.mxu1 %v7540_v54 }
 0x47e   : > { %4830 = vrot.lane.b32.xlu1 %v7309_v9, %s5821_s21  ;;  %v7713_v61 = vpop.permute.xlu0 %4635  ;;  %v5779_v9 = vunpack.i.h.bf16 %v7466_v59 }
 0x47f   : > { %8360 = vst [vmem:[#allocation37_spill] sm:$0xff] %v7713_v61 }
 0x480   : > { %v7701_v58 = vpop.permute.xlu1 %3426 }
 0x482   : > { %4824 = vrot.lane.b32.xlu1 %v7299_v8, %s5821_s21  ;;  %v3443_v8 = vpop.permute.xlu0 %3442 }
 0x484   : > { %v7705_v24 = vpop.permute.xlu1 %3628 }
 0x486   : > { %4822 = vrot.lane.b32.xlu1 %v7291_v1, %s5821_s21  ;;  %v7734_v52 = vpop.permute.xlu0 %4633 }
 0x487   : > { %8367 = vst [vmem:[#allocation42_spill] sm:$0xff] %v7734_v52 }
 0x488   : > { %v7709_v47 = vpop.permute.xlu1 %3833 }
 0x48a   : > { %4836 = vrot.lane.b32.xlu1 %v7540_v54, %s5821_s21  ;;  %s309_s21 = scalar_lea.vmem %s8159_s9, %s5625_s17 }
 0x48c   : > { %v7715_v31 = vpop.permute.xlu1 %4227 }
 0x48d   : > { %v7719_v21 = vsel %vm449_vm6, %v4226_v51, %v7715_v31 }
 0x48e   : > { %8361 = vst [vmem:[#allocation38_spill] sm:$0xff] %v7719_v21  ;;  %5028 = vperm.xlu1 %5654, %v5025_v12  }
 0x490   : > { %v7721_v56 = vpop.permute.xlu1 %4217 }
 0x491   : > { %8362 = vst [vmem:[#allocation39_spill] sm:$0xff] %v7721_v56  ;;  %v7725_v1 = vsel %vm449_vm6, %v4216_v20, %v7721_v56 }
 0x492   : > { %8363 = vst [vmem:[#allocation40_spill] sm:$0xff] %v7725_v1  ;;  %v7744_v1 = vpop.permute.xlu0 %3644 }
 0x494   : > { %v4433_v57 = vpop.permute.xlu1 %4432 }
 0x495   : > { %v7729_v6 = vsel %vm8364_vm1, %v4433_v57, %v5779_v9  ;;  %v7732_v61 = vsel %vm8365_vm8, %v4431_v38, %v4433_v57  ;;  %vm8416_vm8 = vmmov %vm8413_vm15 }
 0x496   : > { %8366 = vst [vmem:[#allocation41_spill] sm:$0xff] %v7732_v61  ;;  %v7748_v56 = vpop.permute.xlu0 %4629  ;;  %v3248_v61 = vsel %vm412_vm3, %v7560_v23, %v7568_v15 }
 0x497   : > { %8371 = vst [vmem:[#allocation45_spill] sm:$0xff] %v7748_v56 }
 0x498   : > { %v7736_v51 = vpop.permute.xlu1 %4422 }
 0x499   : > { %8368 = vst [vmem:[#allocation43_spill] sm:$0xff] %v7736_v51  ;;  %v7740_v12 = vsel %vm8369_vm2, %v4421_v27, %v7736_v51  ;;  %v5728_v27 = vunpack.i.l.bf16 %v7498_v42 }
 0x49a   : > { %8370 = vst [vmem:[#allocation44_spill] sm:$0xff] %v7740_v12  ;;  %v7754_v52 = vpop.permute.xlu0 %3849  ;;  %v3251_v12 = vsel %vm412_vm3, %v3227_v3, %v7508_v5  ;;  %v5729_v5 = vunpack.i.h.bf16 %v7498_v42 }
 0x49c   : > { %v7742_v20 = vpop.permute.xlu1 %3432 }
 0x49e   : > { %v7779_v21 = vpop.permute.xlu0 %5786 }
 0x4a0   : > { %v7746_v59 = vpop.permute.xlu1 %3634 }
 0x4a4   : > { %v7750_v9 = vpop.permute.xlu1 %3839 }
 0x4a8   : > { %v3235_v57 = vpop.permute.xlu1 %3234 }
 0x4a9   : > { %v3254_v38 = vsel %vm412_vm3, %v3235_v57, %v7595_v29  ;;  %v3253_v15 = vsel %vm412_vm3, %v7633_v14, %v3235_v57  ;;  %v7799_v57 = vpop.permute.xlu0 %4621 }
 0x4aa   : > { %5529 = vmatpush3.msra.mxu1 %v3254_v38  ;;  %v5239_v38 = vld [vmem:[%s8158_s7 + $0x1] sm:$0x1] }
 0x4ab   : > { %5530 = vmatprep.subr.mxu1 %v7540_v54 }
 0x4ac   : > { %v3241_v51 = vpop.permute.xlu1 %3240  ;;  %5531 = vmatpush3.msra.mxu1 %v3251_v12  ;;  %v5734_v12 = vunpack.i.h.bf16 %v7396_v43 }
 0x4ad   : > { %v3255_v56 = vsel %vm412_vm3, %v5728_v27, %v3241_v51  ;;  %5532 = vmatprep.subr.mxu1 %v7540_v54  ;;  %v3256_v29 = vsel %vm412_vm3, %v3241_v51, %v3243_v37  ;;  %v5733_v27 = vunpack.i.l.bf16 %v7396_v43  ;;  %v3252_v37 = vsel %vm412_vm3, %v5729_v5, %v7633_v14 }
 0x4ae   : > { %3297 = vmatprep.subr.mxu0 %v3256_v29  ;;  %5533 = vmatpush3.msra.mxu1 %v3248_v61  ;;  %v3457_v51 = vsel %vm402_vm5, %v3443_v8, %v7644_v46  ;;  %v3247_v14 = vsel %vm412_vm3, %v7482_v33, %v7560_v23  ;;  %v3246_v46 = vsel %vm412_vm3, %v5734_v12, %v7482_v33  ;;  %v5738_v61 = vunpack.i.l.bf16 %v7402_v45 }
 0x4af   : > { %3298 = vmatpush1.msra.mxu0 %v3255_v56  ;;  %5537 = vmatprep.subr.mxu1 %v7540_v54  ;;  %v3250_v56 = vsel %vm412_vm3, %v7554_v50, %v3227_v3  ;;  %v3249_v43 = vsel %vm412_vm3, %v5733_v27, %v7554_v50  ;;  %v3451_v3 = vsel %vm402_vm5, %v7701_v58, %v7516_v0  ;;  %v5739_v33 = vunpack.i.h.bf16 %v7402_v45  ;;  %v3195_v0 = vld [vmem:[%s8158_s7] sm:$0x1]  ;;  %vm8390_vm3 = vmmov %vm8364_vm1 }
 0x4b0   : > { %v3441_v42 = vpop.permute.xlu1 %3440  ;;  %3299 = vmatprep.subr.mxu0 %v3253_v15  ;;  %5535 = vmatmul.mubr.msk.f32.vlgmr.msra.gmra.mxu1 %vm889_vm11, %v5239_v38  ;;  %v3453_v45 = vsel %vm402_vm5, %v7742_v20, %v7650_v18  ;;  %v5744_v29 = vunpack.i.h.bf16 %v7412_v36  ;;  %v3659_v5 = vsel %vm423_vm4, %v7744_v1, %v7648_v22  ;;  %v3450_v18 = vsel %vm402_vm5, %v7562_v49, %v7701_v58 }
 0x4b1   : > { %5538 = vmatpush3.msra.mxu1 %v3457_v51  ;;  %3300 = vmatpush1.msra.mxu0 %v3252_v37  ;;  %v3455_v23 = vsel %vm402_vm5, %v5738_v61, %v3441_v42  ;;  %v5748_v58 = vunpack.i.l.bf16 %v7418_v60  ;;  %v3864_v51 = vsel %vm434_vm7, %v7754_v52, %v7658_v48 }
 0x4b2   : > { %5539 = vmatprep.subr.mxu1 %v7540_v54  ;;  %3301 = vmatprep.subr.mxu0 %v3250_v56  ;;  %v3446_v22 = vsel %vm402_vm5, %v5744_v29, %v7488_v19  ;;  %v5758_v56 = vunpack.i.l.bf16 %v7434_v7 }
 0x4b3   : > { %5540 = vmatpush3.msra.mxu1 %v7654_v11  ;;  %3302 = vmatpush1.msra.mxu0 %v3249_v43  ;;  %v3456_v11 = vsel %vm402_vm5, %v3441_v42, %v3443_v8 }
 0x4b4   : > { %5541 = vmatprep.subr.mxu1 %v7540_v54  ;;  %v3643_v50 = vpop.permute.xlu1 %3642  ;;  %3303 = vmatprep.subr.mxu0 %v3247_v14  ;;  %v5763_v14 = vunpack.i.l.bf16 %v7444_v16 }
 0x4b5   : > { %5542 = vmatpush3.msra.mxu1 %v3451_v3  ;;  %3304 = vmatpush1.msra.mxu0 %v3246_v46  ;;  %v3658_v12 = vsel %vm423_vm4, %v3643_v50, %v7744_v1  ;;  %v3655_v1 = vsel %vm423_vm4, %v7746_v59, %v7660_v41  ;;  %v3652_v41 = vsel %vm423_vm4, %v7570_v32, %v7705_v24 }
 0x4b6   : > { %5543 = vmatprep.subr.mxu1 %v7540_v54  ;;  %3497 = vmatprep.subr.mxu0 %v3456_v11  ;;  %v3856_v3 = vsel %vm434_vm7, %v5763_v14, %v7576_v62  ;;  %v8376_v11 = vld [vmem:[#allocation20_spill] sm:$0xff]  ;;  %v5789_v14 = vunpack.i.h.bf16 %v7779_v21 }
 0x4b7   : > { %5544 = vmatpush3.msra.mxu1 %v7587_v13  ;;  %5240 = vmatmul.mubr.msk.f32.vlgmr.msra.gmra.mxu0 %vm889_vm11, %v5239_v38  ;;  %v5743_v13 = vunpack.i.l.bf16 %v7412_v36  ;;  %v3452_v38 = vsel %vm402_vm5, %v5739_v33, %v7742_v20  ;;  %v7830_v20 = vpop.permute.xlu0 %5791  ;;  %v5773_v33 = vunpack.i.l.bf16 %v8376_v11 }
 0x4b8   : > { %3498 = vmatpush1.msra.mxu0 %v3455_v23  ;;  %5545 = vmatprep.mubr.msk.f32.mxu1 %vm5830_vm12, %v7540_v54  ;;  %v7811_v8 = vpop.permute.xlu1 %3847  ;;  %v8377_v23 = vld [vmem:[#allocation23_spill] sm:$0xff] }
 0x4b9   : > { %5548 = vmatprep.subr.mxu1 %v7540_v54  ;;  %3499 = vmatprep.subr.mxu0 %v3453_v45  ;;  %v3449_v36 = vsel %vm402_vm5, %v5743_v13, %v7562_v49  ;;  %v3653_v49 = vsel %vm423_vm4, %v7705_v24, %v7524_v28  ;;  %v3657_v28 = vsel %vm423_vm4, %v5748_v58, %v3643_v50  ;;  %v8374_v50 = vld [vmem:[#allocation26_spill] sm:$0xff]  ;;  %v8379_v13 = vld [vmem:[#allocation16_spill] sm:$0xff]  ;;  %v8384_v58 = vld [vmem:[#allocation17_spill] sm:$0xff]  ;;  %vm8397_vm5 = vcmask 900096  }
 0x4ba   : > { %5546 = vmatmul.mubr.msk.f32.vlgmr.msra.gmra.mxu1 %vm889_vm11, %v3195_v0  ;;  %3500 = vmatpush1.msra.mxu0 %v3452_v38  ;;  %v3858_v24 = vsel %vm434_vm7, %v7709_v47, %v7531_v40  ;;  %v5759_v40 = vunpack.i.h.bf16 %v7434_v7  ;;  %v5764_v7 = vunpack.i.h.bf16 %v7444_v16  ;;  %vm8406_vm10 = vmmov %vm8397_vm5 }
 0x4bb   : > { %5549 = vmatpush3.msra.mxu1 %v3659_v5  ;;  %3501 = vmatprep.subr.mxu0 %v3450_v18  ;;  %v7857_v27 = vpop.permute.xlu0 %4840  ;;  %v8380_v5 = vld [vmem:[#allocation25_spill] sm:$0xff]  ;;  %v8381_v18 = vld [vmem:[#allocation31_spill] sm:$0xff]  ;;  %vm8411_vm14 = vmmov %vm8397_vm5 }
 0x4bc   : > { %5550 = vmatprep.subr.mxu1 %v7540_v54  ;;  %3502 = vmatpush1.msra.mxu0 %v3449_v36  ;;  %v7833_v15 = vpop.permute.xlu1 %4231  ;;  %v4244_v36 = vsel %vm449_vm6, %v8381_v18, %v5773_v33  ;;  %vm8418_vm2 = vmmov %vm8397_vm5 }
 0x4bd   : > { %5551 = vmatpush3.msra.mxu1 %v7664_v53  ;;  %3503 = vmatprep.subr.mxu0 %v7580_v35  ;;  %v5749_v53 = vunpack.i.h.bf16 %v7418_v60  ;;  %v5244_v35 = vld [vmem:[%s8158_s7 + $0x2] sm:$0x1]  ;;  %v5754_v60 = vunpack.i.h.bf16 %v7428_v39 }
 0x4be   : > { %5552 = vmatprep.subr.mxu1 %v7540_v54  ;;  %3504 = vmatpush1.msra.mxu0 %v3446_v22  ;;  %v8382_v22 = vld [vmem:[#allocation18_spill] sm:$0xff] }
 0x4bf   : > { %5553 = vmatpush3.msra.mxu1 %v3653_v49  ;;  %3537 = vmatprep.mubr.f32.mxu0 %v7540_v54  ;;  %v3654_v37 = vsel %vm423_vm4, %v5749_v53, %v7746_v59  ;;  %v3648_v48 = vsel %vm423_vm4, %v5754_v60, %v7494_v26  ;;  %v7888_v59 = vpop.permute.xlu0 %4838  ;;  %v3863_v26 = vsel %vm434_vm7, %v7811_v8, %v7754_v52  ;;  %v8383_v49 = vld [vmem:[#allocation27_spill] sm:$0xff] }
 0x4c0   : > { %5554 = vmatprep.subr.mxu1 %v7540_v54  ;;  %3699 = vmatprep.subr.mxu0 %v3658_v12  ;;  %v7848_v19 = vpop.permute.xlu1 %4436  ;;  %v3860_v52 = vsel %vm434_vm7, %v7750_v9, %v7668_v17  ;;  %v3857_v17 = vsel %vm434_vm7, %v7576_v62, %v7709_v47  ;;  %v8372_v47 = vld [vmem:[#allocation14_spill] sm:$0xff] }
 0x4c1   : > { %5555 = vmatpush3.msra.mxu1 %v7606_v10  ;;  %5242 = vmatmul.mubr.msk.f32.vlgmr.msra.gmra.mxu0 %vm889_vm11, %v3195_v0  ;;  %v5753_v10 = vunpack.i.l.bf16 %v7428_v39  ;;  %v5768_v62 = vunpack.i.l.bf16 %v8372_v47  ;;  %v5769_v61 = vunpack.i.h.bf16 %v8372_v47  ;;  %v5253_v12 = vld [vmem:[%s8158_s7 + $0x5] sm:$0x1] }
 0x4c2   : > { %3700 = vmatpush1.msra.mxu0 %v3657_v28  ;;  %5556 = vmatprep.mubr.msk.f32.mxu1 %vm5830_vm12, %v7540_v54  ;;  %v8385_v28 = vld [vmem:[#allocation11_spill] sm:$0xff]  ;;  %v8399_v47 = vld [vmem:[#allocation30_spill] sm:$0xff] }
 0x4c3   : > { %5559 = vmatprep.subr.mxu1 %v7540_v54  ;;  %3701 = vmatprep.subr.mxu0 %v3655_v1  ;;  %v3651_v39 = vsel %vm423_vm4, %v5753_v10, %v7570_v32  ;;  %v7919_v46 = vpop.permute.xlu0 %4438  ;;  %v4250_v0 = vsel %vm449_vm6, %v8377_v23, %v5768_v62  ;;  %v4247_v29 = vsel %vm449_vm6, %v7715_v31, %v5769_v61  ;;  %v8386_v1 = vld [vmem:[#allocation28_spill] sm:$0xff]  ;;  %vm8394_vm4 = vmmov %vm8364_vm1  ;;  %v8402_v61 = vld [vmem:[#allocation19_spill] sm:$0xff] }
 0x4c4   : > { %5557 = vmatmul.mubr.msk.f32.vlgmr.msra.gmra.mxu1 %vm889_vm11, %v5244_v35  ;;  %3702 = vmatpush1.msra.mxu0 %v3654_v37  ;;  %v7876_v42 = vpop.permute.xlu1 %4641  ;;  %v5783_v60 = vunpack.i.l.bf16 %v8386_v1 }
 0x4c5   : > { %5560 = vmatpush3.msra.mxu1 %v3864_v51  ;;  %3703 = vmatprep.subr.mxu0 %v3652_v41  ;;  %v8387_v51 = vld [vmem:[#allocation33_spill] sm:$0xff]  ;;  %v5784_v41 = vunpack.i.h.bf16 %v8386_v1 }
 0x4c6   : > { %5561 = vmatprep.subr.mxu1 %v7540_v54  ;;  %3704 = vmatpush1.msra.mxu0 %v3651_v39  ;;  %v8389_v39 = vld [vmem:[#allocation21_spill] sm:$0xff] }
 0x4c7   : > { %5562 = vmatpush3.msra.mxu1 %v7672_v2  ;;  %3705 = vmatprep.subr.mxu0 %v7599_v55  ;;  %v3862_v55 = vsel %vm434_vm7, %v5758_v56, %v7811_v8  ;;  %v5247_v2 = vld [vmem:[%s8158_s7 + $0x3] sm:$0x1]  ;;  %v8378_v8 = vld [vmem:[#allocation15_spill] sm:$0xff] }
 0x4c8   : > { %5563 = vmatprep.subr.mxu1 %v7540_v54  ;;  %3706 = vmatpush1.msra.mxu0 %v3648_v48  ;;  %v7891_v32 = vpop.permute.xlu1 %4637  ;;  %v4449_v48 = vsel %vm8390_vm3, %v8389_v39, %v5783_v60  ;;  %v8391_v56 = vld [vmem:[#allocation34_spill] sm:$0xff]  ;;  %vm8419_vm3 = vmmov %vm8418_vm2 }
 0x4c9   : > { %5564 = vmatpush3.msra.mxu1 %v3858_v24  ;;  %3739 = vmatprep.mubr.f32.mxu0 %v7540_v54  ;;  %v5788_v24 = vunpack.i.l.bf16 %v7779_v21  ;;  %v5794_v21 = vunpack.i.h.bf16 %v7830_v20 }
 0x4ca   : > { %5565 = vmatprep.subr.mxu1 %v7540_v54  ;;  %5245 = vmatmul.mubr.msk.f32.vlgmr.msra.gmra.mxu0 %vm889_vm11, %v5244_v35 }
 0x4cb   : > { %3904 = vmatprep.subr.mxu0 %v3863_v26  ;;  %5566 = vmatpush3.msra.mxu1 %v7613_v34  ;;  %v3859_v34 = vsel %vm434_vm7, %v5759_v40, %v7750_v9  ;;  %v3853_v9 = vsel %vm434_vm7, %v5764_v7, %v7502_v25  ;;  %v5250_v25 = vld [vmem:[%s8158_s7 + $0x4] sm:$0x1]  ;;  %v8392_v26 = vld [vmem:[#allocation39_spill] sm:$0xff]  ;;  %vm8401_vm7 = vmmov %vm8397_vm5 }
 0x4cc   : > { %3905 = vmatpush1.msra.mxu0 %v3862_v55  ;;  %5567 = vmatprep.mubr.msk.f32.mxu1 %vm5830_vm12, %v7540_v54  ;;  %v7912_v43 = vpop.permute.xlu1 %4627  ;;  %v4243_v40 = vsel %vm449_vm6, %v8392_v26, %v8381_v18 }
 0x4cd   : > { %5570 = vmatprep.subr.mxu1 %v7540_v54  ;;  %3906 = vmatprep.subr.mxu0 %v3860_v52 }
 0x4ce   : > { %5568 = vmatmul.mubr.msk.f32.vlgmr.msra.gmra.mxu1 %vm889_vm11, %v5247_v2  ;;  %3907 = vmatpush1.msra.mxu0 %v3859_v34  ;;  %v8395_v34 = vld [vmem:[#allocation40_spill] sm:$0xff] }
 0x4cf   : > { %5571 = vmatpush3.msra.mxu1 %v7357_v4  ;;  %3908 = vmatprep.subr.mxu0 %v3857_v17  ;;  %v7938_v4 = vpop.permute.xlu0 %4834  ;;  %v8396_v17 = vld [vmem:[#allocation36_spill] sm:$0xff] }
 0x4d0   : > { %5572 = vmatprep.subr.mxu1 %v7540_v54  ;;  %3909 = vmatpush1.msra.mxu0 %v3856_v3  ;;  %v7929_v16 = vpop.permute.xlu1 %4625  ;;  %v4660_v3 = vsel %vm8397_vm5, %v8396_v17, %v5788_v24  ;;  %vm8423_vm5 = vmmov %vm8418_vm2 }
 0x4d1   : > { %5573 = vmatpush3.msra.mxu1 %v7362_v30  ;;  %3910 = vmatprep.subr.mxu0 %v7617_v63  ;;  %v8373_v63 = vld [vmem:[#allocation29_spill] sm:$0xff] }
 0x4d2   : > { %5574 = vmatprep.subr.mxu1 %v7540_v54  ;;  %3911 = vmatpush1.msra.mxu0 %v3853_v9 }
 0x4d3   : > { %5575 = vmatpush3.msra.mxu1 %v7347_v44  ;;  %3944 = vmatprep.mubr.f32.mxu0 %v7540_v54  ;;  %v8375_v44 = vld [vmem:[#allocation12_spill] sm:$0xff]  ;;  %v7964_v38 = vpop.permute.xlu0 %4643 }
 0x4d4   : > { %5576 = vmatprep.subr.mxu1 %v7540_v54  ;;  %5248 = vmatmul.mubr.msk.f32.vlgmr.msra.gmra.mxu0 %vm889_vm11, %v5247_v2  ;;  %v7945_v30 = vpop.permute.xlu1 %4619  ;;  %v8393_v2 = vld [vmem:[#allocation9_spill] sm:$0xff]  ;;  %v4659_v60 = vsel %vm8418_vm2, %v7964_v38, %v8396_v17 }
 0x4d5   : > { %4053 = vmatprep.subr.mxu0 %v8373_v63  ;;  %5577 = vmatpush3.msra.mxu1 %v8374_v50  ;;  %v4446_v52 = vsel %vm8394_vm4, %v8393_v2, %v5784_v41  ;;  %v5793_v63 = vunpack.i.l.bf16 %v7830_v20  ;;  %v8400_v50 = vld [vmem:[#allocation13_spill] sm:$0xff]  ;;  %vm8421_vm4 = vmmov %vm8418_vm2 }
 0x4d6   : > { %5578 = vmatprep.mubr.msk.f32.mxu1 %vm5830_vm12, %v7540_v54  ;;  %4054 = vmatpush1.msra.mxu0 %v8375_v44  ;;  %v4657_v44 = vsel %vm8401_vm7, %v7891_v32, %v5789_v14  ;;  %vm8424_vm7 = vmmov %vm8418_vm2 }
 0x4d7   : > { %5579 = vmatmul.mubr.msk.f32.vlgmr.msra.gmra.mxu1 %vm889_vm11, %v5250_v25  ;;  %5581 = vmatprep.subr.mxu1 %v7540_v54  ;;  %v7989_v10 = vpop.permute.xlu0 %4852 }
 0x4d8   : > { %4055 = vmatprep.subr.mxu0 %v8378_v8  ;;  %5582 = vmatpush3.msra.mxu1 %v4250_v0  ;;  %v4234_v45 = vpop.permute.xlu1 %4233  ;;  %v8405_v0 = vld [vmem:[#allocation45_spill] sm:$0xff] }
 0x4d9   : > { %4056 = vmatpush1.msra.mxu0 %v8379_v13  ;;  %5583 = vmatprep.subr.mxu1 %v7540_v54  ;;  %v4249_v53 = vsel %vm449_vm6, %v4234_v45, %v8377_v23  ;;  %v4248_v35 = vsel %vm449_vm6, %v7833_v15, %v4234_v45  ;;  %v8388_v15 = vld [vmem:[#allocation38_spill] sm:$0xff]  ;;  %v4453_v23 = vsel %vm8404_vm9, %v7848_v19, %v7919_v46  ;;  %v8407_v45 = vld [vmem:[#allocation41_spill] sm:$0xff]  ;;  %v8409_v13 = vld [vmem:[#allocation43_spill] sm:$0xff] }
 0x4da   : > { %4057 = vmatprep.subr.mxu0 %v8380_v5  ;;  %5584 = vmatpush3.msra.mxu1 %v4247_v29  ;;  %v4654_v8 = vsel %vm8406_vm10, %v8405_v0, %v5793_v63  ;;  %v8408_v29 = vld [vmem:[#allocation35_spill] sm:$0xff]  ;;  %v4448_v19 = vsel %vm8410_vm13, %v8409_v13, %v8389_v39  ;;  %v5259_v5 = vld [vmem:[%s8158_s7 + $0x7] sm:$0x1]  ;;  %vm8426_vm9 = vmmov %vm8418_vm2 }
 0x4db   : > { %4058 = vmatpush1.msra.mxu0 %v8382_v22  ;;  %5585 = vmatprep.subr.mxu1 %v7540_v54  ;;  %v8015_v7 = vpop.permute.xlu0 %4848  ;;  %vm8427_vm10 = vmmov %vm8418_vm2 }
 0x4dc   : > { %4059 = vmatprep.subr.mxu0 %v8383_v49  ;;  %5586 = vmatpush3.msra.mxu1 %v4244_v36  ;;  %v7972_v31 = vpop.permute.xlu1 %4617  ;;  %v8412_v36 = vld [vmem:[#allocation44_spill] sm:$0xff]  ;;  %vm8429_vm13 = vmmov %vm8416_vm8 }
 0x4dd   : > { %4060 = vmatpush1.msra.mxu0 %v8384_v58  ;;  %4093 = vmatprep.mubr.f32.mxu0 %v7540_v54  ;;  %v8414_v58 = vld [vmem:[#allocation24_spill] sm:$0xff]  ;;  %v4649_v24 = vsel %vm8427_vm10, %v7972_v31, %v7945_v30 }
 0x4de   : > { %5587 = vmatprep.subr.mxu1 %v7540_v54  ;;  %5251 = vmatmul.mubr.msk.f32.vlgmr.msra.gmra.mxu0 %vm889_vm11, %v5250_v25  ;;  %v8398_v25 = vld [vmem:[#allocation32_spill] sm:$0xff] }
 0x4df   : > { %5588 = vmatpush3.msra.mxu1 %v8385_v28  ;;  %5589 = vmatprep.mubr.msk.f32.mxu1 %vm5830_vm12, %v7540_v54  ;;  %v4239_v62 = vsel %vm449_vm6, %v8399_v47, %v8398_v25  ;;  %vm8403_vm6 = vmmov %vm8364_vm1  ;;  %v8042_v33 = vpop.permute.xlu0 %4826 }
 0x4e0   : > { %5590 = vmatmul.mubr.msk.f32.vlgmr.msra.gmra.mxu1 %vm889_vm11, %v5253_v12  ;;  %5592 = vmatprep.subr.mxu1 %v7540_v54  ;;  %v7993_v37 = vpop.permute.xlu1 %4850  ;;  %v4454_v11 = vsel %vm8403_vm6, %v7919_v46, %v8402_v61  ;;  %v4651_v46 = vsel %vm8411_vm14, %v7799_v57, %v5794_v21  ;;  %vm8425_vm6 = vmmov %vm8418_vm2 }
 0x4e1   : > { %5593 = vmatpush3.msra.mxu1 %v8387_v51  ;;  %4290 = vmatprep.subr.mxu0 %v4249_v53  ;;  %v4865_v49 = vsel %vm8413_vm15, %v7993_v37, %v7989_v10  ;;  %v4658_v10 = vsel %vm8419_vm3, %v7876_v42, %v7964_v38  ;;  %v8420_v51 = vld [vmem:[#allocation37_spill] sm:$0xff]  ;;  %v4653_v42 = vsel %vm8424_vm7, %v7912_v43, %v8405_v0  ;;  %vm8430_vm14 = vmmov %vm8416_vm8 }
 0x4e2   : > { %5594 = vmatprep.subr.mxu1 %v7540_v54  ;;  %4291 = vmatpush1.msra.mxu0 %v4248_v35  ;;  %v8417_v35 = vld [vmem:[#allocation10_spill] sm:$0xff]  ;;  %v4656_v41 = vsel %vm8421_vm4, %v8420_v51, %v7891_v32  ;;  %v4652_v32 = vsel %vm8425_vm6, %v7929_v16, %v7912_v43  ;;  %v4650_v38 = vsel %vm8426_vm9, %v7945_v30, %v7799_v57  ;;  %vm8431_vm15 = vmmov %vm8416_vm8 }
 0x4e3   : > { %5595 = vmatpush3.msra.mxu1 %v7729_v6  ;;  %4292 = vmatprep.subr.mxu0 %v8388_v15  ;;  %v5256_v6 = vld [vmem:[%s8158_s7 + $0x6] sm:$0x1]  ;;  %v4845_v22 = vpop.permute.xlu0 %4844 }
 0x4e4   : > { %5596 = vmatprep.subr.mxu1 %v7540_v54  ;;  %4293 = vmatpush1.msra.mxu0 %v8391_v56  ;;  %v8008_v55 = vpop.permute.xlu1 %4846  ;;  %v8422_v15 = vld [vmem:[#allocation42_spill] sm:$0xff] }
 0x4e5   : > { %5597 = vmatpush3.msra.mxu1 %v4449_v48  ;;  %4294 = vmatprep.subr.mxu0 %v4243_v40  ;;  %v4655_v39 = vsel %vm8423_vm5, %v8422_v15, %v8420_v51  ;;  %v4863_v40 = vsel %vm8430_vm14, %v8008_v55, %v8015_v7 }
 0x4e6   : > { %5598 = vmatprep.subr.mxu1 %v7540_v54  ;;  %5600 = vmatprep.mubr.msk.f32.mxu1 %vm5830_vm12, %v7540_v54 }
 0x4e7   : > { %5599 = vmatpush3.msra.mxu1 %v4446_v52  ;;  %4295 = vmatpush1.msra.mxu0 %v8395_v34  ;;  %v4829_v16 = vpop.permute.xlu0 %4828 }
 0x4e8   : > { %5601 = vmatmul.mubr.msk.f32.vlgmr.msra.gmra.mxu1 %vm889_vm11, %v5256_v6  ;;  %5603 = vmatprep.subr.mxu1 %v7540_v54  ;;  %v8026_v9 = vpop.permute.xlu1 %4842 }
 0x4e9   : > { %4296 = vmatprep.subr.mxu0 %v8400_v50  ;;  %5604 = vmatpush3.msra.mxu1 %v4660_v3  ;;  %v4862_v28 = vsel %vm8416_vm8, %v8026_v9, %v4845_v22  ;;  %v4861_v57 = vsel %vm8431_vm15, %v7857_v27, %v8026_v9 }
 0x4ea   : > { %4297 = vmatpush1.msra.mxu0 %v4239_v62  ;;  %4330 = vmatprep.mubr.f32.mxu0 %v7540_v54 }
 0x4eb   : > { %5605 = vmatprep.subr.mxu1 %v7540_v54  ;;  %5254 = vmatmul.mubr.msk.f32.vlgmr.msra.gmra.mxu0 %vm889_vm11, %v5253_v12  ;;  %v8415_v12 = vld [vmem:[#allocation22_spill] sm:$0xff] }
 0x4ec   : > { %4495 = vmatprep.subr.mxu0 %v4454_v11  ;;  %5606 = vmatpush3.msra.mxu1 %v4657_v44  ;;  %v8047_v20 = vpop.permute.xlu1 %4832  ;;  %v4444_v53 = vsel %vm8364_vm1, %v8415_v12, %v8414_v58  ;;  %vm8432_vm1 = vmmov %vm8416_vm8 }
 0x4ed   : > { %4496 = vmatpush1.msra.mxu0 %v4453_v23  ;;  %5607 = vmatprep.subr.mxu1 %v7540_v54  ;;  %v4860_v30 = vsel %vm8432_vm1, %v7888_v59, %v7857_v27  ;;  %vm8434_vm2 = vmmov %vm8432_vm1  ;;  %v5262_v27 = vld [vmem:[%s8158_s7 + $0x8] sm:$0x1] }
 0x4ee   : > { %4497 = vmatprep.subr.mxu0 %v8407_v45  ;;  %5608 = vmatpush3.msra.mxu1 %v4654_v8  ;;  %vm8435_vm3 = vmmov %vm8432_vm1 }
 0x4ef   : > { %4498 = vmatpush1.msra.mxu0 %v8408_v29  ;;  %5609 = vmatprep.subr.mxu1 %v7540_v54  ;;  %vm8436_vm4 = vmmov %vm8432_vm1 }
 0x4f0   : > { %4499 = vmatprep.subr.mxu0 %v4448_v19  ;;  %5610 = vmatpush3.msra.mxu1 %v4651_v46  ;;  %v4831_v18 = vpop.permute.xlu1 %4830  ;;  %vm8437_vm5 = vmmov %vm8432_vm1 }
 0x4f1   : > { %5611 = vmatprep.mubr.msk.f32.mxu1 %vm5830_vm12, %v7540_v54  ;;  %4500 = vmatpush1.msra.mxu0 %v8412_v36  ;;  %v4857_v55 = vsel %vm8435_vm3, %v4831_v18, %v8047_v20 }
 0x4f2   : > { %5612 = vmatmul.mubr.msk.f32.vlgmr.msra.gmra.mxu1 %vm889_vm11, %v5259_v5  ;;  %5614 = vmatprep.subr.mxu1 %v7540_v54 }
 0x4f3   : > { %4501 = vmatprep.subr.mxu0 %v8417_v35  ;;  %5615 = vmatpush3.msra.mxu1 %v4865_v49  ;;  %v8438_v35 = vlaneseq }
 0x4f4   : > { %4502 = vmatpush1.msra.mxu0 %v4444_v53  ;;  %4535 = vmatprep.mubr.f32.mxu0 %v7540_v54  ;;  %v4825_v1 = vpop.permute.xlu1 %4824 }
 0x4f5   : > { %5616 = vmatprep.subr.mxu1 %v7540_v54  ;;  %5257 = vmatmul.mubr.msk.f32.vlgmr.msra.gmra.mxu0 %vm889_vm11, %v5256_v6  ;;  %v4855_v59 = vsel %vm8437_vm5, %v4825_v1, %v8042_v33 }
 0x4f6   : > { %4700 = vmatprep.subr.mxu0 %v4659_v60  ;;  %5617 = vmatpush3.msra.mxu1 %v4862_v28 }
 0x4f7   : > { %4701 = vmatpush1.msra.mxu0 %v4658_v10  ;;  %4740 = vmatprep.mubr.f32.mxu0 %v7540_v54 }
 0x4f8   : > { %4702 = vmatprep.subr.mxu0 %v4656_v41  ;;  %v4823_v48 = vpop.permute.xlu1 %4822  ;;  %5618 = vmatprep.subr.mxu1 %v7540_v54 }
 0x4f9   : > { %4703 = vmatpush1.msra.mxu0 %v4655_v39  ;;  %5622 = vmatprep.mubr.msk.f32.mxu1 %vm5830_vm12, %v7540_v54  ;;  %vm8428_vm12 = vmmov %vm8416_vm8  ;;  %v4854_v6 = vsel %vm8436_vm4, %v4823_v48, %v4825_v1  ;;  %v5032_v1 = vshrl.u32 %v8438_v35, 7 }
 0x4fa   : > { %4704 = vmatprep.subr.mxu0 %v4653_v42  ;;  %v4864_v26 = vsel %vm8428_vm12, %v8015_v7, %v7993_v37  ;;  %vm8433_vm8 = vmmov %vm8432_vm1  ;;  %v4858_v37 = vsel %vm8434_vm2, %v8047_v20, %v7938_v4 }
 0x4fb   : > { %4705 = vmatpush1.msra.mxu0 %v4652_v32  ;;  %v4856_v31 = vsel %vm8433_vm8, %v8042_v33, %v4829_v16  ;;  %v5831_v32 = vmov 1966171168  }
 0x4fc   : > { %4706 = vmatprep.subr.mxu0 %v4650_v38  ;;  %v4837_v56 = vpop.permute.xlu1 %4836  ;;  %v5043_v38 = vunpack.c.l.s4 %v5831_v32 }
 0x4fd   : > { %4707 = vmatpush1.msra.mxu0 %v4649_v24  ;;  %v4859_v43 = vsel %vm8429_vm13, %v7938_v4, %v4837_v56  ;;  %v5033_v24 = vsub.s32 0, %v5032_v1 }
 0x4fe   : > { %5260 = vmatmul.mubr.msk.f32.vlgmr.msra.gmra.mxu0 %vm889_vm11, %v5259_v5  ;;  %4905 = vmatprep.subr.mxu0 %v4864_v26 }
 0x4ff   : > { %4906 = vmatpush1.msra.mxu0 %v4863_v40  ;;  %4945 = vmatprep.mubr.f32.mxu0 %v7540_v54 }
 0x500   : > { %4907 = vmatprep.subr.mxu0 %v4861_v57  ;;  %5619 = vmatpush3.msra.mxu1 %v4859_v43 }
 0x501   : > { %4908 = vmatpush1.msra.mxu0 %v4860_v30  ;;  %5620 = vmatprep.subr.mxu1 %v7540_v54 }
 0x502   : > { %4909 = vmatprep.subr.mxu0 %v4858_v37  ;;  %5621 = vmatpush3.msra.mxu1 %v4856_v31 }
 0x503   : > { %4910 = vmatpush1.msra.mxu0 %v4857_v55  ;;  %5623 = vmatmul.mubr.msk.f32.vlgmr.msra.gmra.mxu1 %vm889_vm11, %v5262_v27 }
 0x504   : > { %4911 = vmatprep.subr.mxu0 %v4855_v59 }
 0x505   : > { %4912 = vmatpush1.msra.mxu0 %v4854_v6 }
 0x506   : > { %5263 = vmatmul.mubr.msk.f32.vlgmr.msra.gmra.mxu0 %vm889_vm11, %v5262_v27  ;;  %v5044_v27 = vunpack.c.0.s8 %v5043_v38 }
 0x509   : > { %v5029_v40 = vpop.permute.xlu1 %5028 }
 0x50a   : > { %v5034_v59 = vrot.slane %v5029_v40, %v5033_v24 }
 0x570   : > { %v3410_v54 = vpop.f32.mrf.mxu1 }
 0x572   : > { %v5536_v4 = vpop.f32.mrf.mxu1 }
 0x577   : > { %v3339_v9 = vpop.f32.mrf.mxu0 }
 0x579   : > { %v3341_v47 = vpop.f32.mrf.mxu0 }
 0x57a   : > { %v3610_v2 = vpop.f32.mrf.mxu1 }
 0x57b   : > { %v3611_v52 = vadd.f32 %v3610_v2, %v3410_v54 }
 0x57c   : > { %v5547_v7 = vpop.f32.mrf.mxu1 }
 0x581   : > { %v3539_v63 = vpop.f32.mrf.mxu0 }
 0x582   : > { %v3540_v18 = vadd.f32 %v3539_v63, %v3339_v9 }
 0x583   : > { %v3541_v50 = vpop.f32.mrf.mxu0 }
 0x584   : > { %v3812_v14 = vpop.f32.mrf.mxu1  ;;  %v3542_v22 = vadd.f32 %v3541_v50, %v3341_v47 }
 0x585   : > { %v3818_v46 = vadd.f32 %v3812_v14, %v3611_v52  ;;  %v5047_v14 = vsub.s32 %v5044_v27, %v5032_v1 }
 0x586   : > { %v5558_v34 = vpop.f32.mrf.mxu1 }
 0x58a   : > { %v3741_v44 = vpop.f32.mrf.mxu0 }
 0x58b   : > { %v3816_v49 = vadd.f32 %v3741_v44, %v3540_v18 }
 0x58c   : > { %v3743_v11 = vpop.f32.mrf.mxu0 }
 0x58d   : > { %v3817_v12 = vadd.f32 %v3743_v11, %v3542_v22 }
 0x58e   : > { %v4017_v17 = vpop.f32.mrf.mxu1 }
 0x58f   : > { %v4023_v58 = vadd.f32 %v4017_v17, %v3818_v46 }
 0x590   : > { %v5569_v3 = vpop.f32.mrf.mxu1 }
 0x594   : > { %v3946_v33 = vpop.f32.mrf.mxu0 }
 0x595   : > { %v4021_v53 = vadd.f32 %v3946_v33, %v3816_v49 }
 0x596   : > { %v3948_v0 = vpop.f32.mrf.mxu0 }
 0x597   : > { %v4166_v25 = vpop.f32.mrf.mxu1  ;;  %v4022_v10 = vadd.f32 %v3948_v0, %v3817_v12 }
 0x598   : > { %v4172_v28 = vadd.f32 %v4166_v25, %v4023_v58 }
 0x599   : > { %v5580_v62 = vpop.f32.mrf.mxu1 }
 0x59e   : > { %v4095_v8 = vpop.f32.mrf.mxu0 }
 0x59f   : > { %v4170_v51 = vadd.f32 %v4095_v8, %v4021_v53 }
 0x5a0   : > { %v4403_v21 = vpop.f32.mrf.mxu1  ;;  %v4097_v45 = vpop.f32.mrf.mxu0 }
 0x5a1   : > { %v4409_v41 = vadd.f32 %v4403_v21, %v4172_v28  ;;  %v4171_v39 = vadd.f32 %v4097_v45, %v4022_v10 }
 0x5a2   : > { %v5591_v61 = vpop.f32.mrf.mxu1 }
 0x5a8   : > { %v4608_v23 = vpop.f32.mrf.mxu1 }
 0x5a9   : > { %v4614_v48 = vadd.f32 %v4608_v23, %v4409_v41 }
 0x5aa   : > { %v5602_v20 = vpop.f32.mrf.mxu1 }
 0x5ab   : > { %v4332_v13 = vpop.f32.mrf.mxu0 }
 0x5ac   : > { %v4407_v42 = vadd.f32 %v4332_v13, %v4170_v51 }
 0x5ad   : > { %v4334_v5 = vpop.f32.mrf.mxu0 }
 0x5ae   : > { %v4408_v56 = vadd.f32 %v4334_v5, %v4171_v39 }
 0x5b2   : > { %v4813_v29 = vpop.f32.mrf.mxu1 }
 0x5b3   : > { %v4819_v26 = vadd.f32 %v4813_v29, %v4614_v48 }
 0x5b4   : > { %v5613_v19 = vpop.f32.mrf.mxu1 }
 0x5b5   : > { %v4537_v36 = vpop.f32.mrf.mxu0 }
 0x5b6   : > { %v4612_v43 = vadd.f32 %v4537_v36, %v4407_v42 }
 0x5b7   : > { %v4539_v60 = vpop.f32.mrf.mxu0 }
 0x5b8   : > { %v4613_v30 = vadd.f32 %v4539_v60, %v4408_v56 }
 0x5be   : > { %v4742_v15 = vpop.f32.mrf.mxu0 }
 0x5bf   : > { %v4817_v31 = vadd.f32 %v4742_v15, %v4612_v43 }
 0x5c0   : > { %v4744_v57 = vpop.f32.mrf.mxu0 }
 0x5c1   : > { %v4818_v54 = vadd.f32 %v4744_v57, %v4613_v30 }
 0x5c3   : > { %v5018_v16 = vpop.f32.mrf.mxu1 }
 0x5c4   : > { %v5024_v37 = vadd.f32 %v5018_v16, %v4819_v26 }
 0x5c5   : > { %v5624_v55 = vpop.f32.mrf.mxu1 }
 0x5c6   : > { %v4947_v6 = vpop.f32.mrf.mxu0  ;;  %v5037_v7 = vadd.f32 %v5034_v59, %v5024_v37 }
 0x5c7   : > { %v5022_v4 = vadd.f32 %v4947_v6, %v4817_v31 }
 0x5c8   : > { %v4949_v2 = vpop.f32.mrf.mxu0  ;;  %v5055_v9 = vrot.slane %v5037_v7, %v5047_v14 }
 0x5c9   : > { %v5023_v52 = vadd.f32 %v4949_v2, %v4818_v54  ;;  %v5035_v34 = vadd.f32 %v5034_v59, %v5022_v4 }
 0x5cb   : > { %v5036_v17 = vadd.f32 %v5034_v59, %v5023_v52 }
 0x5cd   : > { %v5041_v3 = vcombine.low %v5035_v34, %v5036_v17 }
 0x5cf   : > { %v5048_v25 = vrot.slane %v5041_v3, %v5047_v14 }
 0x5d1   : > { %v5056_v47 = vcombine.low %v5048_v25, %v5055_v9 }
 0x5d3   : > { %v5063_v62 = vrot.slane %v5056_v47, %v5047_v14 }
 0x5d5   : > { %5065 = vst.msk [vmem:[%s309_s21] sm:$0x7] %vm5907_vm0, %v5063_v62 }
 0x5d6 PF: > { %s27_s16 = sadd.s32 1, %s5817_s16  }
 0x5d7   : > { %p24_p9 = scmp.ge.s32.totalorder %s27_s16, 4  }
 0x5d9   :  { %26 = sbr.rel (!%p24_p9) target bundleno = 16 (0x10), region = 107 }

</bundles_post_ra>
